<compile_context>
chip_gen: v6e
topology: v6e:2x2x1
jax: 0.10.0
libtpu: 0.0.40
codegen_flags: <defaults>
</compile_context>

<pallas_src>
import functools

import numpy as np

import jax
import jax.numpy as jnp
from jax.experimental import pallas as pl
from jax.experimental.pallas import tpu as pltpu


# ----------------------------------------------------------------------------
# The single fused Pallas kernel
# ----------------------------------------------------------------------------
def _banded_conv(act_f32, pad_ref, w_ref, bmap_ref):
    """Valid KHxKW conv of one image as KH row-shifted banded bf16 MXU matmuls.

    act_f32  : (H_in, W_in*Cin)        f32 value — packed rows; W-pad & coords folded
    pad_ref  : (H_in+KH-1, W_in*Cin)   f32 VMEM scratch — H replication pad
    w_ref    : (KH, W_in*Cin, Wo*Cout) bf16 — banded weights (W-pad clamped in)
    bmap_ref : (Ho, Wo*Cout)           f32  — bias + folded coord-channel conv
    returns  : (Ho, Wo*Cout)           f32
    """
    h_in = act_f32.shape[0]
    kh = w_ref.shape[0]
    pad_top, pad_bot = 1, kh - 2          # ReplicationPad2d((1, kh-2, 1, kh-2))
    ho = bmap_ref.shape[0]

    # H-direction replication pad via a few VMEM row copies.
    pad_ref[pad_top:pad_top + h_in, :] = act_f32
    pad_ref[0:pad_top, :] = act_f32[0:1, :]
    for b in range(pad_bot):
        r = pad_top + h_in + b
        pad_ref[r:r + 1, :] = act_f32[h_in - 1:h_in, :]

    acc = bmap_ref[...]                   # f32 accumulator; coords+bias prefolded
    for i in range(kh):                   # KH row-shifted banded matmuls == conv
        lhs = pad_ref[i:i + ho, :].astype(jnp.bfloat16)
        acc = acc + jnp.dot(lhs, w_ref[i], preferred_element_type=jnp.float32)
    return acc


def _fnet_kernel(x_ref, *rest, num_body):
    nb = num_body
    body = [rest[4 * l:4 * l + 4] for l in range(nb)]
    off = 4 * nb
    wf1_ref, bf1_ref, wf2_ref, bf2_ref = rest[off:off + 4]
    o_ref = rest[off + 4]
    pads = rest[off + 5:]                 # nb + 2 padded-activation scratch refs

    act = x_ref[...]                      # f32 (H0, W0*C0), one image

    # Body layers: 4x4 conv -> bilinear x2 upsample (two interp matmuls) -> tanh
    for l in range(nb):
        w_ref, bmap_ref, uph_ref, upw_ref = body[l]
        acc = _banded_conv(act, pads[l], w_ref, bmap_ref)        # (Ho, Wo*C) f32
        acc = jnp.dot(acc.astype(jnp.bfloat16), upw_ref[...],    # W upsample
                      preferred_element_type=jnp.float32)
        acc = jnp.dot(uph_ref[...], acc.astype(jnp.bfloat16),    # H upsample
                      preferred_element_type=jnp.float32)
        act = jnp.tanh(acc)                                      # EUP

    # conv_final1 (3x3) + leaky_relu(slope 0.1, as in the module)
    acc = _banded_conv(act, pads[nb], wf1_ref, bf1_ref)
    act = jnp.where(acc >= 0, acc, 0.1 * acc)

    # conv_final2 (3x3) + exp(x - 2)
    acc = _banded_conv(act, pads[nb + 1], wf2_ref, bf2_ref)
    o_ref[...] = jnp.exp(acc - 2.0).astype(o_ref.dtype)


# ----------------------------------------------------------------------------
# Forward wrapper: one pallas_call for the whole network
# ----------------------------------------------------------------------------
def fnet_forward(prep, x_nchw):
    """x_nchw: (N, C, H, W) f32.  Returns (N, 1, 4H, 4W) f32."""
    N, C, H, W = x_nchw.shape
    x = jnp.transpose(x_nchw, (0, 2, 3, 1)).reshape(N, H, W * C)
    x = x.astype(jnp.float32)

    arrays = [x]
    in_specs = [pl.BlockSpec((None, H, W * C), lambda n: (n, 0, 0))]
    scratch_shapes = []

    def add_param(a):
        arrays.append(a)
        if a.ndim == 2:
            in_specs.append(pl.BlockSpec(a.shape, lambda n: (0, 0)))
        else:
            in_specs.append(pl.BlockSpec(a.shape, lambda n: (0, 0, 0)))

    h, wc = H, W * C
    for layer in prep["body"]:
        kh = layer["w"].shape[0]
        for k in ("w", "bmap", "uph", "upw"):
            add_param(layer[k])
        scratch_shapes.append(pltpu.VMEM((h + kh - 1, wc), jnp.float32))
        ho, n_out = layer["bmap"].shape
        h, wc = 2 * ho, 2 * n_out            # after the x2 upsample
    for name in ("final1", "final2"):
        kh = prep[name]["w"].shape[0]
        add_param(prep[name]["w"])
        add_param(prep[name]["bmap"])
        scratch_shapes.append(pltpu.VMEM((h + kh - 1, wc), jnp.float32))
        h, wc = prep[name]["bmap"].shape
    h_out, w_out = h, wc                     # final2 has Cout == 1

    kernel = functools.partial(_fnet_kernel, num_body=len(prep["body"]))
    out = pl.pallas_call(
        kernel,
        out_shape=jax.ShapeDtypeStruct((N, h_out, w_out), jnp.float32),
        grid=(N,),
        in_specs=in_specs,
        out_specs=pl.BlockSpec((None, h_out, w_out), lambda n: (n, 0, 0)),
        scratch_shapes=scratch_shapes,
        compiler_params=pltpu.CompilerParams(
            dimension_semantics=("parallel",),    # one image per TC on v7x
            vmem_limit_bytes=32 * 1024 * 1024),   # safe on v5e/v6e/v7x
    )(*arrays)
    return out[:, None, :, :]                 # (N, 1, Hout, Wout), Cout == 1


# ----------------------------------------------------------------------------
# Parameter construction and one-time packing (outside the jitted forward)
# ----------------------------------------------------------------------------
def xavier_normal(key, kh, kw, cin, cout):
    fan_in = cin * kh * kw
    fan_out = cout * kh * kw
    std = (2.0 / (fan_in + fan_out)) ** 0.5
    return std * jax.random.normal(key, (kh, kw, cin, cout), dtype=jnp.float32)


def init_fnet_params(key, feats, coordpad=2, aux_pad=0):
    params = {"convs": []}
    for i in range(len(feats) - 1):
        key, sub = jax.random.split(key)
        w = xavier_normal(sub, 4, 4, feats[i] + coordpad, feats[i + 1])
        b = jnp.full((feats[i + 1],), 0.001, dtype=jnp.float32)
        params["convs"].append((w, b))
    key, sub = jax.random.split(key)
    params["final1"] = (
        xavier_normal(sub, 3, 3, feats[-1] + coordpad + aux_pad, feats[-1] // 2),
        jnp.zeros((feats[-1] // 2,), jnp.float32),
    )
    key, sub = jax.random.split(key)
    params["final2"] = (
        xavier_normal(sub, 3, 3, feats[-1] // 2 + coordpad, 1),
        jnp.zeros((1,), jnp.float32),
    )
    return params


def _upsample_matrix(size):
    """(2*size, size) bilinear x2 interpolation matrix, align_corners=False,
    matching nn.Upsample(scale_factor=2, mode='bilinear')."""
    out = np.arange(2 * size, dtype=np.float64)
    src = np.clip((out + 0.5) / 2.0 - 0.5, 0.0, size - 1)
    i0 = np.floor(src).astype(np.int64)
    i1 = np.minimum(i0 + 1, size - 1)
    frac = src - i0
    m = np.zeros((2 * size, size), np.float64)
    m[np.arange(2 * size), i0] += 1.0 - frac
    m[np.arange(2 * size), i1] += frac
    return m.astype(np.float32)


def _coord_image(h, w):
    """(1, h, w, 2) coord channels matching FNet.makecoords: cx varies along H,
    cy varies along W."""
    a = np.linspace(-1.0, 1.0, h, dtype=np.float32)
    b = np.linspace(-1.0, 1.0, w, dtype=np.float32)
    cx = np.broadcast_to(a[:, None], (h, w))
    cy = np.broadcast_to(b[None, :], (h, w))
    return np.stack([cx, cy], axis=-1)[None].astype(np.float32)


def _conv_valid_np(x_nhwc, w_hwio):
    y = jax.lax.conv_general_dilated(
        jnp.asarray(x_nhwc, jnp.float32), jnp.asarray(w_hwio, jnp.float32),
        window_strides=(1, 1), padding="VALID",
        dimension_numbers=("NHWC", "HWIO", "NHWC"),
        precision=jax.lax.Precision.HIGHEST)
    return np.asarray(y)


def _pack_banded(w_hwio, w_in, pad_left, pad_right):
    """Fold KW, Cin and the W-direction replication pad into banded matrices:
       W_i[s*Cin + c, w*Cout + o] = sum_{j : clamp(w+j-pad_left) == s} w[i,j,c,o]."""
    kh, kw, cin, cout = w_hwio.shape
    wo = w_in + pad_left + pad_right - kw + 1
    cols = np.arange(wo)
    out = np.zeros((kh, w_in * cin, wo * cout), np.float32)
    for i in range(kh):
        for j in range(kw):
            src = np.clip(cols + j - pad_left, 0, w_in - 1)
            shift = np.zeros((w_in, wo), np.float32)
            shift[src, cols] = 1.0
            out[i] += np.kron(shift, w_hwio[i, j])
    return out


def prepare_fnet(params, in_h, in_w):
    """Fold coords + W-pad + bias into packed bf16 banded weights / f32 bias
    maps / bf16 upsample matrices (one-time, outside jit)."""
    prep = {"body": []}
    h, w = in_h, in_w
    for (wc, b) in params["convs"]:                    # body: 4x4, pad (1,2,1,2)
        kh, kw, cin_tot, cout = wc.shape
        cin = cin_tot - 2                              # last 2 in-channels = (cx, cy)
        hp, wp = h + 3, w + 3
        ho, wo = hp - kh + 1, wp - kw + 1              # == h, w
        w_np = np.asarray(wc, np.float32)
        b_np = np.asarray(b, np.float32)
        # Body layers: coords are built on the PADDED shape and not padded again.
        cmap = _conv_valid_np(_coord_image(hp, wp), w_np[:, :, cin:, :])[0] + b_np
        prep["body"].append({
            "w": jnp.asarray(_pack_banded(w_np[:, :, :cin, :], w, 1, 2),
                             jnp.bfloat16),
            "bmap": jnp.asarray(cmap.reshape(ho, wo * cout), jnp.float32),
            "uph": jnp.asarray(_upsample_matrix(ho), jnp.bfloat16),
            "upw": jnp.asarray(np.kron(_upsample_matrix(wo).T,
                                       np.eye(cout, dtype=np.float32)),
                               jnp.bfloat16),
        })
        h, w = 2 * ho, 2 * wo
    for name in ("final1", "final2"):                  # heads: 3x3, pad (1,1,1,1)
        wc, b = params[name]
        kh, kw, cin_tot, cout = wc.shape
        cin = cin_tot - 2
        w_np = np.asarray(wc, np.float32)
        b_np = np.asarray(b, np.float32)
        # Final layers: coords on the UNPADDED shape, replication-padded with x.
        coords = np.pad(_coord_image(h, w), ((0, 0), (1, 1), (1, 1), (0, 0)),
                        mode="edge")
        ho, wo = h, w                                  # 'same' conv by construction
        cmap = _conv_valid_np(coords, w_np[:, :, cin:, :])[0] + b_np
        prep[name] = {
            "w": jnp.asarray(_pack_banded(w_np[:, :, :cin, :], w, 1, 1),
                             jnp.bfloat16),
            "bmap": jnp.asarray(cmap.reshape(ho, wo * cout), jnp.float32),
        }
        h, w = ho, wo
    return prep


# ----------------------------------------------------------------------------
# Plain-JAX f32 reference (uses the unfolded params) for numerical validation
# ----------------------------------------------------------------------------
def replication_pad(x, left, right, top, bottom):
    return jnp.pad(x, ((0, 0), (top, bottom), (left, right), (0, 0)), mode="edge")


def make_coords(n, h, w, dtype=jnp.float32):
    a = jnp.linspace(-1.0, 1.0, h, dtype=dtype)
    b = jnp.linspace(-1.0, 1.0, w, dtype=dtype)
    cx = jnp.broadcast_to(a[None, :, None, None], (n, h, w, 1))
    cy = jnp.broadcast_to(b[None, None, :, None], (n, h, w, 1))
    return cx, cy


def _conv2d_valid_ref(x, w, b):
    y = jax.lax.conv_general_dilated(
        x, w, window_strides=(1, 1), padding="VALID",
        dimension_numbers=("NHWC", "HWIO", "NHWC"),
        precision=jax.lax.Precision.HIGHEST)
    return y + b


def _upsample_bilinear_2x_ref(x):
    N, H, W, C = x.shape

    def src_idx(size):
        out = jnp.arange(2 * size, dtype=jnp.float32)
        src = jnp.clip((out + 0.5) / 2.0 - 0.5, 0.0, float(size - 1))
        i0 = jnp.floor(src).astype(jnp.int32)
        i1 = jnp.minimum(i0 + 1, size - 1)
        return i0, i1, src - i0.astype(jnp.float32)

    r0, r1, fr = src_idx(H)
    c0, c1, fc = src_idx(W)
    rows = (x[:, r0] * (1.0 - fr)[None, :, None, None]
            + x[:, r1] * fr[None, :, None, None])
    return (rows[:, :, c0] * (1.0 - fc)[None, None, :, None]
            + rows[:, :, c1] * fc[None, None, :, None])


def fnet_forward_ref(params, x_nchw):
    x = jnp.transpose(x_nchw, (0, 2, 3, 1)).astype(jnp.float32)
    for (w, b) in params["convs"]:
        x = replication_pad(x, 1, 2, 1, 2)
        n, h, wd, _ = x.shape
        cx, cy = make_coords(n, h, wd)
        x = jnp.concatenate([x, cx, cy], axis=-1)
        x = _conv2d_valid_ref(x, w, b)
        x = jnp.tanh(_upsample_bilinear_2x_ref(x))
    n, h, wd, _ = x.shape
    cx, cy = make_coords(n, h, wd)
    x = jnp.concatenate([x, cx, cy], axis=-1)
    x = replication_pad(x, 1, 1, 1, 1)
    w1, b1 = params["final1"]
    x = _conv2d_valid_ref(x, w1, b1)
    x = jnp.where(x >= 0, x, 0.1 * x)
    n, h, wd, _ = x.shape
    cx, cy = make_coords(n, h, wd)
    x = jnp.concatenate([x, cx, cy], axis=-1)
    x = replication_pad(x, 1, 1, 1, 1)
    w2, b2 = params["final2"]
    x = jnp.exp(_conv2d_valid_ref(x, w2, b2) - 2.0)
    return jnp.transpose(x, (0, 3, 1, 2))


if __name__ == "__main__":
    key = jax.random.PRNGKey(0)
    k_param, k_x = jax.random.split(key)

    feats = [4, 6, 8]                         # feats[0] = input channels
    params = init_fnet_params(k_param, feats)

    H = W = 16
    x = jax.random.normal(k_x, (2, feats[0], H, W), dtype=jnp.float32)

    prep = prepare_fnet(params, H, W)         # one-time fold/pack to bf16

    out = jax.jit(fnet_forward)(prep, x)
    out = jax.block_until_ready(out)

    # Two conv+upsample stages: 16 -> 32 -> 64; final heads keep 64x64, 1 ch.
    assert out.shape == (2, 1, 4 * H, 4 * W), out.shape
    assert bool(jnp.all(jnp.isfinite(out)))
    assert bool(jnp.all(out > 0.0))           # exp(x - 2) is strictly positive

    # Validate the fused bf16 Pallas path against a plain-JAX f32 reference.
    ref = jax.block_until_ready(jax.jit(fnet_forward_ref)(params, x))
    max_err = float(jnp.max(jnp.abs(out - ref)))
    assert bool(jnp.allclose(out, ref, rtol=0.1, atol=1e-2)), max_err

    print("KERNEL_OK")
</pallas_src>

<mosaic_0001>
module attributes {stable_mosaic.version = 11 : i64} {
  func.func @_fnet_kernel(%arg0: i32, %arg1: memref<1x16x64xf32, #tpu.memory_space<vmem>>, %arg2: memref<4x64x96xbf16, #tpu.memory_space<vmem>>, %arg3: memref<16x96xf32, #tpu.memory_space<vmem>>, %arg4: memref<32x16xbf16, #tpu.memory_space<vmem>>, %arg5: memref<96x192xbf16, #tpu.memory_space<vmem>>, %arg6: memref<4x192x256xbf16, #tpu.memory_space<vmem>>, %arg7: memref<32x256xf32, #tpu.memory_space<vmem>>, %arg8: memref<64x32xbf16, #tpu.memory_space<vmem>>, %arg9: memref<256x512xbf16, #tpu.memory_space<vmem>>, %arg10: memref<3x512x256xbf16, #tpu.memory_space<vmem>>, %arg11: memref<64x256xf32, #tpu.memory_space<vmem>>, %arg12: memref<3x256x64xbf16, #tpu.memory_space<vmem>>, %arg13: memref<64x64xf32, #tpu.memory_space<vmem>>, %arg14: memref<1x64x64xf32, #tpu.memory_space<vmem>>, %arg15: memref<19x64xf32, #tpu.memory_space<vmem>>, %arg16: memref<35x192xf32, #tpu.memory_space<vmem>>, %arg17: memref<66x512xf32, #tpu.memory_space<vmem>>, %arg18: memref<66x256xf32, #tpu.memory_space<vmem>>) attributes {dimension_semantics = [#tpu.dimension_semantics<parallel>], iteration_bounds = array<i64: 2>, scalar_prefetch = 0 : i64, scratch_operands = 4 : i64, tpu.core_type = #tpu.core_type<tc>, window_params = [{transform_indices = @transform_0, window_bounds = array<i64: 1, 16, 64>}, {pipeline_mode = #tpu.pipeline_mode<synchronous>, transform_indices = @transform_1, window_bounds = array<i64: 4, 64, 96>}, {pipeline_mode = #tpu.pipeline_mode<synchronous>, transform_indices = @transform_2, window_bounds = array<i64: 16, 96>}, {pipeline_mode = #tpu.pipeline_mode<synchronous>, transform_indices = @transform_3, window_bounds = array<i64: 32, 16>}, {pipeline_mode = #tpu.pipeline_mode<synchronous>, transform_indices = @transform_4, window_bounds = array<i64: 96, 192>}, {pipeline_mode = #tpu.pipeline_mode<synchronous>, transform_indices = @transform_5, window_bounds = array<i64: 4, 192, 256>}, {pipeline_mode = #tpu.pipeline_mode<synchronous>, transform_indices = @transform_6, window_bounds = array<i64: 32, 256>}, {pipeline_mode = #tpu.pipeline_mode<synchronous>, transform_indices = @transform_7, window_bounds = array<i64: 64, 32>}, {pipeline_mode = #tpu.pipeline_mode<synchronous>, transform_indices = @transform_8, window_bounds = array<i64: 256, 512>}, {pipeline_mode = #tpu.pipeline_mode<synchronous>, transform_indices = @transform_9, window_bounds = array<i64: 3, 512, 256>}, {pipeline_mode = #tpu.pipeline_mode<synchronous>, transform_indices = @transform_10, window_bounds = array<i64: 64, 256>}, {pipeline_mode = #tpu.pipeline_mode<synchronous>, transform_indices = @transform_11, window_bounds = array<i64: 3, 256, 64>}, {pipeline_mode = #tpu.pipeline_mode<synchronous>, transform_indices = @transform_12, window_bounds = array<i64: 64, 64>}, {transform_indices = @transform_13, window_bounds = array<i64: 1, 64, 64>}]} {
    %c0 = arith.constant 0 : index
    %c0_0 = arith.constant 0 : index
    %c0_1 = arith.constant 0 : index
    %0 = vector.load %arg1[%c0, %c0_0, %c0_1] : memref<1x16x64xf32, #tpu.memory_space<vmem>>, vector<1x16x64xf32>
    %1 = vector.shape_cast %0 : vector<1x16x64xf32> to vector<16x64xf32>
    %c1 = arith.constant 1 : index
    %c0_2 = arith.constant 0 : index
    %2 = vector.load %arg15[%c1, %c0_2] : memref<19x64xf32, #tpu.memory_space<vmem>>, vector<16x64xf32>
    tpu.vector_store %arg15[%c1, %c0_2], %1 {strides = array<i32>} : memref<19x64xf32, #tpu.memory_space<vmem>>, vector<16x64xf32>,
    %3 = vector.extract_strided_slice %1 {offsets = [0, 0], sizes = [1, 64], strides = [1, 1]} : vector<16x64xf32> to vector<1x64xf32>
    %c0_3 = arith.constant 0 : index
    %c0_4 = arith.constant 0 : index
    %4 = vector.load %arg15[%c0_3, %c0_4] : memref<19x64xf32, #tpu.memory_space<vmem>>, vector<1x64xf32>
    tpu.vector_store %arg15[%c0_3, %c0_4], %3 {strides = array<i32>} : memref<19x64xf32, #tpu.memory_space<vmem>>, vector<1x64xf32>,
    %5 = vector.extract_strided_slice %1 {offsets = [15, 0], sizes = [1, 64], strides = [1, 1]} : vector<16x64xf32> to vector<1x64xf32>
    %c17 = arith.constant 17 : index
    %c0_5 = arith.constant 0 : index
    %6 = vector.load %arg15[%c17, %c0_5] : memref<19x64xf32, #tpu.memory_space<vmem>>, vector<1x64xf32>
    tpu.vector_store %arg15[%c17, %c0_5], %5 {strides = array<i32>} : memref<19x64xf32, #tpu.memory_space<vmem>>, vector<1x64xf32>,
    %7 = vector.extract_strided_slice %1 {offsets = [15, 0], sizes = [1, 64], strides = [1, 1]} : vector<16x64xf32> to vector<1x64xf32>
    %c18 = arith.constant 18 : index
    %c0_6 = arith.constant 0 : index
    %8 = vector.load %arg15[%c18, %c0_6] : memref<19x64xf32, #tpu.memory_space<vmem>>, vector<1x64xf32>
    tpu.vector_store %arg15[%c18, %c0_6], %7 {strides = array<i32>} : memref<19x64xf32, #tpu.memory_space<vmem>>, vector<1x64xf32>,
    %c0_7 = arith.constant 0 : index
    %c0_8 = arith.constant 0 : index
    %9 = vector.load %arg3[%c0_7, %c0_8] : memref<16x96xf32, #tpu.memory_space<vmem>>, vector<16x96xf32>
    %c0_9 = arith.constant 0 : index
    %c0_10 = arith.constant 0 : index
    %10 = vector.load %arg15[%c0_9, %c0_10] : memref<19x64xf32, #tpu.memory_space<vmem>>, vector<16x64xf32>
    %11 = arith.truncf %10 : vector<16x64xf32> to vector<16x64xbf16>
    %c0_11 = arith.constant 0 : index
    %c0_12 = arith.constant 0 : index
    %c0_13 = arith.constant 0 : index
    %12 = vector.load %arg2[%c0_11, %c0_12, %c0_13] : memref<4x64x96xbf16, #tpu.memory_space<vmem>>, vector<1x64x96xbf16>
    %13 = vector.shape_cast %12 : vector<1x64x96xbf16> to vector<64x96xbf16>
    %cst = arith.constant dense<0.000000e+00> : vector<16x96xf32>
    %14 = tpu.matmul %11, %13, %cst {dimension_numbers = #tpu.dot_dimension_numbers<[1], [0], [0], [1], [0, 0, 1, 1], [], []>} : vector<16x64xbf16>, vector<64x96xbf16>, vector<16x96xf32> -> vector<16x96xf32>
    %15 = arith.addf %9, %14 : vector<16x96xf32>
    %c1_14 = arith.constant 1 : index
    %c0_15 = arith.constant 0 : index
    %16 = vector.load %arg15[%c1_14, %c0_15] : memref<19x64xf32, #tpu.memory_space<vmem>>, vector<16x64xf32>
    %17 = arith.truncf %16 : vector<16x64xf32> to vector<16x64xbf16>
    %c1_16 = arith.constant 1 : index
    %c0_17 = arith.constant 0 : index
    %c0_18 = arith.constant 0 : index
    %18 = vector.load %arg2[%c1_16, %c0_17, %c0_18] : memref<4x64x96xbf16, #tpu.memory_space<vmem>>, vector<1x64x96xbf16>
    %19 = vector.shape_cast %18 : vector<1x64x96xbf16> to vector<64x96xbf16>
    %cst_19 = arith.constant dense<0.000000e+00> : vector<16x96xf32>
    %20 = tpu.matmul %17, %19, %cst_19 {dimension_numbers = #tpu.dot_dimension_numbers<[1], [0], [0], [1], [0, 0, 1, 1], [], []>} : vector<16x64xbf16>, vector<64x96xbf16>, vector<16x96xf32> -> vector<16x96xf32>
    %21 = arith.addf %15, %20 : vector<16x96xf32>
    %c2 = arith.constant 2 : index
    %c0_20 = arith.constant 0 : index
    %22 = vector.load %arg15[%c2, %c0_20] : memref<19x64xf32, #tpu.memory_space<vmem>>, vector<16x64xf32>
    %23 = arith.truncf %22 : vector<16x64xf32> to vector<16x64xbf16>
    %c2_21 = arith.constant 2 : index
    %c0_22 = arith.constant 0 : index
    %c0_23 = arith.constant 0 : index
    %24 = vector.load %arg2[%c2_21, %c0_22, %c0_23] : memref<4x64x96xbf16, #tpu.memory_space<vmem>>, vector<1x64x96xbf16>
    %25 = vector.shape_cast %24 : vector<1x64x96xbf16> to vector<64x96xbf16>
    %cst_24 = arith.constant dense<0.000000e+00> : vector<16x96xf32>
    %26 = tpu.matmul %23, %25, %cst_24 {dimension_numbers = #tpu.dot_dimension_numbers<[1], [0], [0], [1], [0, 0, 1, 1], [], []>} : vector<16x64xbf16>, vector<64x96xbf16>, vector<16x96xf32> -> vector<16x96xf32>
    %27 = arith.addf %21, %26 : vector<16x96xf32>
    %c3 = arith.constant 3 : index
    %c0_25 = arith.constant 0 : index
    %28 = vector.load %arg15[%c3, %c0_25] : memref<19x64xf32, #tpu.memory_space<vmem>>, vector<16x64xf32>
    %29 = arith.truncf %28 : vector<16x64xf32> to vector<16x64xbf16>
    %c3_26 = arith.constant 3 : index
    %c0_27 = arith.constant 0 : index
    %c0_28 = arith.constant 0 : index
    %30 = vector.load %arg2[%c3_26, %c0_27, %c0_28] : memref<4x64x96xbf16, #tpu.memory_space<vmem>>, vector<1x64x96xbf16>
    %31 = vector.shape_cast %30 : vector<1x64x96xbf16> to vector<64x96xbf16>
    %cst_29 = arith.constant dense<0.000000e+00> : vector<16x96xf32>
    %32 = tpu.matmul %29, %31, %cst_29 {dimension_numbers = #tpu.dot_dimension_numbers<[1], [0], [0], [1], [0, 0, 1, 1], [], []>} : vector<16x64xbf16>, vector<64x96xbf16>, vector<16x96xf32> -> vector<16x96xf32>
    %33 = arith.addf %27, %32 : vector<16x96xf32>
    %34 = arith.truncf %33 : vector<16x96xf32> to vector<16x96xbf16>
    %c0_30 = arith.constant 0 : index
    %c0_31 = arith.constant 0 : index
    %35 = vector.load %arg5[%c0_30, %c0_31] : memref<96x192xbf16, #tpu.memory_space<vmem>>, vector<96x192xbf16>
    %cst_32 = arith.constant dense<0.000000e+00> : vector<16x192xf32>
    %36 = tpu.matmul %34, %35, %cst_32 {dimension_numbers = #tpu.dot_dimension_numbers<[1], [0], [0], [1], [0, 0, 1, 1], [], []>} : vector<16x96xbf16>, vector<96x192xbf16>, vector<16x192xf32> -> vector<16x192xf32>
    %c0_33 = arith.constant 0 : index
    %c0_34 = arith.constant 0 : index
    %37 = vector.load %arg4[%c0_33, %c0_34] : memref<32x16xbf16, #tpu.memory_space<vmem>>, vector<32x16xbf16>
    %38 = arith.truncf %36 : vector<16x192xf32> to vector<16x192xbf16>
    %cst_35 = arith.constant dense<0.000000e+00> : vector<32x192xf32>
    %39 = tpu.matmul %37, %38, %cst_35 {dimension_numbers = #tpu.dot_dimension_numbers<[1], [0], [0], [1], [0, 0, 1, 1], [], []>} : vector<32x16xbf16>, vector<16x192xbf16>, vector<32x192xf32> -> vector<32x192xf32>
    %40 = math.tanh %39 : vector<32x192xf32>
    %c1_36 = arith.constant 1 : index
    %c0_37 = arith.constant 0 : index
    %41 = vector.load %arg16[%c1_36, %c0_37] : memref<35x192xf32, #tpu.memory_space<vmem>>, vector<32x192xf32>
    tpu.vector_store %arg16[%c1_36, %c0_37], %40 {strides = array<i32>} : memref<35x192xf32, #tpu.memory_space<vmem>>, vector<32x192xf32>,
    %42 = vector.extract_strided_slice %40 {offsets = [0, 0], sizes = [1, 192], strides = [1, 1]} : vector<32x192xf32> to vector<1x192xf32>
    %c0_38 = arith.constant 0 : index
    %c0_39 = arith.constant 0 : index
    %43 = vector.load %arg16[%c0_38, %c0_39] : memref<35x192xf32, #tpu.memory_space<vmem>>, vector<1x192xf32>
    tpu.vector_store %arg16[%c0_38, %c0_39], %42 {strides = array<i32>} : memref<35x192xf32, #tpu.memory_space<vmem>>, vector<1x192xf32>,
    %44 = vector.extract_strided_slice %40 {offsets = [31, 0], sizes = [1, 192], strides = [1, 1]} : vector<32x192xf32> to vector<1x192xf32>
    %c33 = arith.constant 33 : index
    %c0_40 = arith.constant 0 : index
    %45 = vector.load %arg16[%c33, %c0_40] : memref<35x192xf32, #tpu.memory_space<vmem>>, vector<1x192xf32>
    tpu.vector_store %arg16[%c33, %c0_40], %44 {strides = array<i32>} : memref<35x192xf32, #tpu.memory_space<vmem>>, vector<1x192xf32>,
    %46 = vector.extract_strided_slice %40 {offsets = [31, 0], sizes = [1, 192], strides = [1, 1]} : vector<32x192xf32> to vector<1x192xf32>
    %c34 = arith.constant 34 : index
    %c0_41 = arith.constant 0 : index
    %47 = vector.load %arg16[%c34, %c0_41] : memref<35x192xf32, #tpu.memory_space<vmem>>, vector<1x192xf32>
    tpu.vector_store %arg16[%c34, %c0_41], %46 {strides = array<i32>} : memref<35x192xf32, #tpu.memory_space<vmem>>, vector<1x192xf32>,
    %c0_42 = arith.constant 0 : index
    %c0_43 = arith.constant 0 : index
    %48 = vector.load %arg7[%c0_42, %c0_43] : memref<32x256xf32, #tpu.memory_space<vmem>>, vector<32x256xf32>
    %c0_44 = arith.constant 0 : index
    %c0_45 = arith.constant 0 : index
    %49 = vector.load %arg16[%c0_44, %c0_45] : memref<35x192xf32, #tpu.memory_space<vmem>>, vector<32x192xf32>
    %50 = arith.truncf %49 : vector<32x192xf32> to vector<32x192xbf16>
    %c0_46 = arith.constant 0 : index
    %c0_47 = arith.constant 0 : index
    %c0_48 = arith.constant 0 : index
    %51 = vector.load %arg6[%c0_46, %c0_47, %c0_48] : memref<4x192x256xbf16, #tpu.memory_space<vmem>>, vector<1x192x256xbf16>
    %52 = vector.shape_cast %51 : vector<1x192x256xbf16> to vector<192x256xbf16>
    %cst_49 = arith.constant dense<0.000000e+00> : vector<32x256xf32>
    %53 = tpu.matmul %50, %52, %cst_49 {dimension_numbers = #tpu.dot_dimension_numbers<[1], [0], [0], [1], [0, 0, 1, 1], [], []>} : vector<32x192xbf16>, vector<192x256xbf16>, vector<32x256xf32> -> vector<32x256xf32>
    %54 = arith.addf %48, %53 : vector<32x256xf32>
    %c1_50 = arith.constant 1 : index
    %c0_51 = arith.constant 0 : index
    %55 = vector.load %arg16[%c1_50, %c0_51] : memref<35x192xf32, #tpu.memory_space<vmem>>, vector<32x192xf32>
    %56 = arith.truncf %55 : vector<32x192xf32> to vector<32x192xbf16>
    %c1_52 = arith.constant 1 : index
    %c0_53 = arith.constant 0 : index
    %c0_54 = arith.constant 0 : index
    %57 = vector.load %arg6[%c1_52, %c0_53, %c0_54] : memref<4x192x256xbf16, #tpu.memory_space<vmem>>, vector<1x192x256xbf16>
    %58 = vector.shape_cast %57 : vector<1x192x256xbf16> to vector<192x256xbf16>
    %cst_55 = arith.constant dense<0.000000e+00> : vector<32x256xf32>
    %59 = tpu.matmul %56, %58, %cst_55 {dimension_numbers = #tpu.dot_dimension_numbers<[1], [0], [0], [1], [0, 0, 1, 1], [], []>} : vector<32x192xbf16>, vector<192x256xbf16>, vector<32x256xf32> -> vector<32x256xf32>
    %60 = arith.addf %54, %59 : vector<32x256xf32>
    %c2_56 = arith.constant 2 : index
    %c0_57 = arith.constant 0 : index
    %61 = vector.load %arg16[%c2_56, %c0_57] : memref<35x192xf32, #tpu.memory_space<vmem>>, vector<32x192xf32>
    %62 = arith.truncf %61 : vector<32x192xf32> to vector<32x192xbf16>
    %c2_58 = arith.constant 2 : index
    %c0_59 = arith.constant 0 : index
    %c0_60 = arith.constant 0 : index
    %63 = vector.load %arg6[%c2_58, %c0_59, %c0_60] : memref<4x192x256xbf16, #tpu.memory_space<vmem>>, vector<1x192x256xbf16>
    %64 = vector.shape_cast %63 : vector<1x192x256xbf16> to vector<192x256xbf16>
    %cst_61 = arith.constant dense<0.000000e+00> : vector<32x256xf32>
    %65 = tpu.matmul %62, %64, %cst_61 {dimension_numbers = #tpu.dot_dimension_numbers<[1], [0], [0], [1], [0, 0, 1, 1], [], []>} : vector<32x192xbf16>, vector<192x256xbf16>, vector<32x256xf32> -> vector<32x256xf32>
    %66 = arith.addf %60, %65 : vector<32x256xf32>
    %c3_62 = arith.constant 3 : index
    %c0_63 = arith.constant 0 : index
    %67 = vector.load %arg16[%c3_62, %c0_63] : memref<35x192xf32, #tpu.memory_space<vmem>>, vector<32x192xf32>
    %68 = arith.truncf %67 : vector<32x192xf32> to vector<32x192xbf16>
    %c3_64 = arith.constant 3 : index
    %c0_65 = arith.constant 0 : index
    %c0_66 = arith.constant 0 : index
    %69 = vector.load %arg6[%c3_64, %c0_65, %c0_66] : memref<4x192x256xbf16, #tpu.memory_space<vmem>>, vector<1x192x256xbf16>
    %70 = vector.shape_cast %69 : vector<1x192x256xbf16> to vector<192x256xbf16>
    %cst_67 = arith.constant dense<0.000000e+00> : vector<32x256xf32>
    %71 = tpu.matmul %68, %70, %cst_67 {dimension_numbers = #tpu.dot_dimension_numbers<[1], [0], [0], [1], [0, 0, 1, 1], [], []>} : vector<32x192xbf16>, vector<192x256xbf16>, vector<32x256xf32> -> vector<32x256xf32>
    %72 = arith.addf %66, %71 : vector<32x256xf32>
    %73 = arith.truncf %72 : vector<32x256xf32> to vector<32x256xbf16>
    %c0_68 = arith.constant 0 : index
    %c0_69 = arith.constant 0 : index
    %74 = vector.load %arg9[%c0_68, %c0_69] : memref<256x512xbf16, #tpu.memory_space<vmem>>, vector<256x512xbf16>
    %cst_70 = arith.constant dense<0.000000e+00> : vector<32x512xf32>
    %75 = tpu.matmul %73, %74, %cst_70 {dimension_numbers = #tpu.dot_dimension_numbers<[1], [0], [0], [1], [0, 0, 1, 1], [], []>} : vector<32x256xbf16>, vector<256x512xbf16>, vector<32x512xf32> -> vector<32x512xf32>
    %c0_71 = arith.constant 0 : index
    %c0_72 = arith.constant 0 : index
    %76 = vector.load %arg8[%c0_71, %c0_72] : memref<64x32xbf16, #tpu.memory_space<vmem>>, vector<64x32xbf16>
    %77 = arith.truncf %75 : vector<32x512xf32> to vector<32x512xbf16>
    %cst_73 = arith.constant dense<0.000000e+00> : vector<64x512xf32>
    %78 = tpu.matmul %76, %77, %cst_73 {dimension_numbers = #tpu.dot_dimension_numbers<[1], [0], [0], [1], [0, 0, 1, 1], [], []>} : vector<64x32xbf16>, vector<32x512xbf16>, vector<64x512xf32> -> vector<64x512xf32>
    %79 = math.tanh %78 : vector<64x512xf32>
    %c1_74 = arith.constant 1 : index
    %c0_75 = arith.constant 0 : index
    %80 = vector.load %arg17[%c1_74, %c0_75] : memref<66x512xf32, #tpu.memory_space<vmem>>, vector<64x512xf32>
    tpu.vector_store %arg17[%c1_74, %c0_75], %79 {strides = array<i32>} : memref<66x512xf32, #tpu.memory_space<vmem>>, vector<64x512xf32>,
    %81 = vector.extract_strided_slice %79 {offsets = [0, 0], sizes = [1, 512], strides = [1, 1]} : vector<64x512xf32> to vector<1x512xf32>
    %c0_76 = arith.constant 0 : index
    %c0_77 = arith.constant 0 : index
    %82 = vector.load %arg17[%c0_76, %c0_77] : memref<66x512xf32, #tpu.memory_space<vmem>>, vector<1x512xf32>
    tpu.vector_store %arg17[%c0_76, %c0_77], %81 {strides = array<i32>} : memref<66x512xf32, #tpu.memory_space<vmem>>, vector<1x512xf32>,
    %83 = vector.extract_strided_slice %79 {offsets = [63, 0], sizes = [1, 512], strides = [1, 1]} : vector<64x512xf32> to vector<1x512xf32>
    %c65 = arith.constant 65 : index
    %c0_78 = arith.constant 0 : index
    %84 = vector.load %arg17[%c65, %c0_78] : memref<66x512xf32, #tpu.memory_space<vmem>>, vector<1x512xf32>
    tpu.vector_store %arg17[%c65, %c0_78], %83 {strides = array<i32>} : memref<66x512xf32, #tpu.memory_space<vmem>>, vector<1x512xf32>,
    %c0_79 = arith.constant 0 : index
    %c0_80 = arith.constant 0 : index
    %85 = vector.load %arg11[%c0_79, %c0_80] : memref<64x256xf32, #tpu.memory_space<vmem>>, vector<64x256xf32>
    %c0_81 = arith.constant 0 : index
    %c0_82 = arith.constant 0 : index
    %86 = vector.load %arg17[%c0_81, %c0_82] : memref<66x512xf32, #tpu.memory_space<vmem>>, vector<64x512xf32>
    %87 = arith.truncf %86 : vector<64x512xf32> to vector<64x512xbf16>
    %c0_83 = arith.constant 0 : index
    %c0_84 = arith.constant 0 : index
    %c0_85 = arith.constant 0 : index
    %88 = vector.load %arg10[%c0_83, %c0_84, %c0_85] : memref<3x512x256xbf16, #tpu.memory_space<vmem>>, vector<1x512x256xbf16>
    %89 = vector.shape_cast %88 : vector<1x512x256xbf16> to vector<512x256xbf16>
    %cst_86 = arith.constant dense<0.000000e+00> : vector<64x256xf32>
    %90 = tpu.matmul %87, %89, %cst_86 {dimension_numbers = #tpu.dot_dimension_numbers<[1], [0], [0], [1], [0, 0, 1, 1], [], []>} : vector<64x512xbf16>, vector<512x256xbf16>, vector<64x256xf32> -> vector<64x256xf32>
    %91 = arith.addf %85, %90 : vector<64x256xf32>
    %c1_87 = arith.constant 1 : index
    %c0_88 = arith.constant 0 : index
    %92 = vector.load %arg17[%c1_87, %c0_88] : memref<66x512xf32, #tpu.memory_space<vmem>>, vector<64x512xf32>
    %93 = arith.truncf %92 : vector<64x512xf32> to vector<64x512xbf16>
    %c1_89 = arith.constant 1 : index
    %c0_90 = arith.constant 0 : index
    %c0_91 = arith.constant 0 : index
    %94 = vector.load %arg10[%c1_89, %c0_90, %c0_91] : memref<3x512x256xbf16, #tpu.memory_space<vmem>>, vector<1x512x256xbf16>
    %95 = vector.shape_cast %94 : vector<1x512x256xbf16> to vector<512x256xbf16>
    %cst_92 = arith.constant dense<0.000000e+00> : vector<64x256xf32>
    %96 = tpu.matmul %93, %95, %cst_92 {dimension_numbers = #tpu.dot_dimension_numbers<[1], [0], [0], [1], [0, 0, 1, 1], [], []>} : vector<64x512xbf16>, vector<512x256xbf16>, vector<64x256xf32> -> vector<64x256xf32>
    %97 = arith.addf %91, %96 : vector<64x256xf32>
    %c2_93 = arith.constant 2 : index
    %c0_94 = arith.constant 0 : index
    %98 = vector.load %arg17[%c2_93, %c0_94] : memref<66x512xf32, #tpu.memory_space<vmem>>, vector<64x512xf32>
    %99 = arith.truncf %98 : vector<64x512xf32> to vector<64x512xbf16>
    %c2_95 = arith.constant 2 : index
    %c0_96 = arith.constant 0 : index
    %c0_97 = arith.constant 0 : index
    %100 = vector.load %arg10[%c2_95, %c0_96, %c0_97] : memref<3x512x256xbf16, #tpu.memory_space<vmem>>, vector<1x512x256xbf16>
    %101 = vector.shape_cast %100 : vector<1x512x256xbf16> to vector<512x256xbf16>
    %cst_98 = arith.constant dense<0.000000e+00> : vector<64x256xf32>
    %102 = tpu.matmul %99, %101, %cst_98 {dimension_numbers = #tpu.dot_dimension_numbers<[1], [0], [0], [1], [0, 0, 1, 1], [], []>} : vector<64x512xbf16>, vector<512x256xbf16>, vector<64x256xf32> -> vector<64x256xf32>
    %103 = arith.addf %97, %102 : vector<64x256xf32>
    %cst_99 = arith.constant 0.000000e+00 : f32
    %104 = vector.broadcast %cst_99 : f32 to vector<64x256xf32>
    %105 = arith.cmpf oge, %103, %104 : vector<64x256xf32>
    %cst_100 = arith.constant 1.000000e-01 : f32
    %106 = vector.broadcast %cst_100 : f32 to vector<64x256xf32>
    %107 = arith.mulf %106, %103 : vector<64x256xf32>
    %108 = arith.select %105, %103, %107 : vector<64x256xi1>, vector<64x256xf32>
    %c1_101 = arith.constant 1 : index
    %c0_102 = arith.constant 0 : index
    %109 = vector.load %arg18[%c1_101, %c0_102] : memref<66x256xf32, #tpu.memory_space<vmem>>, vector<64x256xf32>
    tpu.vector_store %arg18[%c1_101, %c0_102], %108 {strides = array<i32>} : memref<66x256xf32, #tpu.memory_space<vmem>>, vector<64x256xf32>,
    %110 = vector.extract_strided_slice %108 {offsets = [0, 0], sizes = [1, 256], strides = [1, 1]} : vector<64x256xf32> to vector<1x256xf32>
    %c0_103 = arith.constant 0 : index
    %c0_104 = arith.constant 0 : index
    %111 = vector.load %arg18[%c0_103, %c0_104] : memref<66x256xf32, #tpu.memory_space<vmem>>, vector<1x256xf32>
    tpu.vector_store %arg18[%c0_103, %c0_104], %110 {strides = array<i32>} : memref<66x256xf32, #tpu.memory_space<vmem>>, vector<1x256xf32>,
    %112 = vector.extract_strided_slice %108 {offsets = [63, 0], sizes = [1, 256], strides = [1, 1]} : vector<64x256xf32> to vector<1x256xf32>
    %c65_105 = arith.constant 65 : index
    %c0_106 = arith.constant 0 : index
    %113 = vector.load %arg18[%c65_105, %c0_106] : memref<66x256xf32, #tpu.memory_space<vmem>>, vector<1x256xf32>
    tpu.vector_store %arg18[%c65_105, %c0_106], %112 {strides = array<i32>} : memref<66x256xf32, #tpu.memory_space<vmem>>, vector<1x256xf32>,
    %c0_107 = arith.constant 0 : index
    %c0_108 = arith.constant 0 : index
    %114 = vector.load %arg13[%c0_107, %c0_108] : memref<64x64xf32, #tpu.memory_space<vmem>>, vector<64x64xf32>
    %c0_109 = arith.constant 0 : index
    %c0_110 = arith.constant 0 : index
    %115 = vector.load %arg18[%c0_109, %c0_110] : memref<66x256xf32, #tpu.memory_space<vmem>>, vector<64x256xf32>
    %116 = arith.truncf %115 : vector<64x256xf32> to vector<64x256xbf16>
    %c0_111 = arith.constant 0 : index
    %c0_112 = arith.constant 0 : index
    %c0_113 = arith.constant 0 : index
    %117 = vector.load %arg12[%c0_111, %c0_112, %c0_113] : memref<3x256x64xbf16, #tpu.memory_space<vmem>>, vector<1x256x64xbf16>
    %118 = vector.shape_cast %117 : vector<1x256x64xbf16> to vector<256x64xbf16>
    %cst_114 = arith.constant dense<0.000000e+00> : vector<64x64xf32>
    %119 = tpu.matmul %116, %118, %cst_114 {dimension_numbers = #tpu.dot_dimension_numbers<[1], [0], [0], [1], [0, 0, 1, 1], [], []>} : vector<64x256xbf16>, vector<256x64xbf16>, vector<64x64xf32> -> vector<64x64xf32>
    %120 = arith.addf %114, %119 : vector<64x64xf32>
    %c1_115 = arith.constant 1 : index
    %c0_116 = arith.constant 0 : index
    %121 = vector.load %arg18[%c1_115, %c0_116] : memref<66x256xf32, #tpu.memory_space<vmem>>, vector<64x256xf32>
    %122 = arith.truncf %121 : vector<64x256xf32> to vector<64x256xbf16>
    %c1_117 = arith.constant 1 : index
    %c0_118 = arith.constant 0 : index
    %c0_119 = arith.constant 0 : index
    %123 = vector.load %arg12[%c1_117, %c0_118, %c0_119] : memref<3x256x64xbf16, #tpu.memory_space<vmem>>, vector<1x256x64xbf16>
    %124 = vector.shape_cast %123 : vector<1x256x64xbf16> to vector<256x64xbf16>
    %cst_120 = arith.constant dense<0.000000e+00> : vector<64x64xf32>
    %125 = tpu.matmul %122, %124, %cst_120 {dimension_numbers = #tpu.dot_dimension_numbers<[1], [0], [0], [1], [0, 0, 1, 1], [], []>} : vector<64x256xbf16>, vector<256x64xbf16>, vector<64x64xf32> -> vector<64x64xf32>
    %126 = arith.addf %120, %125 : vector<64x64xf32>
    %c2_121 = arith.constant 2 : index
    %c0_122 = arith.constant 0 : index
    %127 = vector.load %arg18[%c2_121, %c0_122] : memref<66x256xf32, #tpu.memory_space<vmem>>, vector<64x256xf32>
    %128 = arith.truncf %127 : vector<64x256xf32> to vector<64x256xbf16>
    %c2_123 = arith.constant 2 : index
    %c0_124 = arith.constant 0 : index
    %c0_125 = arith.constant 0 : index
    %129 = vector.load %arg12[%c2_123, %c0_124, %c0_125] : memref<3x256x64xbf16, #tpu.memory_space<vmem>>, vector<1x256x64xbf16>
    %130 = vector.shape_cast %129 : vector<1x256x64xbf16> to vector<256x64xbf16>
    %cst_126 = arith.constant dense<0.000000e+00> : vector<64x64xf32>
    %131 = tpu.matmul %128, %130, %cst_126 {dimension_numbers = #tpu.dot_dimension_numbers<[1], [0], [0], [1], [0, 0, 1, 1], [], []>} : vector<64x256xbf16>, vector<256x64xbf16>, vector<64x64xf32> -> vector<64x64xf32>
    %132 = arith.addf %126, %131 : vector<64x64xf32>
    %cst_127 = arith.constant 2.000000e+00 : f32
    %133 = vector.broadcast %cst_127 : f32 to vector<64x64xf32>
    %134 = arith.subf %132, %133 : vector<64x64xf32>
    %135 = math.exp %134 : vector<64x64xf32>
    %c0_128 = arith.constant 0 : index
    %c0_129 = arith.constant 0 : index
    %c0_130 = arith.constant 0 : index
    %136 = vector.load %arg14[%c0_128, %c0_129, %c0_130] : memref<1x64x64xf32, #tpu.memory_space<vmem>>, vector<1x64x64xf32>
    %137 = vector.shape_cast %136 : vector<1x64x64xf32> to vector<64x64xf32>
    %138 = vector.shape_cast %135 : vector<64x64xf32> to vector<1x64x64xf32>
    tpu.vector_store %arg14[%c0_128, %c0_129, %c0_130], %138 {strides = array<i32>} : memref<1x64x64xf32, #tpu.memory_space<vmem>>, vector<1x64x64xf32>,
    return
  }
  func.func @transform_0(%arg0: i32) -> (i32, i32, i32) {
    %c0_i32 = arith.constant 0 : i32
    %c0_i32_0 = arith.constant 0 : i32
    %c0_i32_1 = arith.constant 0 : i32
    return %arg0, %c0_i32, %c0_i32_0 : i32, i32, i32
  }
  func.func @transform_1(%arg0: i32) -> (i32, i32, i32) {
    %c0_i32 = arith.constant 0 : i32
    %c0_i32_0 = arith.constant 0 : i32
    %c0_i32_1 = arith.constant 0 : i32
    %c0_i32_2 = arith.constant 0 : i32
    return %c0_i32, %c0_i32_0, %c0_i32_1 : i32, i32, i32
  }
  func.func @transform_2(%arg0: i32) -> (i32, i32) {
    %c0_i32 = arith.constant 0 : i32
    %c0_i32_0 = arith.constant 0 : i32
    %c0_i32_1 = arith.constant 0 : i32
    return %c0_i32, %c0_i32_0 : i32, i32
  }
  func.func @transform_3(%arg0: i32) -> (i32, i32) {
    %c0_i32 = arith.constant 0 : i32
    %c0_i32_0 = arith.constant 0 : i32
    %c0_i32_1 = arith.constant 0 : i32
    return %c0_i32, %c0_i32_0 : i32, i32
  }
  func.func @transform_4(%arg0: i32) -> (i32, i32) {
    %c0_i32 = arith.constant 0 : i32
    %c0_i32_0 = arith.constant 0 : i32
    %c0_i32_1 = arith.constant 0 : i32
    return %c0_i32, %c0_i32_0 : i32, i32
  }
  func.func @transform_5(%arg0: i32) -> (i32, i32, i32) {
    %c0_i32 = arith.constant 0 : i32
    %c0_i32_0 = arith.constant 0 : i32
    %c0_i32_1 = arith.constant 0 : i32
    %c0_i32_2 = arith.constant 0 : i32
    return %c0_i32, %c0_i32_0, %c0_i32_1 : i32, i32, i32
  }
  func.func @transform_6(%arg0: i32) -> (i32, i32) {
    %c0_i32 = arith.constant 0 : i32
    %c0_i32_0 = arith.constant 0 : i32
    %c0_i32_1 = arith.constant 0 : i32
    return %c0_i32, %c0_i32_0 : i32, i32
  }
  func.func @transform_7(%arg0: i32) -> (i32, i32) {
    %c0_i32 = arith.constant 0 : i32
    %c0_i32_0 = arith.constant 0 : i32
    %c0_i32_1 = arith.constant 0 : i32
    return %c0_i32, %c0_i32_0 : i32, i32
  }
  func.func @transform_8(%arg0: i32) -> (i32, i32) {
    %c0_i32 = arith.constant 0 : i32
    %c0_i32_0 = arith.constant 0 : i32
    %c0_i32_1 = arith.constant 0 : i32
    return %c0_i32, %c0_i32_0 : i32, i32
  }
  func.func @transform_9(%arg0: i32) -> (i32, i32, i32) {
    %c0_i32 = arith.constant 0 : i32
    %c0_i32_0 = arith.constant 0 : i32
    %c0_i32_1 = arith.constant 0 : i32
    %c0_i32_2 = arith.constant 0 : i32
    return %c0_i32, %c0_i32_0, %c0_i32_1 : i32, i32, i32
  }
  func.func @transform_10(%arg0: i32) -> (i32, i32) {
    %c0_i32 = arith.constant 0 : i32
    %c0_i32_0 = arith.constant 0 : i32
    %c0_i32_1 = arith.constant 0 : i32
    return %c0_i32, %c0_i32_0 : i32, i32
  }
  func.func @transform_11(%arg0: i32) -> (i32, i32, i32) {
    %c0_i32 = arith.constant 0 : i32
    %c0_i32_0 = arith.constant 0 : i32
    %c0_i32_1 = arith.constant 0 : i32
    %c0_i32_2 = arith.constant 0 : i32
    return %c0_i32, %c0_i32_0, %c0_i32_1 : i32, i32, i32
  }
  func.func @transform_12(%arg0: i32) -> (i32, i32) {
    %c0_i32 = arith.constant 0 : i32
    %c0_i32_0 = arith.constant 0 : i32
    %c0_i32_1 = arith.constant 0 : i32
    return %c0_i32, %c0_i32_0 : i32, i32
  }
  func.func @transform_13(%arg0: i32) -> (i32, i32, i32) {
    %c0_i32 = arith.constant 0 : i32
    %c0_i32_0 = arith.constant 0 : i32
    %c0_i32_1 = arith.constant 0 : i32
    return %arg0, %c0_i32, %c0_i32_0 : i32, i32, i32
  }
}

</mosaic_0001>

<bundles_post_ra>
// kernel: fnet_forward.1
= control target key start
LH: loop header
LB: loop body
LE: loop exit
PB: predicated region body
PF: predicated region fallthrough
CT: control target
= control target key end

     0   :  { %s9683_s0 = inlined_call_operand.vmem [shape: f32[2,16,64], index: 0, kind: input, shape index: {}]   ;;  %s9684_s1 = inlined_call_operand.hbm [shape: bf16[4,64,96], index: 1, kind: input, shape index: {}]   ;;  %s9685_s2 = inlined_call_operand.vmem [shape: f32[16,96], index: 2, kind: input, shape index: {}]   ;;  %s9686_s3 = inlined_call_operand.vmem [shape: bf16[32,16], index: 3, kind: input, shape index: {}]   ;;  %s9687_s4 = inlined_call_operand.vmem [shape: bf16[96,192], index: 4, kind: input, shape index: {}]   ;;  %s9688_s5 = inlined_call_operand.vmem [shape: bf16[4,192,256], index: 5, kind: input, shape index: {}]   ;;  %s9689_s6 = inlined_call_operand.hbm [shape: f32[32,256], index: 6, kind: input, shape index: {}]   ;;  %s9690_s7 = inlined_call_operand.vmem [shape: bf16[64,32], index: 7, kind: input, shape index: {}]   ;;  %s9691_s8 = inlined_call_operand.hbm [shape: bf16[256,512], index: 8, kind: input, shape index: {}]   ;;  %s9692_s9 = inlined_call_operand.hbm [shape: bf16[3,512,256], index: 9, kind: input, shape index: {}]   ;;  %s9693_s10 = inlined_call_operand.hbm [shape: f32[64,256], index: 10, kind: input, shape index: {}]   ;;  %s9694_s11 = inlined_call_operand.vmem [shape: bf16[3,256,64], index: 11, kind: input, shape index: {}]   ;;  %s9695_s12 = inlined_call_operand.hbm [shape: f32[64,64], index: 12, kind: input, shape index: {}]   ;;  %s9696_s13 = inlined_call_operand.hbm [shape: f32[2,64,64], index: 13, kind: output, shape index: {}]  }
   0x1   :  { %9711 = sst [smem:[#allocation36_spill]] %s9689_s6 }
   0x2   :  { %9712 = sst [smem:[#allocation37_spill]] %s9692_s9 }
   0x3   :  { %18 = vsyncpa [#allocation7], 0 }
   0x4   :  { %19 = vsyncpa [#allocation10], 0 }
   0x5   :  { %20 = vsyncpa [#allocation13], 0 }
   0x6   :  { %21 = vsyncpa [#allocation16], 0 }
   0x7   :  { %22 = vsyncpa [#allocation8], 0 }
   0x8   :  { %24 = vsyncpa [#allocation8 + $0x1], 0  ;;  %s8208_s25 = smov 0   ;;  %s8210_s26 = smov 0  }
   0x9   :  { %s8212_s27 = smov 0   ;;  %s8214_s28 = smov 0  }
   0xa LB: > { %9713 = sst [smem:[#allocation23_spill]] %s8113_s27  ;;  %s8229_s29 = sadd.s32 4294967295, %s8117_s28   ;;  %s8117_s28 = sphi %s8214_s28, %s9762_s28   ;;  %s8113_s27 = sphi %s8212_s27, %s9764_s27   ;;  %s8109_s26 = sphi %s8210_s26, %s9766_s26   ;;  %s8105_s25 = sphi %s8208_s25, %s9765_s25  }
   0xb   : > { %s6246_s30 = sadd.s32 4294967294, %s8117_s28   ;;  %s8233_s14 = sadd.s32 1, %s8117_s28  }
   0xc   : > { %9714 = sst [smem:[#allocation24_spill]] %s8233_s14  ;;  %s315_s15 = sadd.s32 1, %s8113_s27 }
   0xd   : > { %s312_s16 = ssub.s32 %s8117_s28, %s8233_s14  ;;  %p325_p0 = scmp.ne.s32.totalorder %s8113_s27, %s8109_s26 }
   0xe   : > { %p313_p1 = scmp.eq.s32.totalorder %s312_s16, 0  ;;  %p326_p2 = scmp.eq.s32.totalorder %s8229_s29, 1 }
   0xf   : > { %p331_p3 = scmp.ne.s32.totalorder %s8109_s26, %s8105_s25  ;;  %p332_p4 = scmp.eq.s32.totalorder %s6246_s30, 1 }
  0x10   : > { %s8244_s17 = scalar_select %p313_p1, %s8113_s27, %s315_s15  }
  0x11   : > { %p8246_p5 = por %p326_p2, %p325_p0  ;;  %p8250_p6 = por %p332_p4, %p331_p3 }
  0x12   : > { %9715 = sst [smem:[#allocation25_spill]] %s8244_s17  ;;  %p6247_p7 = scmp.ge.s32.totalorder %s8117_s28, 1 }
  0x13   : > { %s9717_s19 = scalar_select %p8250_p6, 1, 0 }
  0x14   : > { %p339_p8 = scmp.lt.s32.totalorder %s8117_s28, 3  ;;  %p9707_p9 = scmp.eq.s32.totalorder %s8229_s29, 0 }
  0x15   : > { %9718 = sst [smem:[#allocation26_spill]] %s9717_s19  ;;  %s8119_s21 = smov [#allocation9]  }
  0x16   : > { %p8257_p10 = pnand %p6247_p7, %p339_p8  ;;  %s376_s22 = sshll.u32 %s8119_s21, 4  ;;  %s377_s22 = int_to_ptr.vmem [resolvable:$true] %s376_s22 }
  0x17   : > { %s8120_s24 = smov [#allocation12]   ;;  %s7896_s16 = scalar_lea.vmem %s377_s22, 1024 }
  0x18   : > { %p7087_p11 = pneg %p8257_p10  ;;  %s405_s30 = sshll.u32 %s8120_s24, 4  ;;  %s406_s30 = int_to_ptr.vmem [resolvable:$true] %s405_s30 }
  0x19   : > { %p7897_p0 = scmp.ne.s32.totalorder %s377_s22, %s7896_s16  ;;  %p7904_p3 = scmp.lt.s32.totalorder %s377_s22, %s377_s22 }
  0x1a   : > { %p8265_p12 = pnand %p9707_p9, %p7087_p11  ;;  %p7905_p4 = scmp.lt.s32.totalorder %s7896_s16, %s7896_s16 }
  0x1c   : > { %p8271_p13 = pneg %p8265_p12  ;;  %p7906_p7 = por %p7905_p4, %p7904_p3 }
  0x1e   : > { %p7899_p1 = pnand %p7897_p0, %p8271_p13 }
  0x20   : > { %p7900_p2 = pneg %p7899_p1 }
  0x22   : > { %p7907_p8 = pnand %p7906_p7, %p7900_p2 }
  0x24   : > { %7910 = shalt.err (!%p7907_p8)
}
  0x25   : > { %s9701_s21 = smov 256   ;;  %s9703_s24 = smov 16  }
  0x26   : > { %s9722_s6 = sld [smem:[#allocation36_spill]]  ;;  %s7922_s14 = scalar_lea.vmem %s406_s30, 24576 }
  0x27   : > { %p7923_p11 = scmp.ne.s32.totalorder %s406_s30, %s7922_s14  ;;  %p7930_p3 = scmp.lt.s32.totalorder %s406_s30, %s406_s30 }
  0x28   : > { %p7931_p2 = scmp.lt.s32.totalorder %s7922_s14, %s7922_s14 }
  0x29   : > { %p7925_p0 = pnand %p7923_p11, %p8271_p13 }
  0x2a   : > { %p7932_p4 = por %p7931_p2, %p7930_p3 }
  0x2b   : > { %p7926_p1 = pneg %p7925_p0 }
  0x2c   : > { %7093 = dma.hbm_to_vmem [thread:$0]  (!%p8265_p12), %s9722_s6, 1024, %s377_s22, [#allocation10], %s9701_s21, %s9701_s21, %s9703_s24  }
  0x2d   : > { %p7933_p7 = pnand %p7932_p4, %p7926_p1 }
  0x2f   : > { %7936 = shalt.err (!%p7933_p7)
}
  0x30   : > { %s9705_s16 = smov 128   ;;  %s9706_s19 = smov 8  }
  0x31   : > { %s9723_s9 = sld [smem:[#allocation37_spill]]  ;;  %s8125_s22 = smov [#allocation6]  }
  0x32   : > { %s351_s21 = sshll.u32 %s8125_s22, 4  ;;  %s352_s21 = int_to_ptr.vmem [resolvable:$true] %s351_s21 }
  0x33   : > { %s7948_s24 = scalar_lea.vmem %s352_s21, 2048  ;;  %p7956_p1 = scmp.lt.s32.totalorder %s352_s21, %s352_s21 }
  0x34   : > { %p7949_p8 = scmp.ne.s32.totalorder %s352_s21, %s7948_s24  ;;  %p7957_p3 = scmp.lt.s32.totalorder %s7948_s24, %s7948_s24 }
  0x36   : > { %p7951_p11 = pnand %p7949_p8, %p8271_p13  ;;  %p7958_p2 = por %p7957_p3, %p7956_p1 }
  0x37   : > { %7099 = dma.hbm_to_vmem [thread:$0]  (!%p8265_p12), %s9723_s9, 24576, %s406_s30, [#allocation13], %s9705_s16, %s9705_s16, %s9706_s19  }
  0x38   : > { %p7952_p0 = pneg %p7951_p11 }
  0x3a   : > { %p7959_p4 = pnand %p7958_p2, %p7952_p0 }
  0x3c   : > { %7962 = shalt.err (!%p7959_p4)
}
  0x3d   : > { %s8126_s14 = smov 64   ;;  %s8127_s6 = smov 4  }
  0x3e   : > { %7090 = dma.hbm_to_vmem [thread:$0]  (!%p8265_p12), %s9684_s1, 2048, %s352_s21, [#allocation7], %s8126_s14, %s8126_s14, %s8127_s6  }
  0x3f   : > { %s8128_s17 = smov [#allocation11]   ;;  %s8129_s16 = smov [#allocation14]  }
  0x40   : > { %s392_s22 = sshll.u32 %s8128_s17, 4  ;;  %s418_s19 = sshll.u32 %s8129_s16, 4  ;;  %s393_s22 = int_to_ptr.vmem [resolvable:$true] %s392_s22  ;;  %s419_s19 = int_to_ptr.vmem [resolvable:$true] %s418_s19 }
  0x41   : > { %s7974_s9 = scalar_lea.vmem %s393_s22, 8192  ;;  %p7982_p0 = scmp.lt.s32.totalorder %s393_s22, %s393_s22 }
  0x42   : > { %p7975_p7 = scmp.ne.s32.totalorder %s393_s22, %s7974_s9  ;;  %p7983_p1 = scmp.lt.s32.totalorder %s7974_s9, %s7974_s9 }
  0x44   : > { %p7977_p8 = pnand %p7975_p7, %p8271_p13  ;;  %p7984_p3 = por %p7983_p1, %p7982_p0 }
  0x46   : > { %p7978_p11 = pneg %p7977_p8 }
  0x48   : > { %p7985_p2 = pnand %p7984_p3, %p7978_p11 }
  0x4a   : > { %7988 = shalt.err (!%p7985_p2)
}
  0x4b   : > { %s9724_s24 = smov 16   ;;  %s9725_s27 = smov 256  }
  0x4c   : > { %7096 = dma.hbm_to_vmem [thread:$0]  (!%p8265_p12), %s9691_s8, 8192, %s393_s22, [#allocation10], %s9725_s27, %s9725_s27, %s9724_s24  }
  0x4d   : > { %s8000_s16 = scalar_lea.vmem %s419_s19, 2048  ;;  %p8008_p9 = scmp.lt.s32.totalorder %s419_s19, %s419_s19 }
  0x4e   : > { %p8001_p4 = scmp.ne.s32.totalorder %s419_s19, %s8000_s16  ;;  %p8009_p0 = scmp.lt.s32.totalorder %s8000_s16, %s8000_s16 }
  0x50   : > { %p8003_p7 = pnand %p8001_p4, %p8271_p13  ;;  %p8010_p11 = por %p8009_p0, %p8008_p9 }
  0x52   : > { %p8004_p8 = pneg %p8003_p7 }
  0x54   : > { %p8011_p1 = pnand %p8010_p11, %p8004_p8 }
  0x56   : > { %8014 = shalt.err (!%p8011_p1)
}
  0x57   : > { %7102 = dma.hbm_to_vmem [thread:$0]  (!%p8265_p12), %s9693_s10, 2048, %s419_s19, [#allocation13], %s9725_s27, %s9725_s27, %s9724_s24  }
  0x58   : > { %s8130_s30 = smov [#allocation15]  }
  0x59   : > { %s434_s17 = sshll.u32 %s8130_s30, 4  ;;  %s435_s17 = int_to_ptr.vmem [resolvable:$true] %s434_s17 }
  0x5a   : > { %s8026_s22 = scalar_lea.vmem %s435_s17, 1024  ;;  %p8034_p4 = scmp.lt.s32.totalorder %s435_s17, %s435_s17 }
  0x5b   : > { %p8027_p3 = scmp.ne.s32.totalorder %s435_s17, %s8026_s22  ;;  %p8035_p7 = scmp.lt.s32.totalorder %s8026_s22, %s8026_s22 }
  0x5d   : > { %p8029_p2 = pnand %p8027_p3, %p8271_p13  ;;  %p8036_p8 = por %p8035_p7, %p8034_p4 }
  0x5f   : > { %p8030_p9 = pneg %p8029_p2 }
  0x61   : > { %p8037_p0 = pnand %p8036_p8, %p8030_p9 }
  0x63   : > { %8040 = shalt.err (!%p8037_p0)
}
  0x64   : > { %s9726_s6 = smov 8   ;;  %s9727_s21 = smov 128  }
  0x65   : > { %7105 = dma.hbm_to_vmem [thread:$0]  (!%p8265_p12), %s9695_s12, 1024, %s435_s17, [#allocation16], %s9727_s21, %s9727_s21, %s9726_s6  }
  0x66   : > { %458 = sbr.rel (%p8257_p10) target bundleno = 2142 (0x85e), region = 72 }
  0x6b   : > { %p9728_p13 = scmp.eq.s32.totalorder %s8229_s29, 0 }
  0x6d   : > { %8084 = dma.done.wait (%p9728_p13), [#allocation7], 2048   ;;  %p9729_p11 = pmov %p9728_p13 }
  0x6f   : > { %8086 = vsyncadd (%p9729_p11), [#allocation7], 4294965248  ;;  %p9730_p1 = pmov %p9729_p11 }
  0x71   : > { %8088 = dma.done.wait (%p9730_p1), [#allocation10], 9216   ;;  %p9731_p3 = pmov %p9730_p1 }
  0x72   : > { %p9732_p2 = pmov %p9730_p1 }
  0x73   : > { %8090 = vsyncadd (%p9731_p3), [#allocation10], 4294958080 }
  0x74   : > { %8092 = dma.done.wait (%p9732_p2), [#allocation13], 26624   ;;  %p9733_p12 = pmov %p9730_p1 }
  0x75   : > { %p9734_p10 = pmov %p9730_p1 }
  0x76   : > { %8094 = vsyncadd (%p9733_p12), [#allocation13], 4294940672 }
  0x77   : > { %8096 = dma.done.wait (%p9734_p10), [#allocation16], 1024   ;;  %p9735_p9 = pmov %p9730_p1 }
  0x78   : > { %v8131_v0 = vmov 0.0   ;;  %p522_p4 = scmp.lt.s32.totalorder %s8229_s29, 1  ;;  %vm8132_vm0 = vmmov 0   ;;  %v7173_v1 = vld [vmem:[#allocation6 + $0x18] sm:$0xff]   ;;  %v7175_v3 = vld [vmem:[#allocation6 + $0x10] sm:$0xff]   ;;  %vm530_vm1 = vcmask 523264  }
  0x79   : > { %8098 = vsyncadd (%p9735_p9), [#allocation16], 4294966272  ;;  %7013 = vmatprep.subr.bf16.mxu0 %v8131_v0  ;;  %7025 = vmatprep.subr.bf16.mxu1 %v8131_v0  ;;  %v7174_v2 = vld [vmem:[#allocation6 + $0x38] sm:$0xff]   ;;  %v7176_v4 = vld [vmem:[#allocation6 + $0x30] sm:$0xff]   ;;  %vm533_vm2 = vcmask 516096   ;;  %vm535_vm3 = vcmask 523271  }
  0x7a   : > { %7021 = vmatprep.mubr.msk.bf16.mxu0 %vm8132_vm0, %v8131_v0  ;;  %7033 = vmatprep.mubr.msk.bf16.mxu1 %vm8132_vm0, %v8131_v0  ;;  %s523_s20 = scalar_select %p522_p4, %s8229_s29, 1  ;;  %v7177_v5 = vld [vmem:[#allocation6 + $0x8] sm:$0xff]   ;;  %v7179_v9 = vld [vmem:[#allocation6] sm:$0xff]   ;;  %v7181_v11 = vld [vmem:[#allocation6 + $0x58] sm:$0xff]   ;;  %v8133_v43 = vmov 0   ;;  %vm940_vm4 = vcmask 785408  }
  0x7b   : > { %7014 = vmatpush3.bf16.msra.mxu0 %v7173_v1  ;;  %7026 = vmatpush3.bf16.msra.mxu1 %v7174_v2  ;;  %v7178_v6 = vld [vmem:[#allocation6 + $0x28] sm:$0xff]   ;;  %v7180_v10 = vld [vmem:[#allocation6 + $0x20] sm:$0xff]   ;;  %v7182_v17 = vld [vmem:[#allocation6 + $0x78] sm:$0xff]   ;;  %vm1003_vm5 = vcmask 130048   ;;  %vm1105_vm6 = vcmask 523265   ;;  %vm1079_vm7 = vcmask 1040384  }
  0x7c   : > { %s6871_s23 = sshll.u32 %s523_s20, 4  ;;  %7015 = vmatprep.subr.bf16.mxu0 %v8131_v0  ;;  %7027 = vmatprep.subr.bf16.mxu1 %v8131_v0  ;;  %v7183_v19 = vld [vmem:[#allocation6 + $0x50] sm:$0xff]   ;;  %v7185_v21 = vld [vmem:[#allocation6 + $0x48] sm:$0xff]   ;;  %v7187_v23 = vld [vmem:[#allocation6 + $0x40] sm:$0xff]   ;;  %vm1702_vm9 = vcmask 1046528   ;;  %vm2697_vm12 = vcmask 261120  }
  0x7d   : > { %s526_s27 = scalar_lea.vmem %s9683_s0, %s6871_s23  ;;  %v7184_v20 = vld [vmem:[#allocation6 + $0x70] sm:$0xff]   ;;  %v7186_v22 = vld [vmem:[#allocation6 + $0x68] sm:$0xff]   ;;  %v7188_v26 = vld [vmem:[#allocation6 + $0x60] sm:$0xff]   ;;  %vm1433_vm10 = vsmask.f32 7424  ;;  %s519_s21 = sand.u32 1, %s8109_s26  }
  0x7e   : > { %v528_v7 = vld [vmem:[%s526_s27] sm:$0xff]  ;;  %v529_v8 = vld [vmem:[%s526_s27 + $0x8] sm:$0xff]  ;;  %v7191_v31 = vld [vmem:[%s9687_s4 + $0x54] ss:$8 sps:$4 sm:$0xff]   ;;  %vm1935_vm11 = vsmask.f32 6400 }
  0x7f   : > { %7016 = vmatpush3.bf16.msra.mxu0 %v7175_v3  ;;  %7028 = vmatpush3.bf16.msra.mxu1 %v7176_v4  ;;  %531 = vst.msk [vmem:[#allocation2 + $0x1] sm:$0xff] %vm530_vm1, %v528_v7  ;;  %532 = vst.msk [vmem:[#allocation2 + $0x9] sm:$0xff] %vm530_vm1, %v529_v8  ;;  %v7189_v32 = vld [vmem:[%s9687_s4 + $0x50] ss:$8 sps:$4 sm:$0xff]   ;;  %v7194_v33 = vld [vmem:[%s9687_s4 + $0x44] ss:$8 sps:$4 sm:$0xff]  }
  0x80   : > { %7017 = vmatprep.subr.bf16.mxu0 %v8131_v0  ;;  %7029 = vmatprep.subr.bf16.mxu1 %v8131_v0  ;;  %534 = vst.msk [vmem:[#allocation2] sm:$0x1] %vm533_vm2, %v528_v7  ;;  %v7192_v34 = vld [vmem:[%s9687_s4 + $0x40] ss:$8 sps:$4 sm:$0xff]   ;;  %v7197_v35 = vld [vmem:[%s9687_s4 + $0x34] ss:$8 sps:$4 sm:$0xff]  }
  0x81   : > { %536 = vst.msk [vmem:[#allocation2 + $0xa] sm:$0x80] %vm535_vm3, %v529_v8  ;;  %537 = vst.msk [vmem:[#allocation2 + $0xb] sm:$0x80] %vm535_vm3, %v529_v8  ;;  %v7195_v36 = vld [vmem:[%s9687_s4 + $0x30] ss:$8 sps:$4 sm:$0xff]  }
  0x82   : > { %v7200_v37 = vld [vmem:[%s9687_s4 + $0x24] ss:$8 sps:$4 sm:$0xff]   ;;  %v7198_v38 = vld [vmem:[%s9687_s4 + $0x20] ss:$8 sps:$4 sm:$0xff]   ;;  %v7203_v39 = vld [vmem:[%s9687_s4 + $0x14] ss:$8 sps:$4 sm:$0xff]  }
  0x83   : > { %7018 = vmatpush3.bf16.msra.mxu0 %v7177_v5  ;;  %7030 = vmatpush3.bf16.msra.mxu1 %v7178_v6  ;;  %v7201_v40 = vld [vmem:[%s9687_s4 + $0x10] ss:$8 sps:$4 sm:$0xff]   ;;  %v7206_v41 = vld [vmem:[%s9687_s4 + $0x4] ss:$8 sps:$4 sm:$0xff]   ;;  %v7204_v42 = vld [vmem:[%s9687_s4] ss:$8 sps:$4 sm:$0xff]  }
  0x84   : > { %7019 = vmatprep.subr.bf16.mxu0 %v8131_v0  ;;  %7031 = vmatprep.subr.bf16.mxu1 %v8131_v0  ;;  %v538_v52 = vld [vmem:[%s9685_s2] sm:$0xff]  ;;  %v539_v53 = vld [vmem:[%s9685_s2 + $0x8] sm:$0xff]  ;;  %v7209_v7 = vld [vmem:[%s9688_s5 + $0x70] ss:$8 sps:$4 sm:$0xff]   ;;  %s6262_s16 = sshll.u32 %s519_s21, 6  ;;  %s6872_s20 = sshll.u32 %s8229_s29, 10 }
  0x85   : > { %v7211_v8 = vld [vmem:[%s9688_s5 + $0x74] ss:$8 sps:$4 sm:$0xff]   ;;  %s9614_s19 = scalar_lea.vmem [#allocation17], %s6262_s16  ;;  %s9635_s27 = scalar_lea.hbm %s9696_s13, %s6872_s20 }
  0x86   : > { %v541_v13 = vld [vmem:[#allocation2 + $0x8] sm:$0xff]  ;;  %s6124_s23 = sshll.u32 %s9614_s19, 4  ;;  %s9643_s9 = scalar_lea.sflag [#allocation8], %s519_s21  ;;  %s9637_s23 = int_to_ptr.vmem [resolvable:$true] %s6124_s23 }
  0x87   : > { %7020 = vmatpush3.bf16.msra.mxu0 %v7179_v9  ;;  %7032 = vmatpush3.bf16.msra.mxu1 %v7180_v10  ;;  %v540_v12 = vld [vmem:[#allocation2] sm:$0xff]  ;;  %v622_v16 = vld [vmem:[#allocation2 + $0x9] sm:$0xff]  ;;  %s8041_s29 = scalar_lea.vmem %s9637_s23, 1024  ;;  %s8135_s14 = smov [#allocation17]  }
  0x88   : > { %7037 = vmatprep.subr.bf16.mxu0 %v8131_v0  ;;  %v621_v14 = vld [vmem:[#allocation2 + $0x1] sm:$0xff]  ;;  %7049 = vmatprep.subr.bf16.mxu1 %v8131_v0  ;;  %v542_v15 = vpack.c.bf16 %v541_v13, %v540_v12  ;;  %v704_v25 = vld [vmem:[#allocation2 + $0xa] sm:$0xff]  ;;  %p8042_p7 = scmp.ne.s32.totalorder %s9637_s23, %s8041_s29  ;;  %s8045_s30 = sshll.u32 %s8135_s14, 4  ;;  %s8046_s30 = int_to_ptr.vmem [resolvable:$false] %s8045_s30 }
  0x89   : > { %v623_v18 = vpack.c.bf16 %v622_v16, %v621_v14  ;;  %v703_v24 = vld [vmem:[#allocation2 + $0x2] sm:$0xff]  ;;  %v786_v28 = vld [vmem:[#allocation2 + $0xb] sm:$0xff]  ;;  %s8047_s17 = scalar_lea.vmem %s8046_s30, 2048  ;;  %p8048_p13 = scmp.lt.s32.totalorder %s9637_s23, %s8046_s30 }
  0x8a   : > { %7022 = vmatmul.mubr.msk.bf16.vlgmr.msra.gmra.mxu0 %vm530_vm1, %v542_v15  ;;  %v785_v27 = vld [vmem:[#allocation2 + $0x3] sm:$0xff]  ;;  %v705_v29 = vpack.c.bf16 %v704_v25, %v703_v24  ;;  %v7215_v12 = vld [vmem:[%s9688_s5 + $0x50] ss:$8 sps:$4 sm:$0xff]   ;;  %v7226_v25 = vld [vmem:[%s9688_s5 + $0x34] ss:$8 sps:$4 sm:$0xff]   ;;  %p8043_p8 = pnand %p8042_p7, %p8246_p5  ;;  %p8049_p11 = scmp.lt.s32.totalorder %s8047_s17, %s8041_s29 }
  0x8b   : > { %7034 = vmatmul.mubr.msk.bf16.vlgmr.msra.gmra.mxu1 %vm530_vm1, %v623_v18  ;;  %7038 = vmatpush3.bf16.msra.mxu0 %v7181_v11  ;;  %v787_v30 = vpack.c.bf16 %v786_v28, %v785_v27  ;;  %v7214_v9 = vld [vmem:[%s9688_s5 + $0x64] ss:$8 sps:$4 sm:$0xff]   ;;  %v7212_v10 = vld [vmem:[%s9688_s5 + $0x60] ss:$8 sps:$4 sm:$0xff]   ;;  %v7217_v11 = vld [vmem:[%s9688_s5 + $0x54] ss:$8 sps:$4 sm:$0xff]  }
  0x8c   : > { %7050 = vmatpush3.bf16.msra.mxu1 %v7182_v17  ;;  %7039 = vmatprep.subr.bf16.mxu0 %v8131_v0  ;;  %v7220_v13 = vld [vmem:[%s9688_s5 + $0x44] ss:$8 sps:$4 sm:$0xff]   ;;  %v7218_v14 = vld [vmem:[%s9688_s5 + $0x40] ss:$8 sps:$4 sm:$0xff]   ;;  %p8044_p0 = pneg %p8043_p8  ;;  %p8050_p1 = por %p8049_p11, %p8048_p13 }
  0x8d   : > { %7051 = vmatprep.subr.bf16.mxu1 %v8131_v0  ;;  %7045 = vmatprep.mubr.msk.bf16.mxu0 %vm8132_vm0, %v8131_v0  ;;  %v7208_v24 = vld [vmem:[%s9686_s3 + $0x8] sm:$0xff]  }
  0x8e   : > { %7057 = vmatprep.mubr.msk.bf16.mxu1 %vm8132_vm0, %v8131_v0  ;;  %v7229_v27 = vld [vmem:[%s9688_s5 + $0x124] ss:$8 sps:$4 sm:$0xff]   ;;  %v7227_v28 = vld [vmem:[%s9688_s5 + $0x120] ss:$8 sps:$4 sm:$0xff]   ;;  %p8051_p3 = pnand %p8050_p1, %p8044_p0 }
  0x8f   : > { %7040 = vmatpush3.bf16.msra.mxu0 %v7183_v19 }
  0x90   : > { %7052 = vmatpush3.bf16.msra.mxu1 %v7184_v20  ;;  %7041 = vmatprep.subr.bf16.mxu0 %v8131_v0  ;;  %v7223_v20 = vld [vmem:[%s9688_s5 + $0x134] ss:$8 sps:$4 sm:$0xff]  }
  0x91   : > { %7053 = vmatprep.subr.bf16.mxu1 %v8131_v0 }
  0x93   : > { %7042 = vmatpush3.bf16.msra.mxu0 %v7185_v21 }
  0x94   : > { %7054 = vmatpush3.bf16.msra.mxu1 %v7186_v22  ;;  %7043 = vmatprep.subr.bf16.mxu0 %v8131_v0  ;;  %v7207_v22 = vld [vmem:[%s9686_s3] sm:$0xff]  }
  0x95   : > { %7055 = vmatprep.subr.bf16.mxu1 %v8131_v0 }
  0x97   : > { %7044 = vmatpush3.bf16.msra.mxu0 %v7187_v23  ;;  %v7221_v23 = vld [vmem:[%s9688_s5 + $0x130] ss:$8 sps:$4 sm:$0xff]  }
  0x98   : > { %7056 = vmatpush3.bf16.msra.mxu1 %v7188_v26  ;;  %948 = vmatprep.subr.bf16.mxu0 %v7191_v31  ;;  %v7224_v26 = vld [vmem:[%s9688_s5 + $0x30] ss:$8 sps:$4 sm:$0xff]   ;;  %v7235_v31 = vld [vmem:[%s9688_s5 + $0x114] ss:$8 sps:$4 sm:$0xff]  }
  0x99   : > { %1331 = vmatprep.subr.bf16.mxu1 %v7211_v8  ;;  %v9708_v8 = vlaneseq }
  0x9a   : > { %7046 = vmatmul.mubr.msk.bf16.vlgmr.msra.gmra.mxu0 %vm530_vm1, %v705_v29  ;;  %v7232_v29 = vld [vmem:[%s9688_s5 + $0x24] ss:$8 sps:$4 sm:$0xff]  }
  0x9b   : > { %7058 = vmatmul.mubr.msk.bf16.vlgmr.msra.gmra.mxu1 %vm530_vm1, %v787_v30  ;;  %949 = vmatpush1.bf16.msra.mxu0 %v7189_v32  ;;  %v7230_v30 = vld [vmem:[%s9688_s5 + $0x20] ss:$8 sps:$4 sm:$0xff]   ;;  %v7233_v32 = vld [vmem:[%s9688_s5 + $0x110] ss:$8 sps:$4 sm:$0xff]   ;;  %vm8592_vm8 = vcmp.lt.s32.totalorder %v9708_v8, 192  ;;  %vm8845_vm13 = vcmp.lt.s32.totalorder %v9708_v8, 512 }
  0x9c   : > { %950 = vmatprep.subr.bf16.mxu0 %v7194_v33  ;;  %976 = vmatprep.mubr.bf16.mxu0 %v8133_v43  ;;  %v7238_v33 = vld [vmem:[%s9688_s5 + $0x14] ss:$8 sps:$4 sm:$0xff]  }
  0x9d   : > { %1332 = vmatpush1.bf16.msra.mxu1 %v7209_v7 }
  0x9e   : > { %1333 = vmatprep.subr.bf16.mxu1 %v7214_v9 }
  0x9f   : > { %951 = vmatpush1.bf16.msra.mxu0 %v7192_v34  ;;  %v7236_v34 = vld [vmem:[%s9688_s5 + $0x10] ss:$8 sps:$4 sm:$0xff]  }
  0xa0   : > { %952 = vmatprep.subr.bf16.mxu0 %v7197_v35  ;;  %v7241_v35 = vld [vmem:[%s9688_s5 + $0x104] ss:$8 sps:$4 sm:$0xff]  }
  0xa1   : > { %1334 = vmatpush1.bf16.msra.mxu1 %v7212_v10 }
  0xa2   : > { %1335 = vmatprep.subr.bf16.mxu1 %v7217_v11 }
  0xa3   : > { %953 = vmatpush1.bf16.msra.mxu0 %v7195_v36  ;;  %v7239_v36 = vld [vmem:[%s9688_s5 + $0x100] ss:$8 sps:$4 sm:$0xff]  }
  0xa4   : > { %954 = vmatprep.subr.bf16.mxu0 %v7200_v37  ;;  %v7244_v37 = vld [vmem:[%s9688_s5 + $0x4] ss:$8 sps:$4 sm:$0xff]  }
  0xa5   : > { %1336 = vmatpush1.bf16.msra.mxu1 %v7215_v12  ;;  %v1120_v12 = vshrl.u32 %v9708_v8, 7  ;;  %v3111_v8 = vld [vmem:[#allocation14 + $0x8] sm:$0xff] }
  0xa6   : > { %1337 = vmatprep.subr.bf16.mxu1 %v7220_v13 }
  0xa7   : > { %955 = vmatpush1.bf16.msra.mxu0 %v7198_v38  ;;  %v7242_v38 = vld [vmem:[%s9688_s5] ss:$8 sps:$4 sm:$0xff]  }
  0xa8   : > { %956 = vmatprep.subr.bf16.mxu0 %v7203_v39  ;;  %v7247_v39 = vld [vmem:[%s9688_s5 + $0xf4] ss:$8 sps:$4 sm:$0xff]  }
  0xa9   : > { %1338 = vmatpush1.bf16.msra.mxu1 %v7218_v14 }
  0xaa   : > { %1339 = vmatprep.subr.bf16.mxu1 %v7226_v25 }
  0xab   : > { %957 = vmatpush1.bf16.msra.mxu0 %v7201_v40  ;;  %v7245_v40 = vld [vmem:[%s9688_s5 + $0xf0] ss:$8 sps:$4 sm:$0xff]  }
  0xac   : > { %958 = vmatprep.subr.bf16.mxu0 %v7206_v41  ;;  %v7250_v41 = vld [vmem:[%s9688_s5 + $0xb4] ss:$8 sps:$4 sm:$0xff]  }
  0xad   : > { %1340 = vmatpush1.bf16.msra.mxu1 %v7224_v26 }
  0xae   : > { %1341 = vmatprep.subr.bf16.mxu1 %v7232_v29 }
  0xaf   : > { %959 = vmatpush1.bf16.msra.mxu0 %v7204_v42  ;;  %v7248_v42 = vld [vmem:[%s9688_s5 + $0xb0] ss:$8 sps:$4 sm:$0xff]  }
  0xb1   : > { %1342 = vmatpush1.bf16.msra.mxu1 %v7230_v30 }
  0xb2   : > { %1343 = vmatprep.subr.bf16.mxu1 %v7238_v33 }
  0xb5   : > { %1344 = vmatpush1.bf16.msra.mxu1 %v7236_v34 }
  0xb6   : > { %1345 = vmatprep.subr.bf16.mxu1 %v7244_v37 }
  0xb9   : > { %1346 = vmatpush1.bf16.msra.mxu1 %v7242_v38 }
  0xba   : > { %1355 = vmatprep.subr.bf16.mxu1 %v7250_v41 }
  0xbd   : > { %1356 = vmatpush2.bf16.msra.mxu1 %v7248_v42 }
 0x14a   : > { %v612_v44 = vpop.f32.mrf.mxu0 }
 0x14b   : > { %v694_v45 = vpop.f32.mrf.mxu1  ;;  %v619_v54 = vadd.f32 %v612_v44, %v538_v52  ;;  %v7253_v44 = vld [vmem:[%s9688_s5 + $0xe4] ss:$8 sps:$4 sm:$0xff]  }
 0x14c   : > { %v7023_v46 = vpop.f32.mrf.mxu0  ;;  %v7265_v52 = vld [vmem:[%s9688_s5 + $0xc4] ss:$8 sps:$4 sm:$0xff]  }
 0x14d   : > { %v7035_v47 = vpop.f32.mrf.mxu1  ;;  %v701_v57 = vadd.f32 %v694_v45, %v619_v54  ;;  %v7251_v45 = vld [vmem:[%s9688_s5 + $0xe0] ss:$8 sps:$4 sm:$0xff]   ;;  %v7256_v46 = vld [vmem:[%s9688_s5 + $0xa4] ss:$8 sps:$4 sm:$0xff]  }
 0x14e   : > { %v615_v48 = vpop.f32.mrf.mxu0  ;;  %v7254_v47 = vld [vmem:[%s9688_s5 + $0xa0] ss:$8 sps:$4 sm:$0xff]   ;;  %1357 = vmatprep.subr.bf16.mxu1 %v7256_v46  ;;  %v7268_v54 = vld [vmem:[%s9688_s5 + $0x84] ss:$8 sps:$4 sm:$0xff]  }
 0x14f   : > { %v697_v49 = vpop.f32.mrf.mxu1  ;;  %v620_v55 = vadd.f32 %v615_v48, %v539_v53  ;;  %v7259_v48 = vld [vmem:[%s9688_s5 + $0xd4] ss:$8 sps:$4 sm:$0xff]   ;;  %1358 = vmatpush2.bf16.msra.mxu1 %v7254_v47  ;;  %v7263_v53 = vld [vmem:[%s9688_s5 + $0xc0] ss:$8 sps:$4 sm:$0xff]  }
 0x150   : > { %v7024_v50 = vpop.f32.mrf.mxu0 }
 0x151   : > { %v7036_v51 = vpop.f32.mrf.mxu1  ;;  %v702_v60 = vadd.f32 %v697_v49, %v620_v55  ;;  %v7257_v49 = vld [vmem:[%s9688_s5 + $0xd0] ss:$8 sps:$4 sm:$0xff]   ;;  %v7262_v50 = vld [vmem:[%s9688_s5 + $0x94] ss:$8 sps:$4 sm:$0xff]   ;;  %v7266_v55 = vld [vmem:[%s9688_s5 + $0x80] ss:$8 sps:$4 sm:$0xff]  }
 0x152   : > { %v7260_v51 = vld [vmem:[%s9688_s5 + $0x90] ss:$8 sps:$4 sm:$0xff]   ;;  %1359 = vmatprep.subr.bf16.mxu1 %v7262_v50 }
 0x153   : > { %1360 = vmatpush2.bf16.msra.mxu1 %v7260_v51  ;;  %v7272_v51 = vld [vmem:[%s9688_s5 + $0x1f0] ss:$8 sps:$4 sm:$0xff]  }
 0x154   : > { %1361 = vmatprep.subr.bf16.mxu1 %v7268_v54 }
 0x157   : > { %1362 = vmatpush2.bf16.msra.mxu1 %v7266_v55  ;;  %v7280_v55 = vld [vmem:[%s9688_s5 + $0x1e4] ss:$8 sps:$4 sm:$0xff]  }
 0x15a   : > { %v776_v56 = vpop.f32.mrf.mxu0 }
 0x15b   : > { %v858_v58 = vpop.f32.mrf.mxu1  ;;  %v783_v61 = vadd.f32 %v776_v56, %v701_v57  ;;  %v7271_v56 = vld [vmem:[%s9688_s5 + $0x174] ss:$8 sps:$4 sm:$0xff]   ;;  %v7269_v57 = vld [vmem:[%s9688_s5 + $0x170] ss:$8 sps:$4 sm:$0xff]  }
 0x15c   : > { %v7047_v59 = vpop.f32.mrf.mxu0 }
 0x15d   : > { %v7059_v62 = vpop.f32.mrf.mxu1  ;;  %v865_v3 = vadd.f32 %v858_v58, %v783_v61  ;;  %v7274_v58 = vld [vmem:[%s9688_s5 + $0x1f4] ss:$8 sps:$4 sm:$0xff]   ;;  %v7277_v59 = vld [vmem:[%s9688_s5 + $0x164] ss:$8 sps:$4 sm:$0xff]  }
 0x15e   : > { %v779_v63 = vpop.f32.mrf.mxu0  ;;  %1841 = vmatprep.subr.bf16.mxu1 %v7274_v58  ;;  %v7283_v61 = vld [vmem:[%s9688_s5 + $0x154] ss:$8 sps:$4 sm:$0xff]   ;;  %v7281_v62 = vld [vmem:[%s9688_s5 + $0x150] ss:$8 sps:$4 sm:$0xff]  }
 0x15f   : > { %v784_v0 = vadd.f32 %v779_v63, %v702_v60  ;;  %v861_v1 = vpop.f32.mrf.mxu1  ;;  %v7275_v60 = vld [vmem:[%s9688_s5 + $0x160] ss:$8 sps:$4 sm:$0xff]   ;;  %v7289_v63 = vld [vmem:[%s9688_s5 + $0x144] ss:$8 sps:$4 sm:$0xff]  }
 0x160   : > { %v7048_v2 = vpop.f32.mrf.mxu0 }
 0x161   : > { %v866_v4 = vadd.f32 %v861_v1, %v784_v0  ;;  %v7060_v5 = vpop.f32.mrf.mxu1  ;;  %v7287_v0 = vld [vmem:[%s9688_s5 + $0x140] ss:$8 sps:$4 sm:$0xff]   ;;  %v7295_v1 = vld [vmem:[%s9688_s5 + $0x2b4] ss:$8 sps:$4 sm:$0xff]  }
 0x163   : > { %v867_v6 = vpack.c.bf16 %v866_v4, %v865_v3 }
 0x165   : > { %6297 = vmatmul.mubr.msk.bf16.vlgmr.msra.gmra.mxu0 %vm940_vm4, %v867_v6  ;;  %v8134_v6 = vmov 1966171168  }
 0x166   : > { %1042 = vmatprep.mubr.bf16.mxu0 %v8133_v43  ;;  %v1117_v7 = vunpack.c.l.s4 %v8134_v6 }
 0x168   : > { %v1118_v11 = vunpack.c.0.s8 %v1117_v7 }
 0x225   : > { %v978_v15 = vpop.f32.mrf.mxu0 }
 0x227   : > { %v980_v16 = vpop.f32.mrf.mxu0 }
 0x229   : > { %v982_v17 = vpop.f32.mrf.mxu0 }
 0x22a   : > { %v991_v21 = vpack.c.bf16 %v982_v17, %v978_v15 }
 0x22b   : > { %v984_v18 = vpop.f32.mrf.mxu0 }
 0x22c   : > { %v992_v19 = vpack.c.bf16 %v984_v18, %v980_v16  ;;  %v8588_v16 = vsub.s32 %v1118_v11, %v1120_v12 }
 0x22e   : > { %1024 = vmatprep.subr.bf16.mxu0 %v992_v19  ;;  %9736 = vst [vmem:[#allocation27_spill] sm:$0xff] %v8588_v16 }
 0x22f   : > { %1025 = vmatpush1.bf16.msra.mxu0 %v991_v21 }
 0x230   : > { %1602 = vmatprep.subr.bf16.mxu0 %v7223_v20 }
 0x232   : > { %6300 = vmatmul.mubr.msk.bf16.vlgmr.msra.gmra.mxu0 %vm1003_vm5, %v7207_v22 }
 0x233   : > { %1052 = vmatprep.mubr.bf16.mxu0 %v8133_v43  ;;  %1603 = vmatpush1.bf16.msra.mxu0 %v7221_v23 }
 0x234   : > { %1604 = vmatprep.subr.bf16.mxu0 %v7229_v27 }
 0x237   : > { %1605 = vmatpush1.bf16.msra.mxu0 %v7227_v28 }
 0x238   : > { %1606 = vmatprep.subr.bf16.mxu0 %v7235_v31 }
 0x23a   : > { %6301 = vmatmul.mubr.msk.bf16.gmra.mxu0 %vm1003_vm5, %v7208_v24 }
 0x23b   : > { %1607 = vmatpush1.bf16.msra.mxu0 %v7233_v32 }
 0x23c   : > { %1608 = vmatprep.subr.bf16.mxu0 %v7241_v35 }
 0x23f   : > { %1609 = vmatpush1.bf16.msra.mxu0 %v7239_v36 }
 0x240   : > { %1610 = vmatprep.subr.bf16.mxu0 %v7247_v39 }
 0x243   : > { %1611 = vmatpush1.bf16.msra.mxu0 %v7245_v40 }
 0x244   : > { %1612 = vmatprep.subr.bf16.mxu0 %v7253_v44 }
 0x247   : > { %1613 = vmatpush1.bf16.msra.mxu0 %v7251_v45 }
 0x248   : > { %1614 = vmatprep.subr.bf16.mxu0 %v7259_v48 }
 0x24b   : > { %1615 = vmatpush1.bf16.msra.mxu0 %v7257_v49 }
 0x24c   : > { %1616 = vmatprep.subr.bf16.mxu0 %v7265_v52 }
 0x24f   : > { %1617 = vmatpush1.bf16.msra.mxu0 %v7263_v53 }
 0x250   : > { %1626 = vmatprep.subr.bf16.mxu0 %v7271_v56 }
 0x253   : > { %1627 = vmatpush2.bf16.msra.mxu0 %v7269_v57 }
 0x254   : > { %1628 = vmatprep.subr.bf16.mxu0 %v7277_v59  ;;  %v7278_v59 = vld [vmem:[%s9688_s5 + $0x1e0] ss:$8 sps:$4 sm:$0xff]  }
 0x257   : > { %1629 = vmatpush2.bf16.msra.mxu0 %v7275_v60 }
 0x258   : > { %1630 = vmatprep.subr.bf16.mxu0 %v7283_v61 }
 0x25b   : > { %1631 = vmatpush2.bf16.msra.mxu0 %v7281_v62 }
 0x25c   : > { %1632 = vmatprep.subr.bf16.mxu0 %v7289_v63  ;;  %v7286_v63 = vld [vmem:[%s9688_s5 + $0x1d4] ss:$8 sps:$4 sm:$0xff]  }
 0x25f   : > { %1633 = vmatpush2.bf16.msra.mxu0 %v7287_v0 }
 0x260   : > { %2106 = vmatprep.subr.bf16.mxu0 %v7295_v1 }
 0x2f2   : > { %v1044_v2 = vpop.f32.mrf.mxu0 }
 0x2f3   : > { %7789 = vtanh.f32 %v1044_v2 }
 0x2f4   : > { %v1046_v3 = vpop.f32.mrf.mxu0 }
 0x2f5   : > { %7791 = vtanh.f32 %v1046_v3 }
 0x2f6   : > { %v1048_v4 = vpop.f32.mrf.mxu0 }
 0x2f7   : > { %7793 = vtanh.f32 %v1048_v4 }
 0x2f8   : > { %v1050_v5 = vpop.f32.mrf.mxu0 }
 0x2f9   : > { %7795 = vtanh.f32 %v1050_v5  ;;  %v7284_v5 = vld [vmem:[%s9688_s5 + $0x1d0] ss:$8 sps:$4 sm:$0xff]  }
 0x2fa   : > { %v1054_v9 = vpop.f32.mrf.mxu0 }
 0x2fb   : > { %7797 = vtanh.f32 %v1054_v9 }
 0x2fc   : > { %v1056_v10 = vpop.f32.mrf.mxu0 }
 0x2fd   : > { %7799 = vtanh.f32 %v1056_v10 }
 0x2fe   : > { %v1058_v13 = vpop.f32.mrf.mxu0 }
 0x2ff   : > { %7801 = vtanh.f32 %v1058_v13 }
 0x300   : > { %v7790_v14 = vpop.eup %7789  ;;  %v1060_v15 = vpop.f32.mrf.mxu0 }
 0x301   : > { %v1080_v17 = vrot.slane %v7790_v14, 7  ;;  %7803 = vtanh.f32 %v1060_v15 }
 0x302   : > { %v7792_v18 = vpop.eup %7791 }
 0x303   : > { %v1115_v19 = vcombine.low %v7790_v14, %v7792_v18  ;;  %1104 = vst [vmem:[#allocation3] sm:$0xfe] %v1080_v17  ;;  %v1081_v20 = vrot.slane %v7792_v18, 7  ;;  %v7292_v14 = vld [vmem:[%s9688_s5 + $0x1c4] ss:$8 sps:$4 sm:$0xff]  }
 0x304   : > { %v7794_v21 = vpop.eup %7793 }
 0x305   : > { %v1122_v22 = vrot.slane %v1115_v19, %v8588_v16  ;;  %v1082_v23 = vrot.slane %v7794_v21, 7  ;;  %1106 = vst.msk [vmem:[#allocation3 + $0x8] sm:$0xfe] %vm1105_vm6, %v1081_v20 }
 0x306   : > { %v7796_v24 = vpop.eup %7795 }
 0x307   : > { %v1129_v26 = vrot.slane %v1122_v22, %v8588_v16  ;;  %v8598_v27 = vsel %vm1079_vm7, %v1080_v17, %v1082_v23  ;;  %v1084_v28 = vrot.slane %v7796_v24, 7 }
 0x308   : > { %v7798_v29 = vpop.eup %7797 }
 0x309   : > { %1135 = vst.msk [vmem:[#allocation3] ss:$8 sm:$0x3] %vm8592_vm8, %v1129_v26  ;;  %v1085_v30 = vsel %vm1079_vm7, %v1081_v20, %v1084_v28  ;;  %v1086_v31 = vrot.slane %v7798_v29, 7  ;;  %v7290_v26 = vld [vmem:[%s9688_s5 + $0x1c0] ss:$8 sps:$4 sm:$0xff]  }
 0x30a   : > { %v7800_v32 = vpop.eup %7799  ;;  %1108 = vst.msk [vmem:[#allocation3 + $0x18] sm:$0xff] %vm530_vm1, %v1085_v30  ;;  %v1392_v45 = vld [vmem:[#allocation3] sm:$0xfe] }
 0x30b   : > { %v1087_v33 = vsel %vm1079_vm7, %v1082_v23, %v1086_v31  ;;  %v1088_v34 = vrot.slane %v7800_v32, 7  ;;  %v1402_v56 = vpack.c.bf16 %v8598_v27, %v1392_v45 }
 0x30c   : > { %v7802_v35 = vpop.eup %7801  ;;  %v1393_v49 = vld [vmem:[#allocation3 + $0x8] sm:$0xfe] }
 0x30d   : > { %v1089_v36 = vsel %vm1079_vm7, %v1084_v28, %v1088_v34  ;;  %v1090_v37 = vrot.slane %v7802_v35, 7  ;;  %v1664_v60 = vld [vmem:[#allocation3 + $0x8] sm:$0xfc]  ;;  %v1437_v1 = vshll.u32 %v1402_v56, 16  ;;  %v1435_v22 = vshrl.u32 %v1402_v56, 16 }
 0x30e   : > { %v7804_v38 = vpop.eup %7803  ;;  %1110 = vst.msk [vmem:[#allocation3 + $0x28] sm:$0xff] %vm530_vm1, %v1089_v36  ;;  %v1903_v12 = vld [vmem:[#allocation3 + $0x8] sm:$0xf8]  ;;  %v7305_v56 = vld [vmem:[%s9688_s5 + $0x290] ss:$8 sps:$4 sm:$0xff]  }
 0x30f   : > { %v1091_v39 = vsel %vm1079_vm7, %v1086_v31, %v1090_v37  ;;  %1113 = vst [vmem:[#allocation3 + $0x40] sm:$0x1] %v1090_v37  ;;  %v1092_v40 = vrot.slane %v7804_v38, 7  ;;  %v1137_v41 = vcombine.high %v7802_v35, %v7804_v38  ;;  %v1439_v15 = vrot.slane %v1437_v1, 1  ;;  %v7293_v31 = vld [vmem:[%s9688_s5 + $0x2b0] ss:$8 sps:$4 sm:$0xff]  }
 0x310   : > { %v1170_v42 = vld [vmem:[#allocation3 + $0x8] sm:$0xff]  ;;  %v1169_v44 = vld [vmem:[#allocation3] sm:$0xff]  ;;  %v8622_v58 = vpack.c.bf16 %v1091_v39, %v1087_v33 }
 0x311   : > { %v1093_v46 = vsel %vm1079_vm7, %v1088_v34, %v1092_v40  ;;  %1114 = vst.msk [vmem:[#allocation3 + $0x48] sm:$0x1] %vm533_vm2, %v1092_v40  ;;  %v1144_v47 = vrot.slane %v1137_v41, %v8588_v16  ;;  %v1172_v48 = vld [vmem:[#allocation3 + $0x18] sm:$0xff]  ;;  %v1177_v54 = vpack.c.bf16 %v8598_v27, %v1169_v44  ;;  %v1440_v32 = vor.u32 %v1439_v15, %v1435_v22  ;;  %v7301_v38 = vld [vmem:[%s9688_s5 + $0x2a4] ss:$8 sps:$4 sm:$0xff]  }
 0x312   : > { %1112 = vst.msk [vmem:[#allocation3 + $0x38] sm:$0xff] %vm530_vm1, %v1093_v46  ;;  %v1178_v50 = vpack.c.bf16 %v1172_v48, %v1170_v42  ;;  %v1403_v52 = vpack.c.bf16 %v1172_v48, %v1393_v49  ;;  %v1668_v0 = vpack.c.bf16 %v1172_v48, %v1664_v60  ;;  %v1442_v6 = vshll.u32 %v8622_v58, 16  ;;  %v7298_v37 = vld [vmem:[%s9688_s5 + $0x1b4] ss:$8 sps:$4 sm:$0xff]   ;;  %v7296_v44 = vld [vmem:[%s9688_s5 + $0x1b0] ss:$8 sps:$4 sm:$0xff]  }
 0x313   : > { %v1145_v53 = vcombine.high %v1144_v47, %v1144_v47  ;;  %v1907_v17 = vpack.c.bf16 %v1172_v48, %v1903_v12  ;;  %v7299_v47 = vld [vmem:[%s9688_s5 + $0x2a0] ss:$8 sps:$4 sm:$0xff]   ;;  %v7304_v48 = vld [vmem:[%s9688_s5 + $0x1a4] ss:$8 sps:$4 sm:$0xff]   ;;  %v7307_v49 = vld [vmem:[%s9688_s5 + $0x294] ss:$8 sps:$4 sm:$0xff]  }
 0x314   : > { %6326 = vmatprep.mubr.msk.bf16.mxu1 %vm530_vm1, %v1178_v50  ;;  %v1449_v61 = vshll.u32 %v1403_v52, 16  ;;  %v1706_v13 = vrot.slane %v1668_v0, 1  ;;  %v1447_v19 = vshrl.u32 %v1403_v52, 16  ;;  %v1444_v23 = vrot.slane %v1442_v6, 1  ;;  %v7310_v60 = vld [vmem:[%s9688_s5 + $0x194] ss:$8 sps:$4 sm:$0xff]  }
 0x315   : > { %v1152_v57 = vrot.slane %v1145_v53, %v8588_v16  ;;  %1364 = vmatmul.mubr.bf16.vlgmr.msra.gmra.mxu1 %v1177_v54  ;;  %v1174_v3 = vld [vmem:[#allocation3 + $0x28] sm:$0xff]  ;;  %v1949_v33 = vshrl.u32 %v1907_v17, 16  ;;  %v1952_v39 = vshll.u32 %v1907_v17, 16  ;;  %v1458_v52 = vshrl.u32 %v8622_v58, 16  ;;  %v7308_v0 = vld [vmem:[%s9688_s5 + $0x190] ss:$8 sps:$4 sm:$0xff]  }
 0x316   : > { %1842 = vmatpush1.bf16.msra.mxu1 %v7272_v51  ;;  %v1451_v10 = vrot.slane %v1449_v61, 1  ;;  %v1400_v11 = vld [vmem:[#allocation3 + $0x40] sm:$0x1]  ;;  %v1445_v40 = vsel %vm1433_vm10, %v1440_v32, %v1444_v23  ;;  %v7302_v54 = vld [vmem:[%s9688_s5 + $0x1a0] ss:$8 sps:$4 sm:$0xff]  }
 0x317   : > { %v1153_v62 = vcombine.high %v1152_v57, %v1152_v57  ;;  %1843 = vmatprep.subr.bf16.mxu1 %v7280_v55  ;;  %v1406_v24 = vpack.c.bf16 %v1400_v11, %v1400_v11  ;;  %v1951_v50 = vrot.slane %v1949_v33, 1  ;;  %v1954_v51 = vrot.slane %v1952_v39, 2  ;;  %v7313_v61 = vld [vmem:[%s9688_s5 + $0x284] ss:$8 sps:$4 sm:$0xff]   ;;  %v7311_v1 = vld [vmem:[%s9688_s5 + $0x280] ss:$8 sps:$4 sm:$0xff]  }
 0x318   : > { %v1401_v2 = vld [vmem:[#allocation3 + $0x48] sm:$0x1]  ;;  %v1452_v28 = vor.u32 %v1451_v10, %v1447_v19  ;;  %v1460_v57 = vor.u32 %v1458_v52, %v1444_v23  ;;  %v7325_v10 = vld [vmem:[%s9688_s5 + $0x264] ss:$8 sps:$4 sm:$0xff]   ;;  %v7320_v11 = vld [vmem:[%s9688_s5 + $0x230] ss:$8 sps:$4 sm:$0xff]  }
 0x319   : > { %1156 = vst.msk [vmem:[#allocation3 + $0x41] ss:$8 sm:$0x3] %vm8592_vm8, %v1153_v62  ;;  %1159 = vst.msk [vmem:[#allocation3 + $0x42] ss:$8 sm:$0x3] %vm8592_vm8, %v1153_v62  ;;  %v1407_v7 = vpack.c.bf16 %v1401_v2, %v1401_v2 }
 0x31a   : > { %v1176_v4 = vld [vmem:[#allocation3 + $0x38] sm:$0xff]  ;;  %1844 = vmatpush1.bf16.msra.mxu1 %v7278_v59  ;;  %v1462_v41 = vshll.u32 %v1406_v24, 16  ;;  %v1955_v59 = vor.u32 %v1954_v51, %v1951_v50  ;;  %v7316_v2 = vld [vmem:[%s9688_s5 + $0x184] ss:$8 sps:$4 sm:$0xff]   ;;  %v7323_v12 = vld [vmem:[%s9688_s5 + $0x260] ss:$8 sps:$4 sm:$0xff]  }
 0x31b   : > { %v8638_v9 = vpack.c.bf16 %v1176_v4, %v1174_v3  ;;  %1845 = vmatprep.subr.bf16.mxu1 %v7286_v63  ;;  %v1470_v21 = vshll.u32 %v1407_v7, 16  ;;  %v7319_v3 = vld [vmem:[%s9688_s5 + $0x274] ss:$8 sps:$4 sm:$0xff]   ;;  %v7314_v4 = vld [vmem:[%s9688_s5 + $0x180] ss:$8 sps:$4 sm:$0xff]   ;;  %v1704_v33 = vrot.slane %v8622_v58, 1 }
 0x31c   : > { %v1464_v53 = vrot.slane %v1462_v41, 1  ;;  %v7322_v7 = vld [vmem:[%s9688_s5 + $0x234] ss:$8 sps:$4 sm:$0xff]   ;;  %v7326_v15 = vld [vmem:[%s9688_s5 + $0x220] ss:$8 sps:$4 sm:$0xff]  }
 0x31d   : > { %6327 = vmatprep.mubr.msk.bf16.mxu1 %vm530_vm1, %v8638_v9  ;;  %v1707_v18 = vrot.slane %v8638_v9, 1  ;;  %v1454_v20 = vshll.u32 %v8638_v9, 16  ;;  %v1466_v30 = vshrl.u32 %v8638_v9, 16  ;;  %v1472_v36 = vrot.slane %v1470_v21, 1  ;;  %v7329_v17 = vld [vmem:[%s9688_s5 + $0x250] ss:$8 sps:$4 sm:$0xff]  }
 0x31e   : > { %1374 = vmatmul.mubr.bf16.gmra.mxu1 %v8622_v58  ;;  %v1465_v62 = vsel %vm1433_vm10, %v1460_v57, %v1464_v53  ;;  %v7334_v19 = vld [vmem:[%s9688_s5 + $0x214] ss:$8 sps:$4 sm:$0xff]   ;;  %v7332_v21 = vld [vmem:[%s9688_s5 + $0x210] ss:$8 sps:$4 sm:$0xff]   ;;  %v7335_v23 = vld [vmem:[%s9688_s5 + $0x240] ss:$8 sps:$4 sm:$0xff]  }
 0x31f   : > { %1846 = vmatpush1.bf16.msra.mxu1 %v7284_v5  ;;  %v1708_v25 = vsel %vm1702_vm9, %v1706_v13, %v1707_v18  ;;  %v1456_v29 = vrot.slane %v1454_v20, 1  ;;  %v1956_v45 = vrot.slane %v1466_v30, 1  ;;  %v1957_v46 = vrot.slane %v1454_v20, 2  ;;  %v7317_v5 = vld [vmem:[%s9688_s5 + $0x270] ss:$8 sps:$4 sm:$0xff]  }
 0x320   : > { %6426 = vmatprep.mubr.msk.bf16.mxu1 %vm530_vm1, %v1708_v25  ;;  %1847 = vmatprep.subr.bf16.mxu1 %v7292_v14  ;;  %v7328_v13 = vld [vmem:[%s9688_s5 + $0x224] ss:$8 sps:$4 sm:$0xff]   ;;  %v7331_v14 = vld [vmem:[%s9688_s5 + $0x254] ss:$8 sps:$4 sm:$0xff]   ;;  %v1666_v22 = vld [vmem:[#allocation3 + $0x48] sm:$0x3] }
 0x321   : > { %v1457_v34 = vsel %vm1433_vm10, %v1452_v28, %v1456_v29  ;;  %v1468_v35 = vor.u32 %v1466_v30, %v1456_v29  ;;  %v8688_v55 = vor.u32 %v1957_v46, %v1956_v45  ;;  %v7337_v20 = vld [vmem:[%s9688_s5 + $0x244] ss:$8 sps:$4 sm:$0xff]   ;;  %v1663_v25 = vld [vmem:[#allocation3] sm:$0xfc]  ;;  %v1670_v28 = vpack.c.bf16 %v1666_v22, %v1666_v22  ;;  %v7338_v29 = vld [vmem:[%s9688_s5 + $0x200] ss:$8 sps:$4 sm:$0xff]  }
 0x322   : > { %6376 = vmatprep.mubr.msk.bf16.mxu0 %vm530_vm1, %v1457_v34  ;;  %v7340_v24 = vld [vmem:[%s9688_s5 + $0x204] ss:$8 sps:$4 sm:$0xff]   ;;  %v1667_v30 = vpack.c.bf16 %v8598_v27, %v1663_v25  ;;  %v1905_v32 = vld [vmem:[#allocation3 + $0x48] sm:$0x7] }
 0x323   : > { %1848 = vmatpush1.bf16.msra.mxu1 %v7290_v26  ;;  %1635 = vmatmul.mubr.bf16.vlgmr.msra.gmra.mxu0 %v1445_v40  ;;  %v1473_v42 = vsel %vm1433_vm10, %v1468_v35, %v1472_v36  ;;  %v1959_v63 = vsel %vm1935_vm11, %v1955_v59, %v8688_v55  ;;  %v7343_v26 = vld [vmem:[%s9688_s5 + $0x2f4] ss:$8 sps:$4 sm:$0xff]   ;;  %v7346_v34 = vld [vmem:[%s9688_s5 + $0x2e4] ss:$8 sps:$4 sm:$0xff]   ;;  %v1711_v36 = vrot.slane %v1670_v28, 1  ;;  %v1909_v39 = vpack.c.bf16 %v1905_v32, %v1905_v32 }
 0x324   : > { %2107 = vmatpush1.bf16.msra.mxu0 %v7293_v31  ;;  %6377 = vmatprep.mubr.msk.bf16.mxu0 %vm530_vm1, %v1473_v42  ;;  %v7341_v31 = vld [vmem:[%s9688_s5 + $0x2f0] ss:$8 sps:$4 sm:$0xff]   ;;  %v7344_v40 = vld [vmem:[%s9688_s5 + $0x2e0] ss:$8 sps:$4 sm:$0xff]   ;;  %v7352_v9 = vld [vmem:[%s9688_s5 + $0x2c4] ss:$8 sps:$4 sm:$0xff]  }
 0x325   : > { %1849 = vmatprep.subr.bf16.mxu1 %v7298_v37  ;;  %2108 = vmatprep.subr.bf16.mxu0 %v7301_v38  ;;  %v1902_v35 = vld [vmem:[#allocation3] sm:$0xf8]  ;;  %v1665_v37 = vld [vmem:[#allocation3 + $0x40] sm:$0x3]  ;;  %v1703_v38 = vrot.slane %v1667_v30, 1  ;;  %v1712_v46 = vsel %vm1702_vm9, %v1707_v18, %v1711_v36  ;;  %v1944_v18 = vrot.slane %v1458_v52, 1 }
 0x326   : > { %v1906_v41 = vpack.c.bf16 %v8598_v27, %v1902_v35  ;;  %v1669_v45 = vpack.c.bf16 %v1665_v37, %v1665_v37  ;;  %v7347_v27 = vld [vmem:[%s9688_s5 + $0x2d0] ss:$8 sps:$4 sm:$0xff]   ;;  %v7373_v25 = vld [vmem:[#allocation11 + $0x84] ss:$16 sps:$4 sm:$0xff]   ;;  %v7376_v28 = vld [vmem:[#allocation11 + $0x8c] ss:$16 sps:$4 sm:$0xff]  }
 0x327   : > { %1850 = vmatpush1.bf16.msra.mxu1 %v7296_v44  ;;  %v1705_v42 = vsel %vm1702_vm9, %v1703_v38, %v1704_v33  ;;  %v7349_v44 = vld [vmem:[%s9688_s5 + $0x2d4] ss:$8 sps:$4 sm:$0xff]   ;;  %v7368_v22 = vld [vmem:[#allocation11 + $0xa8] ss:$16 sps:$4 sm:$0xff]  }
 0x328   : > { %2109 = vmatpush1.bf16.msra.mxu0 %v7299_v47  ;;  %1851 = vmatprep.subr.bf16.mxu1 %v7304_v48  ;;  %v1970_v47 = vshrl.u32 %v1909_v39, 16  ;;  %v1973_v48 = vshll.u32 %v1909_v39, 16  ;;  %v1937_v50 = vshrl.u32 %v1906_v41, 16  ;;  %v1940_v51 = vshll.u32 %v1906_v41, 16  ;;  %v7379_v30 = vld [vmem:[#allocation11 + $0x64] ss:$16 sps:$4 sm:$0xff]  }
 0x329   : > { %2110 = vmatprep.subr.bf16.mxu0 %v7307_v49  ;;  %v1904_v49 = vld [vmem:[#allocation3 + $0x40] sm:$0x7]  ;;  %v1709_v53 = vrot.slane %v1669_v45, 1  ;;  %v7382_v32 = vld [vmem:[#allocation11 + $0x6c] ss:$16 sps:$4 sm:$0xff]  }
 0x32a   : > { %v1972_v57 = vrot.slane %v1970_v47, 1  ;;  %v1975_v59 = vrot.slane %v1973_v48, 2  ;;  %v7386_v35 = vld [vmem:[#allocation11 + $0x48] ss:$16 sps:$4 sm:$0xff]   ;;  %v7388_v36 = vld [vmem:[#allocation11 + $0x4c] ss:$16 sps:$4 sm:$0xff]  }
 0x32b   : > { %1852 = vmatpush1.bf16.msra.mxu1 %v7302_v54  ;;  %1645 = vmatmul.mubr.bf16.gmra.mxu0 %v1465_v62  ;;  %v1945_v54 = vrot.slane %v1442_v6, 2  ;;  %v1942_v62 = vrot.slane %v1940_v51, 2  ;;  %v7391_v37 = vld [vmem:[#allocation11 + $0x24] ss:$16 sps:$4 sm:$0xff]   ;;  %v7394_v38 = vld [vmem:[#allocation11 + $0x2c] ss:$16 sps:$4 sm:$0xff]  }
 0x32c   : > { %2111 = vmatpush1.bf16.msra.mxu0 %v7305_v56  ;;  %6476 = vmatprep.mubr.msk.bf16.mxu0 %vm530_vm1, %v1959_v63  ;;  %v1908_v56 = vpack.c.bf16 %v1904_v49, %v1904_v49  ;;  %v1710_v63 = vsel %vm1702_vm9, %v1704_v33, %v1709_v53  ;;  %v7383_v33 = vld [vmem:[#allocation11 + $0x40] ss:$16 sps:$4 sm:$0xff]   ;;  %v7397_v41 = vld [vmem:[#allocation11 + $0x4] ss:$16 sps:$4 sm:$0xff]   ;;  %v7398_v45 = vld [vmem:[#allocation11 + $0x8] ss:$16 sps:$4 sm:$0xff]  }
 0x32d   : > { %1853 = vmatprep.subr.bf16.mxu1 %v7310_v60  ;;  %2112 = vmatprep.subr.bf16.mxu0 %v7313_v61  ;;  %v7350_v60 = vld [vmem:[%s9688_s5 + $0x2c0] ss:$8 sps:$4 sm:$0xff]   ;;  %v1939_v61 = vrot.slane %v1937_v50, 1  ;;  %v7406_v47 = vld [vmem:[#allocation11 + $0x1ec] ss:$16 sps:$4 sm:$0xff]  }
 0x32e   : > { %v1964_v52 = vshll.u32 %v1908_v56, 16  ;;  %v7389_v39 = vld [vmem:[#allocation11 + $0x20] ss:$16 sps:$4 sm:$0xff]   ;;  %v7404_v49 = vld [vmem:[#allocation11 + $0x1e8] ss:$16 sps:$4 sm:$0xff]  }
 0x32f   : > { %1854 = vmatpush1.bf16.msra.mxu1 %v7308_v0  ;;  %v1946_v0 = vor.u32 %v1945_v54, %v1944_v18  ;;  %v1943_v58 = vor.u32 %v1942_v62, %v1939_v61  ;;  %v7401_v48 = vld [vmem:[#allocation11 + $0x1e0] ss:$16 sps:$4 sm:$0xff]   ;;  %v7412_v50 = vld [vmem:[#allocation11 + $0x1cc] ss:$16 sps:$4 sm:$0xff]   ;;  %v7410_v53 = vld [vmem:[#allocation11 + $0x1c8] ss:$16 sps:$4 sm:$0xff]  }
 0x330   : > { %2113 = vmatpush1.bf16.msra.mxu0 %v7311_v1  ;;  %1855 = vmatprep.subr.bf16.mxu1 %v7316_v2  ;;  %v1961_v1 = vshrl.u32 %v1908_v56, 16  ;;  %v1976_v2 = vor.u32 %v1975_v59, %v1972_v57  ;;  %v7407_v51 = vld [vmem:[#allocation11 + $0x1c0] ss:$16 sps:$4 sm:$0xff]   ;;  %v7415_v18 = vld [vmem:[#allocation11 + $0x1a4] ss:$16 sps:$4 sm:$0xff]  }
 0x331   : > { %2114 = vmatprep.subr.bf16.mxu0 %v7319_v3  ;;  %v1947_v6 = vsel %vm1935_vm11, %v1943_v58, %v1946_v0  ;;  %v7416_v54 = vld [vmem:[#allocation11 + $0x1a8] ss:$16 sps:$4 sm:$0xff]   ;;  %v7418_v56 = vld [vmem:[#allocation11 + $0x1ac] ss:$16 sps:$4 sm:$0xff]   ;;  %v7419_v57 = vld [vmem:[#allocation11 + $0x180] ss:$16 sps:$4 sm:$0xff]  }
 0x332   : > { %v1963_v3 = vrot.slane %v1961_v1, 1  ;;  %v7421_v59 = vld [vmem:[#allocation11 + $0x184] ss:$16 sps:$4 sm:$0xff]   ;;  %v7424_v61 = vld [vmem:[#allocation11 + $0x18c] ss:$16 sps:$4 sm:$0xff]  }
 0x333   : > { %1856 = vmatpush1.bf16.msra.mxu1 %v7314_v4  ;;  %v1966_v4 = vrot.slane %v1964_v52, 2  ;;  %v7425_v62 = vld [vmem:[#allocation11 + $0x160] ss:$16 sps:$4 sm:$0xff]   ;;  %v7430_v1 = vld [vmem:[#allocation11 + $0x16c] ss:$16 sps:$4 sm:$0xff]  }
 0x334   : > { %2115 = vmatpush1.bf16.msra.mxu0 %v7317_v5  ;;  %1865 = vmatprep.subr.bf16.mxu1 %v7322_v7  ;;  %v1977_v5 = vsel %vm1935_vm11, %v8688_v55, %v1976_v2  ;;  %v7365_v55 = vld [vmem:[#allocation11 + $0xa0] ss:$16 sps:$4 sm:$0xff]   ;;  %v7433_v2 = vld [vmem:[#allocation11 + $0x144] ss:$16 sps:$4 sm:$0xff]   ;;  %v7434_v58 = vld [vmem:[#allocation11 + $0x148] ss:$16 sps:$4 sm:$0xff]  }
 0x335   : > { %2116 = vmatprep.subr.bf16.mxu0 %v7325_v10  ;;  %v1967_v7 = vor.u32 %v1966_v4, %v1963_v3  ;;  %v7431_v52 = vld [vmem:[#allocation11 + $0x140] ss:$16 sps:$4 sm:$0xff]   ;;  %v7439_v4 = vld [vmem:[#allocation11 + $0x124] ss:$16 sps:$4 sm:$0xff]  }
 0x336   : > { %v7437_v3 = vld [vmem:[#allocation11 + $0x120] ss:$16 sps:$4 sm:$0xff]  }
 0x337   : > { %1866 = vmatpush2.bf16.msra.mxu1 %v7320_v11  ;;  %v1968_v10 = vsel %vm1935_vm11, %v1946_v0, %v1967_v7  ;;  %v7353_v11 = vld [vmem:[#allocation11 + $0xe0] ss:$16 sps:$4 sm:$0xff]   ;;  %v7428_v0 = vld [vmem:[#allocation11 + $0x168] ss:$16 sps:$4 sm:$0xff]   ;;  %v7442_v7 = vld [vmem:[#allocation11 + $0x12c] ss:$16 sps:$4 sm:$0xff]  }
 0x338   : > { %2117 = vmatpush1.bf16.msra.mxu0 %v7323_v12  ;;  %1867 = vmatprep.subr.bf16.mxu1 %v7328_v13  ;;  %v7355_v12 = vld [vmem:[#allocation11 + $0xe4] ss:$16 sps:$4 sm:$0xff]   ;;  %v7356_v13 = vld [vmem:[#allocation11 + $0xe8] ss:$16 sps:$4 sm:$0xff]  }
 0x339   : > { %2118 = vmatprep.subr.bf16.mxu0 %v7331_v14  ;;  %v7358_v14 = vld [vmem:[#allocation11 + $0xec] ss:$16 sps:$4 sm:$0xff]  }
 0x33b   : > { %1868 = vmatpush2.bf16.msra.mxu1 %v7326_v15  ;;  %v7359_v15 = vld [vmem:[#allocation11 + $0xc0] ss:$16 sps:$4 sm:$0xff]  }
 0x33c   : > { %2119 = vmatpush1.bf16.msra.mxu0 %v7329_v17  ;;  %1869 = vmatprep.subr.bf16.mxu1 %v7334_v19  ;;  %v7361_v17 = vld [vmem:[#allocation11 + $0xc4] ss:$16 sps:$4 sm:$0xff]   ;;  %v7362_v19 = vld [vmem:[#allocation11 + $0xc8] ss:$16 sps:$4 sm:$0xff]  }
 0x33d   : > { %2120 = vmatprep.subr.bf16.mxu0 %v7337_v20  ;;  %v7364_v20 = vld [vmem:[#allocation11 + $0xcc] ss:$16 sps:$4 sm:$0xff]  }
 0x33f   : > { %1870 = vmatpush2.bf16.msra.mxu1 %v7332_v21  ;;  %v7367_v21 = vld [vmem:[#allocation11 + $0xa4] ss:$16 sps:$4 sm:$0xff]  }
 0x340   : > { %2121 = vmatpush1.bf16.msra.mxu0 %v7335_v23  ;;  %1871 = vmatprep.subr.bf16.mxu1 %v7340_v24  ;;  %v7370_v23 = vld [vmem:[#allocation11 + $0xac] ss:$16 sps:$4 sm:$0xff]   ;;  %v7371_v24 = vld [vmem:[#allocation11 + $0x80] ss:$16 sps:$4 sm:$0xff]  }
 0x341   : > { %2130 = vmatprep.subr.bf16.mxu0 %v7343_v26  ;;  %v7374_v26 = vld [vmem:[#allocation11 + $0x88] ss:$16 sps:$4 sm:$0xff]  }
 0x343   : > { %1872 = vmatpush2.bf16.msra.mxu1 %v7338_v29  ;;  %v7377_v29 = vld [vmem:[#allocation11 + $0x60] ss:$16 sps:$4 sm:$0xff]  }
 0x344   : > { %2131 = vmatpush2.bf16.msra.mxu0 %v7341_v31  ;;  %2555 = vmatprep.subr.bf16.mxu1 %v7355_v12  ;;  %v7380_v31 = vld [vmem:[#allocation11 + $0x68] ss:$16 sps:$4 sm:$0xff]   ;;  %v7448_v12 = vld [vmem:[#allocation11 + $0x10c] ss:$16 sps:$4 sm:$0xff]  }
 0x345   : > { %2132 = vmatprep.subr.bf16.mxu0 %v7346_v34  ;;  %v7385_v34 = vld [vmem:[#allocation11 + $0x44] ss:$16 sps:$4 sm:$0xff]  }
 0x346   : > { %1874 = vmatmul.mubr.bf16.vlgmr.msra.gmra.mxu1 %v1705_v42  ;;  %v7400_v42 = vld [vmem:[#allocation11 + $0xc] ss:$16 sps:$4 sm:$0xff]  }
 0x347   : > { %6427 = vmatprep.mubr.msk.bf16.mxu1 %vm530_vm1, %v1712_v46  ;;  %2556 = vmatpush1.bf16.msra.mxu1 %v7353_v11  ;;  %v7403_v46 = vld [vmem:[#allocation11 + $0x1e4] ss:$16 sps:$4 sm:$0xff]   ;;  %v7443_v11 = vld [vmem:[#allocation11 + $0x100] ss:$16 sps:$4 sm:$0xff]  }
 0x348   : > { %2133 = vmatpush2.bf16.msra.mxu0 %v7344_v40  ;;  %2557 = vmatprep.subr.bf16.mxu1 %v7361_v17  ;;  %v7392_v40 = vld [vmem:[#allocation11 + $0x28] ss:$16 sps:$4 sm:$0xff]  }
 0x349   : > { %2134 = vmatprep.subr.bf16.mxu0 %v7349_v44  ;;  %v7395_v44 = vld [vmem:[#allocation11] ss:$16 sps:$4 sm:$0xff]  }
 0x34b   : > { %2558 = vmatpush1.bf16.msra.mxu1 %v7359_v15 }
 0x34c   : > { %2135 = vmatpush2.bf16.msra.mxu0 %v7347_v27  ;;  %2559 = vmatprep.subr.bf16.mxu1 %v7367_v21  ;;  %v7409_v27 = vld [vmem:[#allocation11 + $0x1c4] ss:$16 sps:$4 sm:$0xff]  }
 0x34d   : > { %2136 = vmatprep.subr.bf16.mxu0 %v7352_v9  ;;  %v7413_v9 = vld [vmem:[#allocation11 + $0x1a0] ss:$16 sps:$4 sm:$0xff]  }
 0x34e   : > { %1884 = vmatmul.mubr.bf16.gmra.mxu1 %v1710_v63  ;;  %v7427_v63 = vld [vmem:[#allocation11 + $0x164] ss:$16 sps:$4 sm:$0xff]  }
 0x34f   : > { %2560 = vmatpush1.bf16.msra.mxu1 %v7365_v55 }
 0x350   : > { %2137 = vmatpush2.bf16.msra.mxu0 %v7350_v60  ;;  %2561 = vmatprep.subr.bf16.mxu1 %v7373_v25  ;;  %v7422_v60 = vld [vmem:[#allocation11 + $0x188] ss:$16 sps:$4 sm:$0xff]  }
 0x351   : > { %2608 = vmatprep.subr.bf16.mxu0 %v7358_v14 }
 0x353   : > { %2139 = vmatmul.mubr.bf16.vlgmr.msra.gmra.mxu0 %v1947_v6  ;;  %2562 = vmatpush1.bf16.msra.mxu1 %v7371_v24  ;;  %v7436_v6 = vld [vmem:[#allocation11 + $0x14c] ss:$16 sps:$4 sm:$0xff]  }
 0x354   : > { %6477 = vmatprep.mubr.msk.bf16.mxu0 %vm530_vm1, %v1977_v5  ;;  %2609 = vmatpush1.bf16.msra.mxu0 %v7356_v13  ;;  %v7440_v5 = vld [vmem:[#allocation11 + $0x128] ss:$16 sps:$4 sm:$0xff]  }
 0x355   : > { %2610 = vmatprep.subr.bf16.mxu0 %v7364_v20  ;;  %2563 = vmatprep.subr.bf16.mxu1 %v7379_v30  ;;  %v7446_v13 = vld [vmem:[#allocation11 + $0x108] ss:$16 sps:$4 sm:$0xff]  }
 0x357   : > { %2564 = vmatpush1.bf16.msra.mxu1 %v7377_v29 }
 0x358   : > { %2611 = vmatpush1.bf16.msra.mxu0 %v7362_v19  ;;  %2565 = vmatprep.subr.bf16.mxu1 %v7385_v34 }
 0x359   : > { %2612 = vmatprep.subr.bf16.mxu0 %v7370_v23 }
 0x35b   : > { %2149 = vmatmul.mubr.bf16.gmra.mxu0 %v1968_v10  ;;  %2566 = vmatpush1.bf16.msra.mxu1 %v7383_v33  ;;  %v7445_v10 = vld [vmem:[#allocation11 + $0x104] ss:$16 sps:$4 sm:$0xff]  }
 0x35c   : > { %2613 = vmatpush1.bf16.msra.mxu0 %v7368_v22  ;;  %2567 = vmatprep.subr.bf16.mxu1 %v7391_v37  ;;  %v1164_v37 = vld [vmem:[#allocation9 + $0x18] sm:$0xff] }
 0x35d   : > { %2614 = vmatprep.subr.bf16.mxu0 %v7376_v28 }
 0x35f   : > { %2568 = vmatpush1.bf16.msra.mxu1 %v7389_v39 }
 0x360   : > { %2615 = vmatpush1.bf16.msra.mxu0 %v7374_v26  ;;  %2569 = vmatprep.subr.bf16.mxu1 %v7397_v41 }
 0x361   : > { %2616 = vmatprep.subr.bf16.mxu0 %v7382_v32 }
 0x363   : > { %2570 = vmatpush1.bf16.msra.mxu1 %v7395_v44 }
 0x364   : > { %2617 = vmatpush1.bf16.msra.mxu0 %v7380_v31  ;;  %2571 = vmatprep.subr.bf16.mxu1 %v7403_v46 }
 0x365   : > { %2618 = vmatprep.subr.bf16.mxu0 %v7388_v36  ;;  %v1162_v36 = vld [vmem:[#allocation9 + $0x8] sm:$0xff] }
 0x367   : > { %2572 = vmatpush2.bf16.msra.mxu1 %v7401_v48 }
 0x368   : > { %2619 = vmatpush1.bf16.msra.mxu0 %v7386_v35  ;;  %2573 = vmatprep.subr.bf16.mxu1 %v7409_v27  ;;  %v1163_v35 = vld [vmem:[#allocation9 + $0x10] sm:$0xff] }
 0x369   : > { %2620 = vmatprep.subr.bf16.mxu0 %v7394_v38 }
 0x36b   : > { %2574 = vmatpush2.bf16.msra.mxu1 %v7407_v51 }
 0x36c   : > { %2621 = vmatpush1.bf16.msra.mxu0 %v7392_v40  ;;  %2575 = vmatprep.subr.bf16.mxu1 %v7415_v18  ;;  %v1161_v40 = vld [vmem:[#allocation9] sm:$0xff]  ;;  %v1167_v18 = vld [vmem:[#allocation9 + $0x30] sm:$0xff] }
 0x36d   : > { %2622 = vmatprep.subr.bf16.mxu0 %v7400_v42 }
 0x36f   : > { %2576 = vmatpush2.bf16.msra.mxu1 %v7413_v9 }
 0x370   : > { %2623 = vmatpush1.bf16.msra.mxu0 %v7398_v45  ;;  %2577 = vmatprep.subr.bf16.mxu1 %v7421_v59  ;;  %v1168_v59 = vld [vmem:[#allocation9 + $0x38] sm:$0xff] }
 0x371   : > { %2624 = vmatprep.subr.bf16.mxu0 %v7406_v47 }
 0x373   : > { %2578 = vmatpush2.bf16.msra.mxu1 %v7419_v57  ;;  %v1166_v57 = vld [vmem:[#allocation9 + $0x28] sm:$0xff] }
 0x374   : > { %2625 = vmatpush2.bf16.msra.mxu0 %v7404_v49  ;;  %2579 = vmatprep.subr.bf16.mxu1 %v7427_v63 }
 0x375   : > { %2626 = vmatprep.subr.bf16.mxu0 %v7412_v50 }
 0x377   : > { %2580 = vmatpush2.bf16.msra.mxu1 %v7425_v62 }
 0x378   : > { %2627 = vmatpush2.bf16.msra.mxu0 %v7410_v53  ;;  %2581 = vmatprep.subr.bf16.mxu1 %v7433_v2 }
 0x379   : > { %2628 = vmatprep.subr.bf16.mxu0 %v7418_v56 }
 0x37b   : > { %2582 = vmatpush2.bf16.msra.mxu1 %v7431_v52 }
 0x37c   : > { %2629 = vmatpush2.bf16.msra.mxu0 %v7416_v54  ;;  %2583 = vmatprep.subr.bf16.mxu1 %v7439_v4 }
 0x37d   : > { %2630 = vmatprep.subr.bf16.mxu0 %v7424_v61 }
 0x37f   : > { %2584 = vmatpush2.bf16.msra.mxu1 %v7437_v3 }
 0x380   : > { %2631 = vmatpush2.bf16.msra.mxu0 %v7422_v60  ;;  %2585 = vmatprep.subr.bf16.mxu1 %v7445_v10 }
 0x381   : > { %2632 = vmatprep.subr.bf16.mxu0 %v7430_v1 }
 0x383   : > { %2586 = vmatpush2.bf16.msra.mxu1 %v7443_v11 }
 0x384   : > { %2633 = vmatpush2.bf16.msra.mxu0 %v7428_v0  ;;  %v1165_v0 = vld [vmem:[#allocation9 + $0x20] sm:$0xff] }
 0x385   : > { %2634 = vmatprep.subr.bf16.mxu0 %v7436_v6 }
 0x388   : > { %2635 = vmatpush2.bf16.msra.mxu0 %v7434_v58 }
 0x389   : > { %2636 = vmatprep.subr.bf16.mxu0 %v7442_v7 }
 0x38c   : > { %2637 = vmatpush2.bf16.msra.mxu0 %v7440_v5 }
 0x38d   : > { %2638 = vmatprep.subr.bf16.mxu0 %v7448_v12 }
 0x390   : > { %2639 = vmatpush2.bf16.msra.mxu0 %v7446_v13 }
 0x3d5   : > { %v1365_v14 = vpop.f32.mrf.mxu1 }
 0x3d6   : > { %v1384_v46 = vadd.f32 %v1365_v14, %v1161_v40 }
 0x3d7   : > { %v1367_v15 = vpop.f32.mrf.mxu1 }
 0x3d8   : > { %v1385_v44 = vadd.f32 %v1367_v15, %v1162_v36 }
 0x3d9   : > { %v1369_v17 = vpop.f32.mrf.mxu1 }
 0x3da   : > { %v1386_v41 = vadd.f32 %v1369_v17, %v1163_v35 }
 0x3db   : > { %v1371_v19 = vpop.f32.mrf.mxu1 }
 0x3dc   : > { %v1387_v45 = vadd.f32 %v1371_v19, %v1164_v37 }
 0x3de   : > { %v1375_v55 = vpop.f32.mrf.mxu1 }
 0x3df   : > { %v1388_v7 = vadd.f32 %v1375_v55, %v1165_v0  ;;  %v7462_v0 = vld [vmem:[#allocation12 + $0x160] ss:$8 sps:$4 sm:$0xff]  }
 0x3e0   : > { %v1377_v22 = vpop.f32.mrf.mxu1 }
 0x3e1   : > { %v1389_v3 = vadd.f32 %v1377_v22, %v1166_v57  ;;  %v7449_v57 = vld [vmem:[%s9690_s7] sm:$0xff]  }
 0x3e2   : > { %v1379_v24 = vpop.f32.mrf.mxu1 }
 0x3e3   : > { %v1636_v20 = vpop.f32.mrf.mxu0  ;;  %v1390_v2 = vadd.f32 %v1379_v24, %v1167_v18  ;;  %v7458_v18 = vld [vmem:[#allocation12 + $0x174] ss:$8 sps:$4 sm:$0xff]  }
 0x3e4   : > { %v1381_v26 = vpop.f32.mrf.mxu1  ;;  %v1655_v51 = vadd.f32 %v1636_v20, %v1384_v46 }
 0x3e5   : > { %v1638_v21 = vpop.f32.mrf.mxu0  ;;  %v1391_v4 = vadd.f32 %v1381_v26, %v1168_v59  ;;  %v7453_v59 = vld [vmem:[#allocation12 + $0x70] ss:$8 sps:$4 sm:$0xff]  }
 0x3e6   : > { %v1656_v27 = vadd.f32 %v1638_v21, %v1385_v44 }
 0x3e7   : > { %v1640_v23 = vpop.f32.mrf.mxu0 }
 0x3e8   : > { %v1657_v47 = vadd.f32 %v1640_v23, %v1386_v41 }
 0x3e9   : > { %v1642_v25 = vpop.f32.mrf.mxu0 }
 0x3ea   : > { %v1658_v50 = vadd.f32 %v1642_v25, %v1387_v45 }
 0x3eb   : > { %v1646_v28 = vpop.f32.mrf.mxu0 }
 0x3ec   : > { %v1659_v17 = vadd.f32 %v1646_v28, %v1388_v7  ;;  %v7474_v7 = vld [vmem:[#allocation12 + $0x140] ss:$8 sps:$4 sm:$0xff]  }
 0x3ed   : > { %v1648_v31 = vpop.f32.mrf.mxu0 }
 0x3ee   : > { %v1660_v14 = vadd.f32 %v1648_v31, %v1389_v3  ;;  %v7473_v3 = vld [vmem:[#allocation12 + $0x44] ss:$8 sps:$4 sm:$0xff]  }
 0x3ef   : > { %v1650_v33 = vpop.f32.mrf.mxu0 }
 0x3f0   : > { %v1661_v10 = vadd.f32 %v1650_v33, %v1390_v2  ;;  %v7450_v2 = vld [vmem:[%s9690_s7 + $0x8] sm:$0xff]  }
 0x3f1   : > { %v1652_v38 = vpop.f32.mrf.mxu0 }
 0x3f2   : > { %v1662_v15 = vadd.f32 %v1652_v38, %v1391_v4  ;;  %v7476_v4 = vld [vmem:[#allocation12 + $0x144] ss:$8 sps:$4 sm:$0xff]  }
 0x406   : > { %v1875_v29 = vpop.f32.mrf.mxu1 }
 0x407   : > { %v1894_v60 = vadd.f32 %v1875_v29, %v1655_v51 }
 0x408   : > { %v1877_v30 = vpop.f32.mrf.mxu1 }
 0x409   : > { %v1895_v54 = vadd.f32 %v1877_v30, %v1656_v27 }
 0x40a   : > { %v1879_v32 = vpop.f32.mrf.mxu1 }
 0x40b   : > { %v1896_v53 = vadd.f32 %v1879_v32, %v1657_v47 }
 0x40c   : > { %v1881_v34 = vpop.f32.mrf.mxu1 }
 0x40d   : > { %v1897_v56 = vadd.f32 %v1881_v34, %v1658_v50 }
 0x40e   : > { %v1885_v39 = vpop.f32.mrf.mxu1 }
 0x40f   : > { %v1898_v24 = vadd.f32 %v1885_v39, %v1659_v17  ;;  %v7488_v17 = vld [vmem:[#allocation12 + $0x124] ss:$8 sps:$4 sm:$0xff]  }
 0x410   : > { %v1887_v48 = vpop.f32.mrf.mxu1 }
 0x411   : > { %v1899_v21 = vadd.f32 %v1887_v48, %v1660_v14  ;;  %v7480_v14 = vld [vmem:[#allocation12 + $0x130] ss:$8 sps:$4 sm:$0xff]  }
 0x412   : > { %v1889_v61 = vpop.f32.mrf.mxu1 }
 0x413   : > { %v2140_v42 = vpop.f32.mrf.mxu0  ;;  %v1900_v19 = vadd.f32 %v1889_v61, %v1661_v10  ;;  %v7461_v61 = vld [vmem:[#allocation12 + $0x64] ss:$8 sps:$4 sm:$0xff]   ;;  %v7479_v10 = vld [vmem:[#allocation12 + $0x34] ss:$8 sps:$4 sm:$0xff]  }
 0x414   : > { %v2159_v58 = vadd.f32 %v2140_v42, %v1894_v60  ;;  %v1891_v11 = vpop.f32.mrf.mxu1  ;;  %v7456_v60 = vld [vmem:[#allocation12 + $0x170] ss:$8 sps:$4 sm:$0xff]  }
 0x415   : > { %v2142_v49 = vpop.f32.mrf.mxu0  ;;  %v1901_v23 = vadd.f32 %v1891_v11, %v1662_v15  ;;  %v7482_v11 = vld [vmem:[#allocation12 + $0x134] ss:$8 sps:$4 sm:$0xff]   ;;  %v7485_v15 = vld [vmem:[#allocation12 + $0x24] ss:$8 sps:$4 sm:$0xff]  }
 0x416   : > { %v2160_v1 = vadd.f32 %v2142_v49, %v1895_v54 }
 0x417   : > { %v2144_v9 = vpop.f32.mrf.mxu0 }
 0x418   : > { %v2161_v62 = vadd.f32 %v2144_v9, %v1896_v53  ;;  %v7455_v9 = vld [vmem:[#allocation12 + $0x74] ss:$8 sps:$4 sm:$0xff]  }
 0x419   : > { %v2146_v63 = vpop.f32.mrf.mxu0 }
 0x41a   : > { %v2162_v52 = vadd.f32 %v2146_v63, %v1897_v56  ;;  %v2167_v12 = vpack.c.bf16 %v2161_v62, %v2159_v58  ;;  %v7464_v62 = vld [vmem:[#allocation12 + $0x164] ss:$8 sps:$4 sm:$0xff]   ;;  %v7459_v63 = vld [vmem:[#allocation12 + $0x60] ss:$8 sps:$4 sm:$0xff]   ;;  %v7465_v58 = vld [vmem:[#allocation12 + $0x50] ss:$8 sps:$4 sm:$0xff]  }
 0x41b   : > { %v2150_v6 = vpop.f32.mrf.mxu0 }
 0x41c   : > { %v2168_v5 = vpack.c.bf16 %v2162_v52, %v2160_v1  ;;  %v2163_v29 = vadd.f32 %v2150_v6, %v1898_v24  ;;  %v7467_v1 = vld [vmem:[#allocation12 + $0x54] ss:$8 sps:$4 sm:$0xff]   ;;  %v7468_v6 = vld [vmem:[#allocation12 + $0x150] ss:$8 sps:$4 sm:$0xff]   ;;  %v7452_v24 = vld [vmem:[%s9690_s7 + $0x18] sm:$0xff]  }
 0x41d   : > { %v2152_v13 = vpop.f32.mrf.mxu0  ;;  %v7470_v52 = vld [vmem:[#allocation12 + $0x154] ss:$8 sps:$4 sm:$0xff]  }
 0x41e   : > { %2587 = vmatprep.mubr.bf16.mxu1 %v2168_v5  ;;  %2640 = vmatprep.mubr.bf16.mxu0 %v2168_v5  ;;  %v2164_v26 = vadd.f32 %v2152_v13, %v1899_v21  ;;  %v7471_v5 = vld [vmem:[#allocation12 + $0x40] ss:$8 sps:$4 sm:$0xff]   ;;  %v7477_v13 = vld [vmem:[#allocation12 + $0x30] ss:$8 sps:$4 sm:$0xff]   ;;  %v7491_v21 = vld [vmem:[#allocation12 + $0x14] ss:$8 sps:$4 sm:$0xff]  }
 0x41f   : > { %v2154_v20 = vpop.f32.mrf.mxu0  ;;  %2588 = vmatmul.mubr.bf16.vlgmr.msra.gmra.mxu1 %v2167_v12  ;;  %2641 = vmatmul.mubr.bf16.vlgmr.msra.gmra.mxu0 %v2167_v12  ;;  %v7451_v12 = vld [vmem:[%s9690_s7 + $0x10] sm:$0xff]  }
 0x420   : > { %v2165_v22 = vadd.f32 %v2154_v20, %v1900_v19  ;;  %v7483_v19 = vld [vmem:[#allocation12 + $0x20] ss:$8 sps:$4 sm:$0xff]  }
 0x421   : > { %v2156_v25 = vpop.f32.mrf.mxu0  ;;  %v7486_v20 = vld [vmem:[#allocation12 + $0x120] ss:$8 sps:$4 sm:$0xff]  }
 0x422   : > { %v2166_v55 = vadd.f32 %v2156_v25, %v1901_v23  ;;  %v2169_v32 = vpack.c.bf16 %v2165_v22, %v2163_v29  ;;  %v7494_v23 = vld [vmem:[#allocation12 + $0x114] ss:$8 sps:$4 sm:$0xff]   ;;  %v7489_v22 = vld [vmem:[#allocation12 + $0x10] ss:$8 sps:$4 sm:$0xff]   ;;  %v7498_v29 = vld [vmem:[#allocation12 + $0x100] ss:$8 sps:$4 sm:$0xff]  }
 0x423   : > { %v7492_v25 = vld [vmem:[#allocation12 + $0x110] ss:$8 sps:$4 sm:$0xff]  }
 0x424   : > { %v2170_v30 = vpack.c.bf16 %v2166_v55, %v2164_v26  ;;  %v7497_v26 = vld [vmem:[#allocation12 + $0x4] ss:$8 sps:$4 sm:$0xff]   ;;  %v7495_v55 = vld [vmem:[#allocation12] ss:$8 sps:$4 sm:$0xff]  }
 0x426   : > { %2597 = vmatprep.mubr.bf16.mxu1 %v2170_v30  ;;  %2650 = vmatprep.mubr.bf16.mxu0 %v2170_v30  ;;  %v7503_v30 = vld [vmem:[#allocation12 + $0xf4] ss:$8 sps:$4 sm:$0xff]  }
 0x427   : > { %2598 = vmatmul.mubr.bf16.gmra.mxu1 %v2169_v32  ;;  %2651 = vmatmul.mubr.bf16.gmra.mxu0 %v2169_v32  ;;  %v7506_v32 = vld [vmem:[#allocation12 + $0x1f4] ss:$8 sps:$4 sm:$0xff]  }
 0x428   : > { %2742 = vmatprep.mubr.bf16.mxu1 %v8133_v43  ;;  %2815 = vmatprep.mubr.bf16.mxu0 %v8133_v43 }
 0x4df   : > { %v2589_v28 = vpop.f32.mrf.mxu1  ;;  %v2642_v31 = vpop.f32.mrf.mxu0 }
 0x4e1   : > { %v2591_v33 = vpop.f32.mrf.mxu1  ;;  %v2644_v34 = vpop.f32.mrf.mxu0 }
 0x4e3   : > { %v2593_v35 = vpop.f32.mrf.mxu1  ;;  %v2646_v36 = vpop.f32.mrf.mxu0 }
 0x4e4   : > { %v2669_v54 = vpack.c.bf16 %v2593_v35, %v2589_v28  ;;  %v2671_v56 = vpack.c.bf16 %v2646_v36, %v2642_v31  ;;  %v7501_v28 = vld [vmem:[#allocation12 + $0xf0] ss:$8 sps:$4 sm:$0xff]   ;;  %v7507_v35 = vld [vmem:[#allocation12 + $0xe0] ss:$8 sps:$4 sm:$0xff]  }
 0x4e5   : > { %v2595_v37 = vpop.f32.mrf.mxu1  ;;  %v2648_v38 = vpop.f32.mrf.mxu0  ;;  %v7504_v31 = vld [vmem:[#allocation12 + $0x1f0] ss:$8 sps:$4 sm:$0xff]   ;;  %v7510_v36 = vld [vmem:[#allocation12 + $0x1e0] ss:$8 sps:$4 sm:$0xff]  }
 0x4e6   : > { %v2670_v51 = vpack.c.bf16 %v2595_v37, %v2591_v33  ;;  %v2672_v53 = vpack.c.bf16 %v2648_v38, %v2644_v34  ;;  %v7509_v33 = vld [vmem:[#allocation12 + $0xe4] ss:$8 sps:$4 sm:$0xff]   ;;  %v7515_v37 = vld [vmem:[#allocation12 + $0xd4] ss:$8 sps:$4 sm:$0xff]  }
 0x4e7   : > { %v2599_v39 = vpop.f32.mrf.mxu1  ;;  %v2652_v40 = vpop.f32.mrf.mxu0  ;;  %v7512_v34 = vld [vmem:[#allocation12 + $0x1e4] ss:$8 sps:$4 sm:$0xff]   ;;  %v7518_v38 = vld [vmem:[#allocation12 + $0x1d4] ss:$8 sps:$4 sm:$0xff]  }
 0x4e9   : > { %v2601_v41 = vpop.f32.mrf.mxu1  ;;  %v2654_v42 = vpop.f32.mrf.mxu0 }
 0x4eb   : > { %v2603_v44 = vpop.f32.mrf.mxu1  ;;  %v2656_v45 = vpop.f32.mrf.mxu0 }
 0x4ec   : > { %v2673_v27 = vpack.c.bf16 %v2603_v44, %v2599_v39  ;;  %v2675_v50 = vpack.c.bf16 %v2656_v45, %v2652_v40  ;;  %v7513_v39 = vld [vmem:[#allocation12 + $0xd0] ss:$8 sps:$4 sm:$0xff]   ;;  %v7519_v44 = vld [vmem:[#allocation12 + $0xc0] ss:$8 sps:$4 sm:$0xff]  }
 0x4ed   : > { %v2605_v46 = vpop.f32.mrf.mxu1  ;;  %v2658_v47 = vpop.f32.mrf.mxu0  ;;  %v7516_v40 = vld [vmem:[#allocation12 + $0x1d0] ss:$8 sps:$4 sm:$0xff]   ;;  %v7522_v45 = vld [vmem:[#allocation12 + $0x1c0] ss:$8 sps:$4 sm:$0xff]  }
 0x4ee   : > { %v2674_v48 = vpack.c.bf16 %v2605_v46, %v2601_v41  ;;  %v2676_v49 = vpack.c.bf16 %v2658_v47, %v2654_v42  ;;  %v7521_v41 = vld [vmem:[#allocation12 + $0xc4] ss:$8 sps:$4 sm:$0xff]   ;;  %v7527_v46 = vld [vmem:[#allocation12 + $0xb4] ss:$8 sps:$4 sm:$0xff]  }
 0x4ef   : > { %v7524_v42 = vld [vmem:[#allocation12 + $0x1c4] ss:$8 sps:$4 sm:$0xff]   ;;  %v7530_v47 = vld [vmem:[#allocation12 + $0x1b4] ss:$8 sps:$4 sm:$0xff]  }
 0x4f0   : > { %2722 = vmatprep.subr.bf16.mxu1 %v2674_v48  ;;  %2795 = vmatprep.subr.bf16.mxu0 %v2676_v49  ;;  %v7525_v48 = vld [vmem:[#allocation12 + $0xb0] ss:$8 sps:$4 sm:$0xff]  }
 0x4f1   : > { %2723 = vmatpush1.bf16.msra.mxu1 %v2673_v27  ;;  %2796 = vmatpush1.bf16.msra.mxu0 %v2675_v50  ;;  %v7528_v49 = vld [vmem:[#allocation12 + $0x1b0] ss:$8 sps:$4 sm:$0xff]   ;;  %v7533_v27 = vld [vmem:[#allocation12 + $0xa4] ss:$8 sps:$4 sm:$0xff]  }
 0x4f2   : > { %2724 = vmatprep.subr.bf16.mxu1 %v2670_v51  ;;  %2797 = vmatprep.subr.bf16.mxu0 %v2672_v53  ;;  %v7536_v50 = vld [vmem:[#allocation12 + $0x1a4] ss:$8 sps:$4 sm:$0xff]   ;;  %v7531_v51 = vld [vmem:[#allocation12 + $0xa0] ss:$8 sps:$4 sm:$0xff]  }
 0x4f3   : > { %v7534_v53 = vld [vmem:[#allocation12 + $0x1a0] ss:$8 sps:$4 sm:$0xff]  }
 0x4f5   : > { %2725 = vmatpush1.bf16.msra.mxu1 %v2669_v54  ;;  %2798 = vmatpush1.bf16.msra.mxu0 %v2671_v56  ;;  %v7537_v54 = vld [vmem:[#allocation12 + $0x90] ss:$8 sps:$4 sm:$0xff]  }
 0x4f6   : > { %3558 = vmatprep.subr.bf16.mxu1 %v7455_v9  ;;  %3631 = vmatprep.subr.bf16.mxu0 %v7458_v18  ;;  %v7539_v9 = vld [vmem:[#allocation12 + $0x94] ss:$8 sps:$4 sm:$0xff]   ;;  %v7540_v56 = vld [vmem:[#allocation12 + $0x190] ss:$8 sps:$4 sm:$0xff]  }
 0x4f7   : > { %v7542_v18 = vld [vmem:[#allocation12 + $0x194] ss:$8 sps:$4 sm:$0xff]  }
 0x4f8   : > { %6546 = vmatmul.mubr.msk.bf16.vlgmr.msra.gmra.mxu1 %vm2697_vm12, %v7449_v57  ;;  %6550 = vmatmul.mubr.msk.bf16.vlgmr.msra.gmra.mxu0 %vm2697_vm12, %v7449_v57  ;;  %v7545_v57 = vld [vmem:[#allocation12 + $0x84] ss:$8 sps:$4 sm:$0xff]  }
 0x4f9   : > { %2752 = vmatprep.mubr.bf16.mxu1 %v8133_v43  ;;  %2825 = vmatprep.mubr.bf16.mxu0 %v8133_v43 }
 0x4fa   : > { %3559 = vmatpush1.bf16.msra.mxu1 %v7453_v59  ;;  %3632 = vmatpush1.bf16.msra.mxu0 %v7456_v60  ;;  %v7548_v59 = vld [vmem:[#allocation12 + $0x184] ss:$8 sps:$4 sm:$0xff]   ;;  %v7543_v60 = vld [vmem:[#allocation12 + $0x80] ss:$8 sps:$4 sm:$0xff]  }
 0x4fb   : > { %3560 = vmatprep.subr.bf16.mxu1 %v7461_v61  ;;  %3633 = vmatprep.subr.bf16.mxu0 %v7464_v62  ;;  %v7546_v61 = vld [vmem:[#allocation12 + $0x180] ss:$8 sps:$4 sm:$0xff]   ;;  %v7551_v62 = vld [vmem:[#allocation12 + $0x274] ss:$8 sps:$4 sm:$0xff]  }
 0x4fe   : > { %3561 = vmatpush1.bf16.msra.mxu1 %v7459_v63  ;;  %3634 = vmatpush1.bf16.msra.mxu0 %v7462_v0  ;;  %v7554_v63 = vld [vmem:[#allocation12 + $0x374] ss:$8 sps:$4 sm:$0xff]  }
 0x4ff   : > { %3562 = vmatprep.subr.bf16.mxu1 %v7467_v1  ;;  %3635 = vmatprep.subr.bf16.mxu0 %v7470_v52 }
 0x500   : > { %6547 = vmatmul.mubr.msk.bf16.gmra.mxu1 %vm2697_vm12, %v7450_v2  ;;  %6551 = vmatmul.mubr.msk.bf16.gmra.mxu0 %vm2697_vm12, %v7450_v2 }
 0x501   : > { %2762 = vmatprep.mubr.bf16.mxu1 %v8133_v43  ;;  %2835 = vmatprep.mubr.bf16.mxu0 %v8133_v43 }
 0x502   : > { %3563 = vmatpush1.bf16.msra.mxu1 %v7465_v58  ;;  %3636 = vmatpush1.bf16.msra.mxu0 %v7468_v6 }
 0x503   : > { %3564 = vmatprep.subr.bf16.mxu1 %v7473_v3  ;;  %3637 = vmatprep.subr.bf16.mxu0 %v7476_v4 }
 0x506   : > { %3565 = vmatpush1.bf16.msra.mxu1 %v7471_v5  ;;  %3638 = vmatpush1.bf16.msra.mxu0 %v7474_v7 }
 0x507   : > { %3566 = vmatprep.subr.bf16.mxu1 %v7479_v10  ;;  %3639 = vmatprep.subr.bf16.mxu0 %v7482_v11 }
 0x508   : > { %6548 = vmatmul.mubr.msk.bf16.gmra.mxu1 %vm2697_vm12, %v7451_v12  ;;  %6552 = vmatmul.mubr.msk.bf16.gmra.mxu0 %vm2697_vm12, %v7451_v12 }
 0x509   : > { %2772 = vmatprep.mubr.bf16.mxu1 %v8133_v43  ;;  %2845 = vmatprep.mubr.bf16.mxu0 %v8133_v43  ;;  %v7500_v43 = vld [vmem:[#allocation12 + $0x104] ss:$8 sps:$4 sm:$0xff]  }
 0x50a   : > { %3567 = vmatpush1.bf16.msra.mxu1 %v7477_v13  ;;  %3640 = vmatpush1.bf16.msra.mxu0 %v7480_v14 }
 0x50b   : > { %3568 = vmatprep.subr.bf16.mxu1 %v7485_v15  ;;  %3641 = vmatprep.subr.bf16.mxu0 %v7488_v17 }
 0x50e   : > { %3569 = vmatpush1.bf16.msra.mxu1 %v7483_v19  ;;  %3642 = vmatpush1.bf16.msra.mxu0 %v7486_v20 }
 0x50f   : > { %3570 = vmatprep.subr.bf16.mxu1 %v7491_v21  ;;  %3643 = vmatprep.subr.bf16.mxu0 %v7494_v23 }
 0x510   : > { %6549 = vmatmul.mubr.msk.bf16.gmra.mxu1 %vm2697_vm12, %v7452_v24  ;;  %6553 = vmatmul.mubr.msk.bf16.gmra.mxu0 %vm2697_vm12, %v7452_v24 }
 0x512   : > { %3571 = vmatpush1.bf16.msra.mxu1 %v7489_v22  ;;  %3644 = vmatpush1.bf16.msra.mxu0 %v7492_v25 }
 0x513   : > { %3572 = vmatprep.subr.bf16.mxu1 %v7497_v26  ;;  %3645 = vmatprep.subr.bf16.mxu0 %v7500_v43 }
 0x516   : > { %3573 = vmatpush1.bf16.msra.mxu1 %v7495_v55  ;;  %3646 = vmatpush1.bf16.msra.mxu0 %v7498_v29 }
 0x517   : > { %3574 = vmatprep.subr.bf16.mxu1 %v7503_v30  ;;  %3647 = vmatprep.subr.bf16.mxu0 %v7506_v32 }
 0x51a   : > { %3575 = vmatpush2.bf16.msra.mxu1 %v7501_v28  ;;  %3648 = vmatpush2.bf16.msra.mxu0 %v7504_v31 }
 0x51b   : > { %3576 = vmatprep.subr.bf16.mxu1 %v7509_v33  ;;  %3649 = vmatprep.subr.bf16.mxu0 %v7512_v34 }
 0x51e   : > { %3577 = vmatpush2.bf16.msra.mxu1 %v7507_v35  ;;  %3650 = vmatpush2.bf16.msra.mxu0 %v7510_v36 }
 0x51f   : > { %3578 = vmatprep.subr.bf16.mxu1 %v7515_v37  ;;  %3651 = vmatprep.subr.bf16.mxu0 %v7518_v38 }
 0x522   : > { %3579 = vmatpush2.bf16.msra.mxu1 %v7513_v39  ;;  %3652 = vmatpush2.bf16.msra.mxu0 %v7516_v40 }
 0x523   : > { %3580 = vmatprep.subr.bf16.mxu1 %v7521_v41  ;;  %3653 = vmatprep.subr.bf16.mxu0 %v7524_v42 }
 0x526   : > { %3581 = vmatpush2.bf16.msra.mxu1 %v7519_v44  ;;  %3654 = vmatpush2.bf16.msra.mxu0 %v7522_v45 }
 0x527   : > { %3582 = vmatprep.subr.bf16.mxu1 %v7527_v46  ;;  %3655 = vmatprep.subr.bf16.mxu0 %v7530_v47 }
 0x52a   : > { %3583 = vmatpush2.bf16.msra.mxu1 %v7525_v48  ;;  %3656 = vmatpush2.bf16.msra.mxu0 %v7528_v49 }
 0x52b   : > { %3584 = vmatprep.subr.bf16.mxu1 %v7533_v27  ;;  %3657 = vmatprep.subr.bf16.mxu0 %v7536_v50 }
 0x52e   : > { %3585 = vmatpush2.bf16.msra.mxu1 %v7531_v51  ;;  %3658 = vmatpush2.bf16.msra.mxu0 %v7534_v53 }
 0x52f   : > { %3586 = vmatprep.subr.bf16.mxu1 %v7539_v9  ;;  %3659 = vmatprep.subr.bf16.mxu0 %v7542_v18 }
 0x532   : > { %3587 = vmatpush2.bf16.msra.mxu1 %v7537_v54  ;;  %3660 = vmatpush2.bf16.msra.mxu0 %v7540_v56 }
 0x533   : > { %3588 = vmatprep.subr.bf16.mxu1 %v7545_v57  ;;  %3661 = vmatprep.subr.bf16.mxu0 %v7548_v59 }
 0x536   : > { %3589 = vmatpush2.bf16.msra.mxu1 %v7543_v60  ;;  %3662 = vmatpush2.bf16.msra.mxu0 %v7546_v61 }
 0x537   : > { %4321 = vmatprep.subr.bf16.mxu1 %v7551_v62  ;;  %4394 = vmatprep.subr.bf16.mxu0 %v7554_v63 }
 0x5b8   : > { %v2744_v0 = vpop.f32.mrf.mxu1  ;;  %v2817_v1 = vpop.f32.mrf.mxu0 }
 0x5b9   : > { %7805 = vtanh.f32 %v2744_v0 }
 0x5ba   : > { %7807 = vtanh.f32 %v2817_v1  ;;  %v2746_v52 = vpop.f32.mrf.mxu1  ;;  %v2819_v2 = vpop.f32.mrf.mxu0 }
 0x5bb   : > { %7809 = vtanh.f32 %v2746_v52 }
 0x5bc   : > { %7811 = vtanh.f32 %v2819_v2  ;;  %v2748_v58 = vpop.f32.mrf.mxu1  ;;  %v2821_v6 = vpop.f32.mrf.mxu0 }
 0x5bd   : > { %7813 = vtanh.f32 %v2748_v58 }
 0x5be   : > { %7815 = vtanh.f32 %v2821_v6  ;;  %v2750_v3 = vpop.f32.mrf.mxu1  ;;  %v2823_v4 = vpop.f32.mrf.mxu0 }
 0x5bf   : > { %7817 = vtanh.f32 %v2750_v3 }
 0x5c0   : > { %7819 = vtanh.f32 %v2823_v4  ;;  %v2754_v5 = vpop.f32.mrf.mxu1  ;;  %v2827_v7 = vpop.f32.mrf.mxu0 }
 0x5c1   : > { %7821 = vtanh.f32 %v2754_v5 }
 0x5c2   : > { %7823 = vtanh.f32 %v2827_v7  ;;  %v2756_v10 = vpop.f32.mrf.mxu1  ;;  %v2829_v11 = vpop.f32.mrf.mxu0 }
 0x5c3   : > { %7825 = vtanh.f32 %v2756_v10 }
 0x5c4   : > { %7827 = vtanh.f32 %v2829_v11  ;;  %v2758_v12 = vpop.f32.mrf.mxu1  ;;  %v2831_v13 = vpop.f32.mrf.mxu0 }
 0x5c5   : > { %7829 = vtanh.f32 %v2758_v12 }
 0x5c6   : > { %v7806_v14 = vpop.eup %7805  ;;  %7831 = vtanh.f32 %v2831_v13  ;;  %v2760_v15 = vpop.f32.mrf.mxu1 }
 0x5c7   : > { %v2833_v17 = vpop.f32.mrf.mxu0  ;;  %v7808_v19 = vpop.eup %7807  ;;  %v2920_v20 = vrot.slane %v7806_v14, 7  ;;  %7833 = vtanh.f32 %v2760_v15 }
 0x5c8   : > { %v7810_v21 = vpop.eup %7809  ;;  %v2922_v23 = vrot.slane %v7808_v19, 7  ;;  %7835 = vtanh.f32 %v2833_v17  ;;  %v2764_v24 = vpop.f32.mrf.mxu1 }
 0x5c9   : > { %v2837_v22 = vpop.f32.mrf.mxu0  ;;  %v7812_v25 = vpop.eup %7811  ;;  %v3052_v26 = vcombine.low %v7806_v14, %v7810_v21  ;;  %3016 = vst [vmem:[#allocation4] sm:$0xfe] %v2920_v20  ;;  %v2921_v43 = vrot.slane %v7810_v21, 7  ;;  %7837 = vtanh.f32 %v2764_v24 }
 0x5ca   : > { %v7814_v55 = vpop.eup %7813  ;;  %v3053_v29 = vcombine.low %v7808_v19, %v7812_v25  ;;  %3018 = vst [vmem:[#allocation4 + $0x10] sm:$0xfe] %v2922_v23  ;;  %v2923_v30 = vrot.slane %v7812_v25, 7  ;;  %7839 = vtanh.f32 %v2837_v22  ;;  %v2766_v32 = vpop.f32.mrf.mxu1 }
 0x5cb   : > { %v2839_v28 = vpop.f32.mrf.mxu0  ;;  %v7816_v31 = vpop.eup %7815  ;;  %v3060_v33 = vrot.slane %v3052_v26, %v8588_v16  ;;  %v2924_v34 = vrot.slane %v7814_v55, 7  ;;  %3017 = vst [vmem:[#allocation4 + $0x8] sm:$0xfe] %v2921_v43  ;;  %7841 = vtanh.f32 %v2766_v32 }
 0x5cc   : > { %v7818_v35 = vpop.eup %7817  ;;  %v3067_v36 = vrot.slane %v3053_v29, %v8588_v16  ;;  %v2928_v37 = vrot.slane %v7816_v31, 7  ;;  %3019 = vst [vmem:[#allocation4 + $0x18] sm:$0xfe] %v2923_v30  ;;  %7843 = vtanh.f32 %v2839_v28  ;;  %v2768_v38 = vpop.f32.mrf.mxu1 }
 0x5cd   : > { %v2841_v39 = vpop.f32.mrf.mxu0  ;;  %v7820_v40 = vpop.eup %7819  ;;  %v8838_v41 = vsel %vm1079_vm7, %v2920_v20, %v2924_v34  ;;  %v2926_v42 = vrot.slane %v7818_v35, 7  ;;  %7845 = vtanh.f32 %v2768_v38  ;;  %v7549_v38 = vld [vmem:[#allocation12 + $0x270] ss:$8 sps:$4 sm:$0xff]  }
 0x5ce   : > { %v7822_v44 = vpop.eup %7821  ;;  %v3068_v45 = vcombine.low %v3060_v33, %v3067_v36  ;;  %3020 = vst [vmem:[#allocation4 + $0x20] sm:$0xff] %v8838_v41  ;;  %v8842_v46 = vsel %vm1079_vm7, %v2922_v23, %v2928_v37  ;;  %v2930_v47 = vrot.slane %v7820_v40, 7  ;;  %7847 = vtanh.f32 %v2841_v39  ;;  %v2770_v48 = vpop.f32.mrf.mxu1  ;;  %v7552_v39 = vld [vmem:[#allocation12 + $0x370] ss:$8 sps:$4 sm:$0xff]  }
 0x5cf   : > { %v2843_v49 = vpop.f32.mrf.mxu0  ;;  %v7824_v27 = vpop.eup %7823  ;;  %3022 = vst [vmem:[#allocation4 + $0x30] sm:$0xff] %v8842_v46  ;;  %v8851_v51 = vsel %vm1079_vm7, %v2921_v43, %v2926_v42  ;;  %v2932_v53 = vrot.slane %v7822_v44, 7  ;;  %7849 = vtanh.f32 %v2770_v48 }
 0x5d0   : > { %v7826_v9 = vpop.eup %7825  ;;  %v3075_v18 = vrot.slane %v3068_v45, %v8588_v16  ;;  %v8855_v54 = vsel %vm1079_vm7, %v2923_v30, %v2930_v47  ;;  %v2936_v56 = vrot.slane %v7824_v27, 7  ;;  %7851 = vtanh.f32 %v2843_v49  ;;  %v2774_v57 = vpop.f32.mrf.mxu1  ;;  %v7557_v49 = vld [vmem:[#allocation12 + $0x264] ss:$8 sps:$4 sm:$0xff]  }
 0x5d1   : > { %v2847_v59 = vpop.f32.mrf.mxu0  ;;  %v7828_v60 = vpop.eup %7827  ;;  %v8858_v61 = vsel %vm1079_vm7, %v2924_v34, %v2932_v53  ;;  %v2934_v62 = vrot.slane %v7826_v9, 7  ;;  %7853 = vtanh.f32 %v2774_v57  ;;  %v7560_v27 = vld [vmem:[#allocation12 + $0x364] ss:$8 sps:$4 sm:$0xff]  }
 0x5d2   : > { %v7830_v63 = vpop.eup %7829  ;;  %3079 = vst.msk [vmem:[#allocation4] ss:$8 sm:$0xf] %vm8845_vm13, %v3075_v18  ;;  %v8863_v0 = vsel %vm1079_vm7, %v2928_v37, %v2936_v56  ;;  %v2938_v1 = vrot.slane %v7828_v60, 7  ;;  %7855 = vtanh.f32 %v2847_v59  ;;  %v2776_v52 = vpop.f32.mrf.mxu1 }
 0x5d3   : > { %v2849_v2 = vpop.f32.mrf.mxu0  ;;  %v7832_v58 = vpop.eup %7831  ;;  %v8866_v6 = vsel %vm1079_vm7, %v2926_v42, %v2934_v62  ;;  %v2940_v3 = vrot.slane %v7830_v63, 7  ;;  %7857 = vtanh.f32 %v2776_v52  ;;  %v7558_v63 = vld [vmem:[#allocation12 + $0x360] ss:$8 sps:$4 sm:$0xff]  }
 0x5d4   : > { %v7834_v4 = vpop.eup %7833  ;;  %v2939_v5 = vsel %vm1079_vm7, %v2930_v47, %v2938_v1  ;;  %v2944_v7 = vrot.slane %v7832_v58, 7  ;;  %7859 = vtanh.f32 %v2849_v2  ;;  %v2778_v10 = vpop.f32.mrf.mxu1 }
 0x5d5   : > { %v2851_v11 = vpop.f32.mrf.mxu0  ;;  %v7836_v12 = vpop.eup %7835  ;;  %v8870_v13 = vsel %vm1079_vm7, %v2932_v53, %v2940_v3  ;;  %v2942_v14 = vrot.slane %v7834_v4, 7  ;;  %7861 = vtanh.f32 %v2778_v10  ;;  %v7563_v4 = vld [vmem:[#allocation12 + $0x254] ss:$8 sps:$4 sm:$0xff]  }
 0x5d6   : > { %v7838_v15 = vpop.eup %7837  ;;  %v8873_v17 = vsel %vm1079_vm7, %v2936_v56, %v2944_v7  ;;  %v2946_v19 = vrot.slane %v7836_v12, 7  ;;  %7863 = vtanh.f32 %v2851_v11  ;;  %v2780_v20 = vpop.f32.mrf.mxu1 }
 0x5d7   : > { %v2853_v21 = vpop.f32.mrf.mxu0  ;;  %v7840_v23 = vpop.eup %7839  ;;  %v2943_v24 = vsel %vm1079_vm7, %v2934_v62, %v2942_v14  ;;  %v2948_v22 = vrot.slane %v7838_v15, 7  ;;  %7865 = vtanh.f32 %v2780_v20  ;;  %v7555_v62 = vld [vmem:[#allocation12 + $0x260] ss:$8 sps:$4 sm:$0xff]  }
 0x5d8   : > { %v7842_v25 = vpop.eup %7841  ;;  %v2947_v26 = vsel %vm1079_vm7, %v2938_v1, %v2946_v19  ;;  %v2952_v43 = vrot.slane %v7840_v23, 7  ;;  %7867 = vtanh.f32 %v2853_v21  ;;  %v8900_v1 = vpack.c.bf16 %v2943_v24, %v8866_v6  ;;  %v7561_v21 = vld [vmem:[#allocation12 + $0x250] ss:$8 sps:$4 sm:$0xff]  }
 0x5d9   : > { %v7844_v55 = vpop.eup %7843  ;;  %v8878_v29 = vsel %vm1079_vm7, %v2940_v3, %v2948_v22  ;;  %v2950_v30 = vrot.slane %v7842_v25, 7  ;;  %v3127_v32 = vld [vmem:[#allocation4 + $0x8] sm:$0xff]  ;;  %v3129_v28 = vld [vmem:[#allocation4 + $0x18] sm:$0xff]  ;;  %v3126_v31 = vld [vmem:[#allocation4] sm:$0xff]  ;;  %v8902_v52 = vpack.c.bf16 %v2947_v26, %v2939_v5  ;;  %v8917_v26 = vpack.c.bf16 %v8870_v13, %v8858_v61 }
 0x5da   : > { %v7846_v33 = vpop.eup %7845  ;;  %v8881_v34 = vsel %vm1079_vm7, %v2944_v7, %v2952_v43  ;;  %v2954_v35 = vrot.slane %v7844_v55, 7  ;;  %v3159_v36 = vpack.c.bf16 %v8851_v51, %v3127_v32  ;;  %v3161_v37 = vpack.c.bf16 %v8855_v54, %v3129_v28  ;;  %v3128_v40 = vld [vmem:[#allocation4 + $0x10] sm:$0xff]  ;;  %v7566_v7 = vld [vmem:[#allocation12 + $0x354] ss:$8 sps:$4 sm:$0xff]   ;;  %v7564_v23 = vld [vmem:[#allocation12 + $0x350] ss:$8 sps:$4 sm:$0xff]  }
 0x5db   : > { %v7848_v42 = vpop.eup %7847  ;;  %v8886_v44 = vsel %vm1079_vm7, %v2942_v14, %v2950_v30  ;;  %v2956_v45 = vrot.slane %v7846_v33, 7  ;;  %v3158_v47 = vpack.c.bf16 %v8838_v41, %v3126_v31  ;;  %v3160_v48 = vpack.c.bf16 %v8842_v46, %v3128_v40  ;;  %v7569_v55 = vld [vmem:[#allocation12 + $0x244] ss:$8 sps:$4 sm:$0xff]   ;;  %v3721_v33 = vld [vmem:[#allocation4 + $0x8] sm:$0xfe] }
 0x5dc   : > { %v7850_v53 = vpop.eup %7849  ;;  %v8891_v9 = vsel %vm1079_vm7, %v2946_v19, %v2954_v35  ;;  %v2960_v18 = vrot.slane %v7848_v42, 7  ;;  %3590 = vmatprep.mubr.bf16.mxu1 %v3159_v36  ;;  %3663 = vmatprep.mubr.bf16.mxu0 %v3161_v37  ;;  %v7567_v40 = vld [vmem:[#allocation12 + $0x240] ss:$8 sps:$4 sm:$0xff]  }
 0x5dd   : > { %v7852_v56 = vpop.eup %7851  ;;  %v8894_v57 = vsel %vm1079_vm7, %v2948_v22, %v2956_v45  ;;  %v2958_v59 = vrot.slane %v7850_v53, 7  ;;  %3591 = vmatmul.mubr.bf16.vlgmr.msra.gmra.mxu1 %v3158_v47  ;;  %3664 = vmatmul.mubr.bf16.vlgmr.msra.gmra.mxu0 %v3160_v48  ;;  %v7570_v42 = vld [vmem:[#allocation12 + $0x340] ss:$8 sps:$4 sm:$0xff]  }
 0x5de   : > { %v7854_v60 = vpop.eup %7853  ;;  %v8897_v41 = vsel %vm1079_vm7, %v2952_v43, %v2960_v18  ;;  %v2962_v46 = vrot.slane %v7852_v56, 7  ;;  %4322 = vmatpush1.bf16.msra.mxu1 %v7549_v38  ;;  %4395 = vmatpush1.bf16.msra.mxu0 %v7552_v39  ;;  %v8921_v43 = vpack.c.bf16 %v8873_v17, %v8863_v0  ;;  %v3723_v0 = vld [vmem:[#allocation4 + $0x18] sm:$0xfe] }
 0x5df   : > { %v7856_v2 = vpop.eup %7855  ;;  %v2959_v58 = vsel %vm1079_vm7, %v2950_v30, %v2958_v59  ;;  %v2964_v3 = vrot.slane %v7854_v60, 7  ;;  %4323 = vmatprep.subr.bf16.mxu1 %v7557_v49  ;;  %4396 = vmatprep.subr.bf16.mxu0 %v7560_v27  ;;  %v7572_v30 = vld [vmem:[#allocation12 + $0x344] ss:$8 sps:$4 sm:$0xff]   ;;  %v7578_v49 = vld [vmem:[#allocation12 + $0x334] ss:$8 sps:$4 sm:$0xff]   ;;  %v3757_v27 = vpack.c.bf16 %v8851_v51, %v3721_v33 }
 0x5e0   : > { %v7858_v10 = vpop.eup %7857  ;;  %v2963_v11 = vsel %vm1079_vm7, %v2954_v35, %v2962_v46  ;;  %v2968_v12 = vrot.slane %v7856_v2, 7  ;;  %3600 = vmatprep.mubr.bf16.mxu1 %v8900_v1  ;;  %3673 = vmatprep.mubr.bf16.mxu0 %v8902_v52  ;;  %v8930_v61 = vpack.c.bf16 %v2959_v58, %v8886_v44  ;;  %v7575_v44 = vld [vmem:[#allocation12 + $0x234] ss:$8 sps:$4 sm:$0xff]   ;;  %v7576_v60 = vld [vmem:[#allocation12 + $0x330] ss:$8 sps:$4 sm:$0xff]  }
 0x5e1   : > { %v7860_v6 = vpop.eup %7859  ;;  %v8909_v5 = vsel %vm1079_vm7, %v2956_v45, %v2964_v3  ;;  %v2966_v14 = vrot.slane %v7858_v10, 7  ;;  %v8934_v45 = vpack.c.bf16 %v2963_v11, %v8891_v9  ;;  %v3759_v9 = vpack.c.bf16 %v8855_v54, %v3723_v0  ;;  %v7584_v2 = vld [vmem:[#allocation12 + $0x324] ss:$8 sps:$4 sm:$0xff]   ;;  %v7591_v33 = vld [vmem:[#allocation12 + $0x200] ss:$8 sps:$4 sm:$0xff]  }
 0x5e2   : > { %v7862_v15 = vpop.eup %7861  ;;  %v8912_v19 = vsel %vm1079_vm7, %v2960_v18, %v2968_v12  ;;  %v2970_v20 = vrot.slane %v7860_v6, 7  ;;  %4324 = vmatpush1.bf16.msra.mxu1 %v7555_v62  ;;  %4397 = vmatpush1.bf16.msra.mxu0 %v7558_v63  ;;  %v8950_v62 = vpack.c.bf16 %v8897_v41, %v8881_v34  ;;  %v7581_v63 = vld [vmem:[#allocation12 + $0x224] ss:$8 sps:$4 sm:$0xff]   ;;  %v3856_v58 = vshll.u32 %v3757_v27, 16  ;;  %v7582_v34 = vld [vmem:[#allocation12 + $0x320] ss:$8 sps:$4 sm:$0xff]  }
 0x5e3   : > { %v7864_v24 = vpop.eup %7863  ;;  %v2967_v22 = vsel %vm1079_vm7, %v2958_v59, %v2966_v14  ;;  %v2972_v25 = vrot.slane %v7862_v15, 7  ;;  %4325 = vmatprep.subr.bf16.mxu1 %v7563_v4  ;;  %4398 = vmatprep.subr.bf16.mxu0 %v7566_v7  ;;  %v7573_v59 = vld [vmem:[#allocation12 + $0x230] ss:$8 sps:$4 sm:$0xff]   ;;  %v3880_v10 = vshll.u32 %v3759_v9, 16  ;;  %v3861_v41 = vshll.u32 %v8900_v1, 16 }
 0x5e4   : > { %v7866_v32 = vpop.eup %7865  ;;  %v2971_v28 = vsel %vm1079_vm7, %v2962_v46, %v2970_v20  ;;  %v2976_v31 = vrot.slane %v7864_v24, 7  ;;  %v8946_v46 = vpack.c.bf16 %v8894_v57, %v8878_v29  ;;  %v7579_v57 = vld [vmem:[#allocation12 + $0x220] ss:$8 sps:$4 sm:$0xff]   ;;  %v3885_v11 = vshll.u32 %v8902_v52, 16  ;;  %v7590_v6 = vld [vmem:[#allocation12 + $0x314] ss:$8 sps:$4 sm:$0xff]  }
 0x5e5   : > { %v7868_v35 = vpop.eup %7867  ;;  %v8925_v36 = vsel %vm1079_vm7, %v2964_v3, %v2972_v25  ;;  %3048 = vst [vmem:[#allocation4 + $0x100] sm:$0x1] %v2972_v25  ;;  %v2974_v37 = vrot.slane %v7866_v32, 7  ;;  %v3081_v38 = vcombine.high %v7862_v15, %v7866_v32  ;;  %3601 = vmatmul.mubr.bf16.gmra.mxu1 %v8917_v26  ;;  %3674 = vmatmul.mubr.bf16.gmra.mxu0 %v8921_v43  ;;  %v3882_v15 = vrot.slane %v3880_v10, 1  ;;  %v4486_v0 = vld [vmem:[#allocation4 + $0x18] sm:$0xfc] }
 0x5e6   : > { %v2977_v13 = vsel %vm1079_vm7, %v2968_v12, %v2976_v31  ;;  %3050 = vst [vmem:[#allocation4 + $0x110] sm:$0x1] %v2976_v31  ;;  %v2978_v17 = vrot.slane %v7868_v35, 7  ;;  %v3082_v39 = vcombine.high %v7864_v24, %v7868_v35  ;;  %4326 = vmatpush1.bf16.msra.mxu1 %v7561_v21  ;;  %4399 = vmatpush1.bf16.msra.mxu0 %v7564_v23  ;;  %v7587_v12 = vld [vmem:[#allocation12 + $0x214] ss:$8 sps:$4 sm:$0xff]   ;;  %v8972_v50 = vrot.slane %v3861_v41, 1 }
 0x5e7   : > { %v2975_v47 = vsel %vm1079_vm7, %v2966_v14, %v2974_v37  ;;  %3049 = vst [vmem:[#allocation4 + $0x108] sm:$0x1] %v2974_v37  ;;  %v3089_v48 = vrot.slane %v3081_v38, %v8588_v16  ;;  %4327 = vmatprep.subr.bf16.mxu1 %v7569_v55  ;;  %4400 = vmatprep.subr.bf16.mxu0 %v7572_v30  ;;  %v3858_v14 = vrot.slane %v3856_v58, 1  ;;  %v7588_v24 = vld [vmem:[#allocation12 + $0x310] ss:$8 sps:$4 sm:$0xff]   ;;  %v3878_v25 = vshrl.u32 %v3759_v9, 16 }
 0x5e8   : > { %v2979_v53 = vsel %vm1079_vm7, %v2970_v20, %v2978_v17  ;;  %3051 = vst [vmem:[#allocation4 + $0x118] sm:$0x1] %v2978_v17  ;;  %v3096_v18 = vrot.slane %v3082_v39, %v8588_v16  ;;  %3610 = vmatprep.mubr.bf16.mxu1 %v8930_v61  ;;  %3683 = vmatprep.mubr.bf16.mxu0 %v8934_v45  ;;  %v7585_v20 = vld [vmem:[#allocation12 + $0x210] ss:$8 sps:$4 sm:$0xff]   ;;  %v8974_v55 = vrot.slane %v3885_v11, 1  ;;  %v4594_v9 = vrot.slane %v8902_v52, 1 }
 0x5e9   : > { %v8953_v4 = vpack.c.bf16 %v2975_v47, %v2967_v22  ;;  %v8955_v7 = vpack.c.bf16 %v2979_v53, %v2971_v28  ;;  %v8967_v21 = vpack.c.bf16 %v8925_v36, %v8909_v5  ;;  %v8970_v23 = vpack.c.bf16 %v2977_v13, %v8912_v19  ;;  %v7593_v28 = vld [vmem:[#allocation12 + $0x204] ss:$8 sps:$4 sm:$0xff]   ;;  %v7594_v35 = vld [vmem:[#allocation12 + $0x300] ss:$8 sps:$4 sm:$0xff]   ;;  %v7599_v36 = vld [vmem:[#allocation12 + $0x2f4] ss:$8 sps:$4 sm:$0xff]  }
 0x5ea   : > { %v3097_v56 = vcombine.high %v3089_v48, %v3096_v18  ;;  %4328 = vmatpush1.bf16.msra.mxu1 %v7567_v40  ;;  %4401 = vmatpush1.bf16.msra.mxu0 %v7570_v42  ;;  %v3854_v22 = vshrl.u32 %v3757_v27, 16  ;;  %v3883_v32 = vor.u32 %v3882_v15, %v3878_v25  ;;  %v7596_v31 = vld [vmem:[#allocation12 + $0x304] ss:$8 sps:$4 sm:$0xff]   ;;  %v7602_v37 = vld [vmem:[#allocation12 + $0x3f4] ss:$8 sps:$4 sm:$0xff]   ;;  %v4494_v27 = vpack.c.bf16 %v8855_v54, %v4486_v0 }
 0x5eb   : > { %4329 = vmatprep.subr.bf16.mxu1 %v7575_v44  ;;  %4402 = vmatprep.subr.bf16.mxu0 %v7578_v49  ;;  %v4484_v38 = vld [vmem:[#allocation4 + $0x8] sm:$0xfc]  ;;  %v8982_v39 = vld [vmem:[#allocation4 + $0x20] sm:$0xff]  ;;  %v7605_v42 = vld [vmem:[#allocation12 + $0x2e4] ss:$8 sps:$4 sm:$0xff]   ;;  %v4588_v44 = vrot.slane %v8900_v1, 1 }
 0x5ec   : > { %v3104_v3 = vrot.slane %v3097_v56, %v8588_v16  ;;  %v3859_v30 = vor.u32 %v3858_v14, %v3854_v22  ;;  %v3888_v19 = vsel %vm1433_vm10, %v3883_v32, %v8974_v55  ;;  %v7597_v13 = vld [vmem:[#allocation12 + $0x2f0] ss:$8 sps:$4 sm:$0xff]   ;;  %v4492_v40 = vpack.c.bf16 %v8851_v51, %v4484_v38  ;;  %v7608_v47 = vld [vmem:[#allocation12 + $0x3e4] ss:$8 sps:$4 sm:$0xff]   ;;  %v7603_v18 = vld [vmem:[#allocation12 + $0x2e0] ss:$8 sps:$4 sm:$0xff]  }
 0x5ed   : > { %3611 = vmatmul.mubr.bf16.gmra.mxu1 %v8946_v46  ;;  %3684 = vmatmul.mubr.bf16.gmra.mxu0 %v8950_v62  ;;  %v7600_v17 = vld [vmem:[#allocation12 + $0x3f0] ss:$8 sps:$4 sm:$0xff]   ;;  %v8985_v48 = vld [vmem:[#allocation4 + $0x30] sm:$0xff]  ;;  %v4593_v58 = vrot.slane %v4494_v27, 1  ;;  %v7614_v54 = vld [vmem:[#allocation12 + $0x3d4] ss:$8 sps:$4 sm:$0xff]  }
 0x5ee   : > { %v3105_v29 = vcombine.high %v3104_v3, %v3104_v3  ;;  %4330 = vmatpush1.bf16.msra.mxu1 %v7573_v59  ;;  %4403 = vmatpush1.bf16.msra.mxu0 %v7576_v60  ;;  %v3864_v5 = vsel %vm1433_vm10, %v3859_v30, %v8972_v50  ;;  %v4587_v49 = vrot.slane %v4492_v40, 1  ;;  %v4483_v53 = vld [vmem:[#allocation4] sm:$0xfc]  ;;  %v4585_v59 = vrot.slane %v8917_v26, 1  ;;  %v4485_v51 = vld [vmem:[#allocation4 + $0x10] sm:$0xfc] }
 0x5ef   : > { %4331 = vmatprep.subr.bf16.mxu1 %v7581_v63  ;;  %4404 = vmatprep.subr.bf16.mxu0 %v7584_v2  ;;  %v4491_v56 = vpack.c.bf16 %v8982_v39, %v4483_v53  ;;  %v7606_v60 = vld [vmem:[#allocation12 + $0x3e0] ss:$8 sps:$4 sm:$0xff]   ;;  %v7611_v63 = vld [vmem:[#allocation12 + $0x2d4] ss:$8 sps:$4 sm:$0xff]   ;;  %v4493_v3 = vpack.c.bf16 %v8985_v48, %v4485_v51  ;;  %v4602_v11 = vrot.slane %v8934_v45, 1  ;;  %v4600_v15 = vrot.slane %v8950_v62, 1 }
 0x5f0   : > { %3108 = vst.msk [vmem:[#allocation4 + $0x101] ss:$8 sm:$0xf] %vm8845_vm13, %v3105_v29  ;;  %3620 = vmatprep.mubr.bf16.mxu1 %v8953_v4  ;;  %3693 = vmatprep.mubr.bf16.mxu0 %v8955_v7  ;;  %v8993_v2 = vsel %vm1702_vm9, %v4587_v49, %v4588_v44  ;;  %v4591_v29 = vrot.slane %v8921_v43, 1  ;;  %v7612_v22 = vld [vmem:[#allocation12 + $0x3d0] ss:$8 sps:$4 sm:$0xff]  }
 0x5f1   : > { %v4584_v10 = vrot.slane %v4491_v56, 1  ;;  %v4590_v41 = vrot.slane %v4493_v3, 1  ;;  %v9015_v30 = vsel %vm1702_vm9, %v4594_v9, %v4602_v11  ;;  %v7623_v40 = vld [vmem:[#allocation12 + $0x2b4] ss:$8 sps:$4 sm:$0xff]   ;;  %v7629_v27 = vld [vmem:[#allocation12 + $0x2a4] ss:$8 sps:$4 sm:$0xff]  }
 0x5f2   : > { %4332 = vmatpush1.bf16.msra.mxu1 %v7579_v57  ;;  %4405 = vmatpush1.bf16.msra.mxu0 %v7582_v34  ;;  %v4598_v57 = vrot.slane %v8930_v61, 1  ;;  %v8999_v34 = vsel %vm1702_vm9, %v4593_v58, %v4594_v9  ;;  %v3720_v49 = vld [vmem:[#allocation4] sm:$0xfe]  ;;  %v7632_v53 = vld [vmem:[#allocation12 + $0x3a4] ss:$8 sps:$4 sm:$0xff]  }
 0x5f3   : > { %4333 = vmatprep.subr.bf16.mxu1 %v7587_v12  ;;  %4406 = vmatprep.subr.bf16.mxu0 %v7590_v6  ;;  %v4596_v12 = vrot.slane %v8946_v46, 1  ;;  %v9004_v6 = vsel %vm1702_vm9, %v4584_v10, %v4585_v59  ;;  %v9012_v25 = vsel %vm1702_vm9, %v4590_v41, %v4591_v29  ;;  %v3722_v9 = vld [vmem:[#allocation4 + $0x10] sm:$0xfe]  ;;  %v7636_v10 = vld [vmem:[#allocation12 + $0x390] ss:$8 sps:$4 sm:$0xff]  }
 0x5f4   : > { %v9007_v14 = vsel %vm1702_vm9, %v4588_v44, %v4598_v57  ;;  %v7624_v44 = vld [vmem:[#allocation12 + $0x3b0] ss:$8 sps:$4 sm:$0xff]   ;;  %v3758_v56 = vpack.c.bf16 %v8985_v48, %v3722_v9  ;;  %v7630_v51 = vld [vmem:[#allocation12 + $0x3a0] ss:$8 sps:$4 sm:$0xff]   ;;  %v3849_v48 = vshll.u32 %v8917_v26, 16 }
 0x5f5   : > { %3621 = vmatmul.mubr.bf16.gmra.mxu1 %v8967_v21  ;;  %3694 = vmatmul.mubr.bf16.gmra.mxu0 %v8970_v23  ;;  %v9018_v32 = vsel %vm1702_vm9, %v4585_v59, %v4596_v12  ;;  %v7627_v59 = vld [vmem:[#allocation12 + $0x2a0] ss:$8 sps:$4 sm:$0xff]   ;;  %v7645_v9 = vld [vmem:[#allocation12 + $0x470] ss:$8 sps:$4 sm:$0xff]  }
 0x5f6   : > { %4334 = vmatpush1.bf16.msra.mxu1 %v7585_v20  ;;  %4407 = vmatpush1.bf16.msra.mxu0 %v7588_v24  ;;  %v4606_v20 = vrot.slane %v8953_v4, 1  ;;  %v7609_v24 = vld [vmem:[#allocation12 + $0x2d0] ss:$8 sps:$4 sm:$0xff]   ;;  %v3868_v3 = vshll.u32 %v3758_v56, 16 }
 0x5f7   : > { %4353 = vmatprep.mubr.bf16.mxu1 %v3864_v5  ;;  %4426 = vmatprep.mubr.bf16.mxu0 %v3888_v19  ;;  %v7620_v5 = vld [vmem:[#allocation12 + $0x3c4] ss:$8 sps:$4 sm:$0xff]   ;;  %v9022_v19 = vsel %vm1702_vm9, %v4591_v29, %v4600_v15  ;;  %v3112_v16 = vld [vmem:[#allocation14 + $0x10] sm:$0xff] }
 0x5f8   : > { %4335 = vmatprep.subr.bf16.mxu1 %v7593_v28  ;;  %4408 = vmatprep.subr.bf16.mxu0 %v7596_v31  ;;  %v4610_v28 = vrot.slane %v8955_v7, 1  ;;  %v7617_v31 = vld [vmem:[#allocation12 + $0x2c4] ss:$8 sps:$4 sm:$0xff]   ;;  %v3870_v41 = vrot.slane %v3868_v3, 1  ;;  %v3909_v3 = vshll.u32 %v8950_v62, 16 }
 0x5f9   : > { %v7644_v29 = vld [vmem:[#allocation12 + $0x384] ss:$8 sps:$4 sm:$0xff]  }
 0x5fa   : > { %4336 = vmatpush1.bf16.msra.mxu1 %v7591_v33  ;;  %4409 = vmatpush1.bf16.msra.mxu0 %v7594_v35  ;;  %v9027_v33 = vsel %vm1702_vm9, %v4598_v57, %v4606_v20  ;;  %v4604_v35 = vrot.slane %v8967_v21, 1 }
 0x5fb   : > { %4337 = vmatprep.subr.bf16.mxu1 %v7599_v36  ;;  %4410 = vmatprep.subr.bf16.mxu0 %v7602_v37  ;;  %v4608_v36 = vrot.slane %v8970_v23, 1  ;;  %v9034_v37 = vsel %vm1702_vm9, %v4602_v11, %v4610_v28 }
 0x5fc   : > { %v9039_v38 = vsel %vm1702_vm9, %v4596_v12, %v4604_v35  ;;  %v3901_v12 = vshll.u32 %v8930_v61, 16 }
 0x5fd   : > { %v9044_v0 = vsel %vm1702_vm9, %v4600_v15, %v4608_v36  ;;  %v3917_v15 = vshll.u32 %v8934_v45, 16 }
 0x5fe   : > { %4338 = vmatpush2.bf16.msra.mxu1 %v7597_v13  ;;  %4411 = vmatpush2.bf16.msra.mxu0 %v7600_v17  ;;  %v7615_v13 = vld [vmem:[#allocation12 + $0x2c0] ss:$8 sps:$4 sm:$0xff]  }
 0x5ff   : > { %4339 = vmatprep.subr.bf16.mxu1 %v7605_v42  ;;  %4412 = vmatprep.subr.bf16.mxu0 %v7608_v47  ;;  %v7618_v17 = vld [vmem:[#allocation12 + $0x3c0] ss:$8 sps:$4 sm:$0xff]   ;;  %v7626_v42 = vld [vmem:[#allocation12 + $0x3b4] ss:$8 sps:$4 sm:$0xff]   ;;  %v7621_v47 = vld [vmem:[#allocation12 + $0x2b0] ss:$8 sps:$4 sm:$0xff]  }
 0x602   : > { %4340 = vmatpush2.bf16.msra.mxu1 %v7603_v18  ;;  %4413 = vmatpush2.bf16.msra.mxu0 %v7606_v60  ;;  %v3756_v18 = vpack.c.bf16 %v8982_v39, %v3720_v49  ;;  %v7635_v60 = vld [vmem:[#allocation12 + $0x294] ss:$8 sps:$4 sm:$0xff]   ;;  %v7641_v39 = vld [vmem:[#allocation12 + $0x284] ss:$8 sps:$4 sm:$0xff]   ;;  %v3903_v49 = vrot.slane %v3901_v12, 1  ;;  %v3905_v12 = vshrl.u32 %v8921_v43, 16 }
 0x603   : > { %4341 = vmatprep.subr.bf16.mxu1 %v7611_v63  ;;  %4414 = vmatprep.subr.bf16.mxu0 %v7614_v54  ;;  %v7638_v63 = vld [vmem:[#allocation12 + $0x394] ss:$8 sps:$4 sm:$0xff]   ;;  %v7633_v54 = vld [vmem:[#allocation12 + $0x290] ss:$8 sps:$4 sm:$0xff]  }
 0x604   : > { %v3844_v58 = vshll.u32 %v3756_v18, 16  ;;  %v3842_v11 = vshrl.u32 %v3756_v18, 16 }
 0x606   : > { %4342 = vmatpush2.bf16.msra.mxu1 %v7609_v24  ;;  %4415 = vmatpush2.bf16.msra.mxu0 %v7612_v22  ;;  %v3846_v57 = vrot.slane %v3844_v58, 1  ;;  %v7639_v24 = vld [vmem:[#allocation12 + $0x280] ss:$8 sps:$4 sm:$0xff]  }
 0x607   : > { %4343 = vmatprep.subr.bf16.mxu1 %v7617_v31  ;;  %4416 = vmatprep.subr.bf16.mxu0 %v7620_v5  ;;  %v7642_v22 = vld [vmem:[#allocation12 + $0x380] ss:$8 sps:$4 sm:$0xff]   ;;  %v3866_v31 = vshrl.u32 %v3758_v56, 16  ;;  %v3873_v5 = vshll.u32 %v8921_v43, 16  ;;  %v3921_v43 = vshrl.u32 %v8946_v46, 16 }
 0x609   : > { %v3875_v18 = vrot.slane %v3873_v5, 1 }
 0x60a   : > { %4344 = vmatpush2.bf16.msra.mxu1 %v7615_v13  ;;  %4417 = vmatpush2.bf16.msra.mxu0 %v7618_v17  ;;  %v3847_v13 = vor.u32 %v3846_v57, %v3842_v11  ;;  %v7647_v17 = vld [vmem:[#allocation12 + $0x474] ss:$8 sps:$4 sm:$0xff]   ;;  %v7651_v57 = vld [vmem:[#allocation12 + $0x460] ss:$8 sps:$4 sm:$0xff]   ;;  %v3889_v11 = vshrl.u32 %v8917_v26, 16 }
 0x60b   : > { %4345 = vmatprep.subr.bf16.mxu1 %v7623_v40  ;;  %4418 = vmatprep.subr.bf16.mxu0 %v7626_v42  ;;  %v7650_v40 = vld [vmem:[#allocation12 + $0x574] ss:$8 sps:$4 sm:$0xff]   ;;  %v3851_v42 = vrot.slane %v3849_v48, 1  ;;  %v3753_v48 = vld [vmem:[#allocation4 + $0x108] sm:$0x1] }
 0x60c   : > { %v7665_v26 = vld [vmem:[#allocation12 + $0x444] ss:$8 sps:$4 sm:$0xff]  }
 0x60d   : > { %v3852_v56 = vsel %vm1433_vm10, %v3847_v13, %v3851_v42 }
 0x60e   : > { %4346 = vmatpush2.bf16.msra.mxu1 %v7621_v47  ;;  %4419 = vmatpush2.bf16.msra.mxu0 %v7624_v44  ;;  %v3871_v47 = vor.u32 %v3870_v41, %v3866_v31  ;;  %v3897_v44 = vshrl.u32 %v8900_v1, 16  ;;  %v3893_v1 = vshll.u32 %v8946_v46, 16  ;;  %v3755_v41 = vld [vmem:[#allocation4 + $0x118] sm:$0x1] }
 0x60f   : > { %4347 = vmatprep.subr.bf16.mxu1 %v7629_v27  ;;  %4420 = vmatprep.subr.bf16.mxu0 %v7632_v53  ;;  %v3913_v27 = vshrl.u32 %v8902_v52, 16  ;;  %v3919_v53 = vrot.slane %v3917_v15, 1  ;;  %v7656_v52 = vld [vmem:[#allocation12 + $0x564] ss:$8 sps:$4 sm:$0xff]   ;;  %v7659_v15 = vld [vmem:[#allocation12 + $0x454] ss:$8 sps:$4 sm:$0xff]  }
 0x610   : > { %v3876_v58 = vsel %vm1433_vm10, %v3871_v47, %v3875_v18  ;;  %v3775_v47 = vpack.c.bf16 %v3755_v41, %v3755_v41 }
 0x612   : > { %4348 = vmatpush2.bf16.msra.mxu1 %v7627_v59  ;;  %4421 = vmatpush2.bf16.msra.mxu0 %v7630_v51  ;;  %v7648_v59 = vld [vmem:[#allocation12 + $0x570] ss:$8 sps:$4 sm:$0xff]   ;;  %v3899_v51 = vor.u32 %v3897_v44, %v8972_v50  ;;  %v3891_v44 = vor.u32 %v3889_v11, %v3851_v42 }
 0x613   : > { %4349 = vmatprep.subr.bf16.mxu1 %v7635_v60  ;;  %4422 = vmatprep.subr.bf16.mxu0 %v7638_v63  ;;  %v3915_v60 = vor.u32 %v3913_v27, %v8974_v55  ;;  %v7653_v63 = vld [vmem:[#allocation12 + $0x464] ss:$8 sps:$4 sm:$0xff]   ;;  %v3945_v55 = vshrl.u32 %v8934_v45, 16  ;;  %v7662_v45 = vld [vmem:[#allocation12 + $0x554] ss:$8 sps:$4 sm:$0xff]   ;;  %v3907_v27 = vor.u32 %v3905_v12, %v3875_v18 }
 0x614   : > { %v7668_v18 = vld [vmem:[#allocation12 + $0x544] ss:$8 sps:$4 sm:$0xff]  }
 0x615   : > { %v3920_v50 = vsel %vm1433_vm10, %v3915_v60, %v3919_v53  ;;  %v3947_v13 = vor.u32 %v3945_v55, %v3919_v53 }
 0x616   : > { %4350 = vmatpush2.bf16.msra.mxu1 %v7633_v54  ;;  %4423 = vmatpush2.bf16.msra.mxu0 %v7636_v10  ;;  %v3929_v54 = vshrl.u32 %v8930_v61, 16  ;;  %v3933_v10 = vshll.u32 %v8953_v4, 16  ;;  %v7654_v61 = vld [vmem:[#allocation12 + $0x560] ss:$8 sps:$4 sm:$0xff]  }
 0x617   : > { %4351 = vmatprep.subr.bf16.mxu1 %v7641_v39  ;;  %4424 = vmatprep.subr.bf16.mxu0 %v7644_v29  ;;  %v3904_v39 = vsel %vm1433_vm10, %v3899_v51, %v3903_v49  ;;  %v3949_v29 = vshll.u32 %v8955_v7, 16  ;;  %v3937_v51 = vshrl.u32 %v8950_v62, 16  ;;  %v3977_v62 = vshrl.u32 %v8955_v7, 16  ;;  %v7742_v7 = vld [vmem:[%s9694_s11 + $0x38] sm:$0xff]  }
 0x618   : > { %v3931_v31 = vor.u32 %v3929_v54, %v3903_v49  ;;  %v3935_v5 = vrot.slane %v3933_v10, 1  ;;  %v3941_v49 = vshll.u32 %v8970_v23, 16  ;;  %v7663_v54 = vld [vmem:[#allocation12 + $0x440] ss:$8 sps:$4 sm:$0xff]  }
 0x619   : > { %v7666_v10 = vld [vmem:[#allocation12 + $0x540] ss:$8 sps:$4 sm:$0xff]  }
 0x61a   : > { %4352 = vmatpush2.bf16.msra.mxu1 %v7639_v24  ;;  %4425 = vmatpush2.bf16.msra.mxu0 %v7642_v22  ;;  %v3895_v24 = vrot.slane %v3893_v1, 1  ;;  %v3911_v22 = vrot.slane %v3909_v3, 1  ;;  %v3936_v42 = vsel %vm1433_vm10, %v3931_v31, %v3935_v5  ;;  %v3752_v1 = vld [vmem:[#allocation4 + $0x100] sm:$0x1]  ;;  %v3754_v3 = vld [vmem:[#allocation4 + $0x110] sm:$0x1] }
 0x61b   : > { %4956 = vmatprep.subr.bf16.mxu1 %v7647_v17  ;;  %5029 = vmatprep.subr.bf16.mxu0 %v7650_v40  ;;  %v3951_v17 = vrot.slane %v3949_v29, 1  ;;  %v3773_v40 = vpack.c.bf16 %v3753_v48, %v3753_v48  ;;  %v3943_v29 = vrot.slane %v3941_v49, 1  ;;  %v7674_v48 = vld [vmem:[#allocation12 + $0x534] ss:$8 sps:$4 sm:$0xff]   ;;  %v3772_v41 = vpack.c.bf16 %v3752_v1, %v3752_v1 }
 0x61c   : > { %v3896_v53 = vsel %vm1433_vm10, %v3891_v44, %v3895_v24  ;;  %v3912_v60 = vsel %vm1433_vm10, %v3907_v27, %v3911_v22  ;;  %v3939_v55 = vor.u32 %v3937_v51, %v3911_v22  ;;  %v7677_v22 = vld [vmem:[#allocation12 + $0x424] ss:$8 sps:$4 sm:$0xff]   ;;  %v3953_v44 = vshrl.u32 %v8967_v21, 16 }
 0x61d   : > { %4354 = vmatmul.mubr.bf16.vlgmr.msra.gmra.mxu1 %v3852_v56  ;;  %4427 = vmatmul.mubr.bf16.vlgmr.msra.gmra.mxu0 %v3876_v58  ;;  %v7660_v56 = vld [vmem:[#allocation12 + $0x550] ss:$8 sps:$4 sm:$0xff]   ;;  %v3952_v46 = vsel %vm1433_vm10, %v3947_v13, %v3951_v17  ;;  %v3965_v58 = vshll.u32 %v3773_v40, 16  ;;  %v3957_v27 = vshll.u32 %v3772_v41, 16 }
 0x61e   : > { %4363 = vmatprep.mubr.bf16.mxu1 %v3904_v39  ;;  %4436 = vmatprep.mubr.bf16.mxu0 %v3920_v50  ;;  %v3923_v39 = vor.u32 %v3921_v43, %v3895_v24  ;;  %v3944_v13 = vsel %vm1433_vm10, %v3939_v55, %v3943_v29  ;;  %v7669_v24 = vld [vmem:[#allocation12 + $0x430] ss:$8 sps:$4 sm:$0xff]   ;;  %v7678_v43 = vld [vmem:[#allocation12 + $0x520] ss:$8 sps:$4 sm:$0xff]   ;;  %v7701_v55 = vld [vmem:[#allocation12 + $0x4e4] ss:$8 sps:$4 sm:$0xff]  }
 0x61f   : > { %4957 = vmatpush1.bf16.msra.mxu1 %v7645_v9  ;;  %5030 = vmatpush1.bf16.msra.mxu0 %v7648_v59  ;;  %v7657_v9 = vld [vmem:[#allocation12 + $0x450] ss:$8 sps:$4 sm:$0xff]   ;;  %v3925_v59 = vshll.u32 %v8967_v21, 16  ;;  %v3967_v12 = vrot.slane %v3965_v58, 1  ;;  %v3959_v51 = vrot.slane %v3957_v27, 1 }
 0x620   : > { %4958 = vmatprep.subr.bf16.mxu1 %v7653_v63  ;;  %5031 = vmatprep.subr.bf16.mxu0 %v7656_v52  ;;  %v3961_v63 = vshrl.u32 %v8953_v4, 16  ;;  %v3981_v52 = vshll.u32 %v3775_v47, 16  ;;  %v7672_v40 = vld [vmem:[#allocation12 + $0x530] ss:$8 sps:$4 sm:$0xff]   ;;  %v7680_v47 = vld [vmem:[#allocation12 + $0x524] ss:$8 sps:$4 sm:$0xff]  }
 0x621   : > { %v3927_v50 = vrot.slane %v3925_v59, 1  ;;  %v7689_v58 = vld [vmem:[#allocation12 + $0x404] ss:$8 sps:$4 sm:$0xff]   ;;  %v7705_v41 = vld [vmem:[#allocation12 + $0x4d0] ss:$8 sps:$4 sm:$0xff]  }
 0x622   : > { %v3963_v11 = vor.u32 %v3961_v63, %v3935_v5  ;;  %v3969_v5 = vshrl.u32 %v8970_v23, 16  ;;  %v7684_v63 = vld [vmem:[#allocation12 + $0x510] ss:$8 sps:$4 sm:$0xff]   ;;  %v7726_v27 = vld [vmem:[#allocation12 + $0x5a0] ss:$8 sps:$4 sm:$0xff]  }
 0x623   : > { %4959 = vmatpush1.bf16.msra.mxu1 %v7651_v57  ;;  %5032 = vmatpush1.bf16.msra.mxu0 %v7654_v61  ;;  %v7671_v57 = vld [vmem:[#allocation12 + $0x434] ss:$8 sps:$4 sm:$0xff]   ;;  %v3774_v61 = vpack.c.bf16 %v3754_v3, %v3754_v3  ;;  %v3928_v31 = vsel %vm1433_vm10, %v3923_v39, %v3927_v50  ;;  %v3955_v59 = vor.u32 %v3953_v44, %v3927_v50  ;;  %v7690_v3 = vld [vmem:[#allocation12 + $0x500] ss:$8 sps:$4 sm:$0xff]   ;;  %v7693_v39 = vld [vmem:[#allocation12 + $0x4f0] ss:$8 sps:$4 sm:$0xff]  }
 0x624   : > { %4960 = vmatprep.subr.bf16.mxu1 %v7659_v15  ;;  %5033 = vmatprep.subr.bf16.mxu0 %v7662_v45  ;;  %v3979_v15 = vor.u32 %v3977_v62, %v3951_v17  ;;  %v3983_v45 = vrot.slane %v3981_v52, 1  ;;  %v3968_v17 = vsel %vm1433_vm10, %v3963_v11, %v3967_v12  ;;  %v3971_v49 = vor.u32 %v3969_v5, %v3943_v29  ;;  %v7692_v62 = vld [vmem:[#allocation12 + $0x504] ss:$8 sps:$4 sm:$0xff]   ;;  %v7687_v52 = vld [vmem:[#allocation12 + $0x400] ss:$8 sps:$4 sm:$0xff]  }
 0x625   : > { %4364 = vmatmul.mubr.bf16.gmra.mxu1 %v3896_v53  ;;  %4437 = vmatmul.mubr.bf16.gmra.mxu0 %v3912_v60  ;;  %v7683_v60 = vld [vmem:[#allocation12 + $0x414] ss:$8 sps:$4 sm:$0xff]   ;;  %v3960_v1 = vsel %vm1433_vm10, %v3955_v59, %v3959_v51  ;;  %v7696_v50 = vld [vmem:[#allocation12 + $0x5f0] ss:$8 sps:$4 sm:$0xff]   ;;  %v7704_v29 = vld [vmem:[#allocation12 + $0x5e4] ss:$8 sps:$4 sm:$0xff]  }
 0x626   : > { %4373 = vmatprep.mubr.bf16.mxu1 %v3936_v42  ;;  %4446 = vmatprep.mubr.bf16.mxu0 %v3952_v46  ;;  %v7686_v42 = vld [vmem:[#allocation12 + $0x514] ss:$8 sps:$4 sm:$0xff]   ;;  %v7713_v11 = vld [vmem:[#allocation12 + $0x4c4] ss:$8 sps:$4 sm:$0xff]   ;;  %v7723_v44 = vld [vmem:[#allocation12 + $0x4a0] ss:$8 sps:$4 sm:$0xff]  }
 0x627   : > { %4961 = vmatpush1.bf16.msra.mxu1 %v7657_v9  ;;  %5034 = vmatpush1.bf16.msra.mxu0 %v7660_v56  ;;  %v3973_v9 = vshll.u32 %v3774_v61, 16  ;;  %v3984_v56 = vsel %vm1433_vm10, %v3979_v15, %v3983_v45  ;;  %v7708_v61 = vld [vmem:[#allocation12 + $0x5d0] ss:$8 sps:$4 sm:$0xff]   ;;  %v7716_v12 = vld [vmem:[#allocation12 + $0x5c4] ss:$8 sps:$4 sm:$0xff]  }
 0x628   : > { %4962 = vmatprep.subr.bf16.mxu1 %v7665_v26  ;;  %5035 = vmatprep.subr.bf16.mxu0 %v7668_v18  ;;  %v7675_v26 = vld [vmem:[#allocation12 + $0x420] ss:$8 sps:$4 sm:$0xff]   ;;  %v7681_v18 = vld [vmem:[#allocation12 + $0x410] ss:$8 sps:$4 sm:$0xff]   ;;  %v7731_v5 = vld [vmem:[#allocation12 + $0x494] ss:$8 sps:$4 sm:$0xff]  }
 0x629   : > { %v3975_v53 = vrot.slane %v3973_v9, 1  ;;  %v7711_v15 = vld [vmem:[#allocation12 + $0x4c0] ss:$8 sps:$4 sm:$0xff]   ;;  %v7734_v9 = vld [vmem:[#allocation12 + $0x594] ss:$8 sps:$4 sm:$0xff]  }
 0x62a   : > { %v7714_v45 = vld [vmem:[#allocation12 + $0x5c0] ss:$8 sps:$4 sm:$0xff]  }
 0x62b   : > { %4963 = vmatpush1.bf16.msra.mxu1 %v7663_v54  ;;  %5036 = vmatpush1.bf16.msra.mxu0 %v7666_v10  ;;  %v3976_v46 = vsel %vm1433_vm10, %v3971_v49, %v3975_v53  ;;  %v7695_v54 = vld [vmem:[#allocation12 + $0x4f4] ss:$8 sps:$4 sm:$0xff]   ;;  %v7735_v59 = vld [vmem:[#allocation12 + $0x480] ss:$8 sps:$4 sm:$0xff]   ;;  %v4488_v49 = vld [vmem:[#allocation4 + $0x108] sm:$0x3] }
 0x62c   : > { %4964 = vmatprep.subr.bf16.mxu1 %v7671_v57  ;;  %5037 = vmatprep.subr.bf16.mxu0 %v7674_v48  ;;  %v7698_v10 = vld [vmem:[#allocation12 + $0x5f4] ss:$8 sps:$4 sm:$0xff]   ;;  %v7738_v51 = vld [vmem:[#allocation12 + $0x580] ss:$8 sps:$4 sm:$0xff]  }
 0x62d   : > { %4374 = vmatmul.mubr.bf16.gmra.mxu1 %v3928_v31  ;;  %4447 = vmatmul.mubr.bf16.gmra.mxu0 %v3944_v13  ;;  %v7707_v57 = vld [vmem:[#allocation12 + $0x4d4] ss:$8 sps:$4 sm:$0xff]   ;;  %v4490_v53 = vld [vmem:[#allocation4 + $0x118] sm:$0x3]  ;;  %v7741_v4 = vld [vmem:[%s9694_s11 + $0x78] sm:$0xff]  }
 0x62e   : > { %4383 = vmatprep.mubr.bf16.mxu1 %v3968_v17  ;;  %4456 = vmatprep.mubr.bf16.mxu0 %v3984_v56  ;;  %v7710_v48 = vld [vmem:[#allocation12 + $0x5d4] ss:$8 sps:$4 sm:$0xff]   ;;  %v7729_v17 = vld [vmem:[#allocation12 + $0x490] ss:$8 sps:$4 sm:$0xff]  }
 0x62f   : > { %4965 = vmatpush1.bf16.msra.mxu1 %v7669_v24  ;;  %5038 = vmatpush1.bf16.msra.mxu0 %v7672_v40  ;;  %v7719_v31 = vld [vmem:[#allocation12 + $0x4b4] ss:$8 sps:$4 sm:$0xff]   ;;  %v7717_v24 = vld [vmem:[#allocation12 + $0x4b0] ss:$8 sps:$4 sm:$0xff]  }
 0x630   : > { %4966 = vmatprep.subr.bf16.mxu1 %v7677_v22  ;;  %5039 = vmatprep.subr.bf16.mxu0 %v7680_v47  ;;  %v7722_v13 = vld [vmem:[#allocation12 + $0x5b4] ss:$8 sps:$4 sm:$0xff]   ;;  %v7720_v40 = vld [vmem:[#allocation12 + $0x5b0] ss:$8 sps:$4 sm:$0xff]   ;;  %v7725_v22 = vld [vmem:[#allocation12 + $0x4a4] ss:$8 sps:$4 sm:$0xff]  }
 0x631   : > { %v7728_v47 = vld [vmem:[#allocation12 + $0x5a4] ss:$8 sps:$4 sm:$0xff]   ;;  %v7732_v56 = vld [vmem:[#allocation12 + $0x590] ss:$8 sps:$4 sm:$0xff]  }
 0x633   : > { %4967 = vmatpush1.bf16.msra.mxu1 %v7675_v26  ;;  %5040 = vmatpush1.bf16.msra.mxu0 %v7678_v43  ;;  %v7737_v26 = vld [vmem:[#allocation12 + $0x484] ss:$8 sps:$4 sm:$0xff]  }
 0x634   : > { %4968 = vmatprep.subr.bf16.mxu1 %v7683_v60  ;;  %5041 = vmatprep.subr.bf16.mxu0 %v7686_v42  ;;  %v7740_v43 = vld [vmem:[#allocation12 + $0x584] ss:$8 sps:$4 sm:$0xff]   ;;  %v4496_v60 = vpack.c.bf16 %v4488_v49, %v4488_v49  ;;  %v4498_v42 = vpack.c.bf16 %v4490_v53, %v4490_v53  ;;  %v7768_v53 = vld [vmem:[%s9694_s11 + $0xd0] sm:$0xff]  }
 0x635   : > { %4384 = vmatmul.mubr.bf16.gmra.mxu1 %v3960_v1  ;;  %4457 = vmatmul.mubr.bf16.gmra.mxu0 %v3976_v46  ;;  %v7767_v49 = vld [vmem:[%s9694_s11 + $0x178] sm:$0xff]  }
 0x636   : > { %4988 = vmatprep.mubr.bf16.mxu1 %v8993_v2  ;;  %5061 = vmatprep.mubr.bf16.mxu0 %v8999_v34  ;;  %v7699_v2 = vld [vmem:[#allocation12 + $0x4e0] ss:$8 sps:$4 sm:$0xff]  }
 0x637   : > { %4969 = vmatpush1.bf16.msra.mxu1 %v7681_v18  ;;  %5042 = vmatpush1.bf16.msra.mxu0 %v7684_v63  ;;  %v7702_v34 = vld [vmem:[#allocation12 + $0x5e0] ss:$8 sps:$4 sm:$0xff]   ;;  %v4614_v18 = vrot.slane %v4496_v60, 1  ;;  %v4487_v63 = vld [vmem:[#allocation4 + $0x100] sm:$0x3] }
 0x638   : > { %4970 = vmatprep.subr.bf16.mxu1 %v7689_v58  ;;  %5043 = vmatprep.subr.bf16.mxu0 %v7692_v62  ;;  %v4495_v1 = vpack.c.bf16 %v4487_v63, %v4487_v63  ;;  %v7745_v58 = vld [vmem:[%s9694_s11 + $0x68] sm:$0xff]   ;;  %v7770_v63 = vld [vmem:[%s9694_s11 + $0x90] sm:$0xff]  }
 0x639   : > { %v7746_v62 = vld [vmem:[%s9694_s11 + $0x28] sm:$0xff]  }
 0x63b   : > { %4971 = vmatpush1.bf16.msra.mxu1 %v7687_v52  ;;  %5044 = vmatpush1.bf16.msra.mxu0 %v7690_v3 }
 0x63c   : > { %4972 = vmatprep.subr.bf16.mxu1 %v7695_v54  ;;  %5045 = vmatprep.subr.bf16.mxu0 %v7698_v10  ;;  %v7747_v54 = vld [vmem:[%s9694_s11 + $0x60] sm:$0xff]  }
 0x63d   : > { %v7748_v10 = vld [vmem:[%s9694_s11 + $0x20] sm:$0xff]  }
 0x63f   : > { %4973 = vmatpush2.bf16.msra.mxu1 %v7693_v39  ;;  %5046 = vmatpush2.bf16.msra.mxu0 %v7696_v50  ;;  %v7749_v39 = vld [vmem:[%s9694_s11 + $0xf8] sm:$0xff]  }
 0x640   : > { %4974 = vmatprep.subr.bf16.mxu1 %v7701_v55  ;;  %5047 = vmatprep.subr.bf16.mxu0 %v7704_v29  ;;  %v7750_v50 = vld [vmem:[%s9694_s11 + $0xb8] sm:$0xff]  }
 0x643   : > { %4975 = vmatpush2.bf16.msra.mxu1 %v7699_v2  ;;  %5048 = vmatpush2.bf16.msra.mxu0 %v7702_v34  ;;  %v7751_v2 = vld [vmem:[%s9694_s11 + $0x58] sm:$0xff]  }
 0x644   : > { %4976 = vmatprep.subr.bf16.mxu1 %v7707_v57  ;;  %5049 = vmatprep.subr.bf16.mxu0 %v7710_v48  ;;  %v7752_v34 = vld [vmem:[%s9694_s11 + $0x18] sm:$0xff]   ;;  %v7753_v57 = vld [vmem:[%s9694_s11 + $0xf0] sm:$0xff]  }
 0x647   : > { %4977 = vmatpush2.bf16.msra.mxu1 %v7705_v41  ;;  %5050 = vmatpush2.bf16.msra.mxu0 %v7708_v61  ;;  %v7754_v61 = vld [vmem:[%s9694_s11 + $0xb0] sm:$0xff]  }
 0x648   : > { %4978 = vmatprep.subr.bf16.mxu1 %v7713_v11  ;;  %5051 = vmatprep.subr.bf16.mxu0 %v7716_v12  ;;  %v7755_v11 = vld [vmem:[%s9694_s11 + $0x50] sm:$0xff]  }
 0x649   : > { %v7756_v12 = vld [vmem:[%s9694_s11 + $0x10] sm:$0xff]  }
 0x64b   : > { %4979 = vmatpush2.bf16.msra.mxu1 %v7711_v15  ;;  %5052 = vmatpush2.bf16.msra.mxu0 %v7714_v45  ;;  %v7757_v15 = vld [vmem:[%s9694_s11 + $0xe8] sm:$0xff]  }
 0x64c   : > { %4980 = vmatprep.subr.bf16.mxu1 %v7719_v31  ;;  %5053 = vmatprep.subr.bf16.mxu0 %v7722_v13  ;;  %v7758_v13 = vld [vmem:[%s9694_s11 + $0xa8] sm:$0xff]  }
 0x64f   : > { %4981 = vmatpush2.bf16.msra.mxu1 %v7717_v24  ;;  %5054 = vmatpush2.bf16.msra.mxu0 %v7720_v40  ;;  %v7759_v24 = vld [vmem:[%s9694_s11 + $0x48] sm:$0xff]  }
 0x650   : > { %4982 = vmatprep.subr.bf16.mxu1 %v7725_v22  ;;  %5055 = vmatprep.subr.bf16.mxu0 %v7728_v47  ;;  %v7760_v40 = vld [vmem:[%s9694_s11 + $0x8] sm:$0xff]   ;;  %v7761_v22 = vld [vmem:[%s9694_s11 + $0xe0] sm:$0xff]  }
 0x653   : > { %4983 = vmatpush2.bf16.msra.mxu1 %v7723_v44  ;;  %5056 = vmatpush2.bf16.msra.mxu0 %v7726_v27  ;;  %v7762_v27 = vld [vmem:[%s9694_s11 + $0xa0] sm:$0xff]  }
 0x654   : > { %4984 = vmatprep.subr.bf16.mxu1 %v7731_v5  ;;  %5057 = vmatprep.subr.bf16.mxu0 %v7734_v9 }
 0x657   : > { %4985 = vmatpush2.bf16.msra.mxu1 %v7729_v17  ;;  %5058 = vmatpush2.bf16.msra.mxu0 %v7732_v56  ;;  %v7763_v17 = vld [vmem:[%s9694_s11 + $0x40] sm:$0xff]  }
 0x658   : > { %4986 = vmatprep.subr.bf16.mxu1 %v7737_v26  ;;  %5059 = vmatprep.subr.bf16.mxu0 %v7740_v43  ;;  %v7764_v56 = vld [vmem:[%s9694_s11] sm:$0xff]   ;;  %v7765_v26 = vld [vmem:[%s9694_s11 + $0xd8] sm:$0xff]  }
 0x659   : > { %v7766_v43 = vld [vmem:[%s9694_s11 + $0x98] sm:$0xff]  }
 0x65b   : > { %4987 = vmatpush2.bf16.msra.mxu1 %v7735_v59  ;;  %5060 = vmatpush2.bf16.msra.mxu0 %v7738_v51 }
 0x65c   : > { %6893 = vmatprep.subr.bf16.mxu1 %v7741_v4  ;;  %6933 = vmatprep.subr.bf16.mxu0 %v7749_v39 }
 0x65e   : > { %4989 = vmatmul.mubr.bf16.vlgmr.msra.gmra.mxu1 %v9004_v6  ;;  %5062 = vmatmul.mubr.bf16.vlgmr.msra.gmra.mxu0 %v9012_v25  ;;  %v4618_v6 = vrot.slane %v4498_v42, 1  ;;  %v4489_v25 = vld [vmem:[#allocation4 + $0x110] sm:$0x3] }
 0x65f   : > { %4998 = vmatprep.mubr.bf16.mxu1 %v9007_v14  ;;  %5071 = vmatprep.mubr.bf16.mxu0 %v9015_v30  ;;  %v4497_v14 = vpack.c.bf16 %v4489_v25, %v4489_v25  ;;  %v4615_v30 = vsel %vm1702_vm9, %v4606_v20, %v4614_v18  ;;  %v7772_v25 = vld [vmem:[%s9694_s11 + $0xc8] sm:$0xff]  }
 0x660   : > { %6894 = vmatpush3.bf16.msra.mxu1 %v7742_v7  ;;  %6934 = vmatpush3.bf16.msra.mxu0 %v7750_v50 }
 0x661   : > { %6935 = vmatprep.subr.bf16.mxu0 %v7753_v57 }
 0x664   : > { %6936 = vmatpush3.bf16.msra.mxu0 %v7754_v61 }
 0x665   : > { %6937 = vmatprep.subr.bf16.mxu0 %v7757_v15 }
 0x666   : > { %4999 = vmatmul.mubr.bf16.gmra.mxu1 %v9018_v32  ;;  %5072 = vmatmul.mubr.bf16.gmra.mxu0 %v9022_v19  ;;  %v4619_v32 = vsel %vm1702_vm9, %v4610_v28, %v4618_v6  ;;  %v4612_v19 = vrot.slane %v4495_v1, 1  ;;  %v7774_v1 = vld [vmem:[%s9694_s11 + $0x88] sm:$0xff]  }
 0x667   : > { %5008 = vmatprep.mubr.bf16.mxu1 %v9027_v33  ;;  %5081 = vmatprep.mubr.bf16.mxu0 %v9034_v37  ;;  %v4616_v33 = vrot.slane %v4497_v14, 1 }
 0x668   : > { %v4613_v37 = vsel %vm1702_vm9, %v4604_v35, %v4612_v19  ;;  %v7743_v35 = vld [vmem:[%s9694_s11 + $0x70] sm:$0xff]   ;;  %6938 = vmatpush3.bf16.msra.mxu0 %v7758_v13  ;;  %v7778_v19 = vld [vmem:[%s9694_s11 + $0x80] sm:$0xff]  }
 0x669   : > { %6895 = vmatprep.subr.bf16.mxu1 %v7743_v35  ;;  %6939 = vmatprep.subr.bf16.mxu0 %v7761_v22 }
 0x66c   : > { %6940 = vmatpush3.bf16.msra.mxu0 %v7762_v27 }
 0x66d   : > { %6941 = vmatprep.subr.bf16.mxu0 %v7765_v26 }
 0x66e   : > { %5009 = vmatmul.mubr.bf16.gmra.mxu1 %v9039_v38  ;;  %5082 = vmatmul.mubr.bf16.gmra.mxu0 %v9044_v0  ;;  %v4617_v38 = vsel %vm1702_vm9, %v4608_v36, %v4616_v33  ;;  %v7744_v36 = vld [vmem:[%s9694_s11 + $0x30] sm:$0xff]  }
 0x66f   : > { %5018 = vmatprep.mubr.bf16.mxu1 %v4615_v30  ;;  %5091 = vmatprep.mubr.bf16.mxu0 %v4619_v32  ;;  %v7776_v32 = vld [vmem:[%s9694_s11 + $0xc0] sm:$0xff]  }
 0x670   : > { %6896 = vmatpush3.bf16.msra.mxu1 %v7744_v36  ;;  %6942 = vmatpush3.bf16.msra.mxu0 %v7766_v43 }
 0x671   : > { %6897 = vmatprep.subr.bf16.mxu1 %v7745_v58  ;;  %6943 = vmatprep.subr.bf16.mxu0 %v7768_v53 }
 0x674   : > { %6898 = vmatpush3.bf16.msra.mxu1 %v7746_v62  ;;  %6944 = vmatpush3.bf16.msra.mxu0 %v7770_v63 }
 0x675   : > { %6899 = vmatprep.subr.bf16.mxu1 %v7747_v54  ;;  %6945 = vmatprep.subr.bf16.mxu0 %v7772_v25 }
 0x676   : > { %5019 = vmatmul.mubr.bf16.gmra.mxu1 %v4613_v37  ;;  %5092 = vmatmul.mubr.bf16.gmra.mxu0 %v4617_v38 }
 0x678   : > { %6900 = vmatpush3.bf16.msra.mxu1 %v7748_v10  ;;  %6946 = vmatpush3.bf16.msra.mxu0 %v7774_v1 }
 0x679   : > { %6901 = vmatprep.subr.bf16.mxu1 %v7751_v2  ;;  %6947 = vmatprep.subr.bf16.mxu0 %v7776_v32 }
 0x67c   : > { %6902 = vmatpush3.bf16.msra.mxu1 %v7752_v34  ;;  %6948 = vmatpush3.bf16.msra.mxu0 %v7778_v19  ;;  %v3110_v19 = vld [vmem:[#allocation14] sm:$0xff] }
 0x67d   : > { %6903 = vmatprep.subr.bf16.mxu1 %v7755_v11 }
 0x680   : > { %6904 = vmatpush3.bf16.msra.mxu1 %v7756_v12 }
 0x681   : > { %6905 = vmatprep.subr.bf16.mxu1 %v7759_v24 }
 0x684   : > { %6906 = vmatpush3.bf16.msra.mxu1 %v7760_v40 }
 0x685   : > { %6907 = vmatprep.subr.bf16.mxu1 %v7763_v17 }
 0x688   : > { %6908 = vmatpush3.bf16.msra.mxu1 %v7764_v56 }
 0x689   : > { %6973 = vmatprep.subr.bf16.mxu1 %v7767_v49 }
 0x69d   : > { %v9116_v20 = vpop.f32.mrf.mxu1  ;;  %v9118_v21 = vpop.f32.mrf.mxu0 }
 0x69e   : > { %v3666_v25 = vadd.f32 %v9118_v21, %v9116_v20  ;;  %v3113_v20 = vld [vmem:[#allocation14 + $0x18] sm:$0xff]  ;;  %v3114_v21 = vld [vmem:[#allocation14 + $0x20] sm:$0xff] }
 0x69f   : > { %v9120_v28 = vpop.f32.mrf.mxu1  ;;  %v9122_v23 = vpop.f32.mrf.mxu0 }
 0x6a0   : > { %v3668_v1 = vadd.f32 %v9122_v23, %v9120_v28 }
 0x6a1   : > { %v9130_v0 = vpop.f32.mrf.mxu1  ;;  %v9132_v46 = vpop.f32.mrf.mxu0 }
 0x6a2   : > { %v3670_v32 = vadd.f32 %v9132_v46, %v9130_v0  ;;  %v3704_v0 = vadd.f32 %v3666_v25, %v3110_v19  ;;  %v3705_v46 = vadd.f32 %v3668_v1, %v3111_v8  ;;  %v3121_v25 = vld [vmem:[#allocation14 + $0x58] sm:$0xff] }
 0x6a3   : > { %v9140_v52 = vpop.f32.mrf.mxu1  ;;  %v9142_v3 = vpop.f32.mrf.mxu0  ;;  %v3125_v1 = vld [vmem:[#allocation14 + $0x78] sm:$0xff] }
 0x6a5   : > { %v9156_v55 = vpop.f32.mrf.mxu1  ;;  %v9158_v29 = vpop.f32.mrf.mxu0 }
 0x6a7   : > { %v9169_v48 = vpop.f32.mrf.mxu1  ;;  %v9171_v41 = vpop.f32.mrf.mxu0 }
 0x6a8   : > { %v3678_v28 = vadd.f32 %v9171_v41, %v9169_v48 }
 0x6a9   : > { %v9185_v45 = vpop.f32.mrf.mxu1  ;;  %v9187_v31 = vpop.f32.mrf.mxu0 }
 0x6aa   : > { %v3680_v23 = vadd.f32 %v9187_v31, %v9185_v45 }
 0x6ab   : > { %v9201_v47 = vpop.f32.mrf.mxu1  ;;  %v9203_v44 = vpop.f32.mrf.mxu0 }
 0x6ad   : > { %v9208_v5 = vpop.f32.mrf.mxu1  ;;  %v9210_v9 = vpop.f32.mrf.mxu0 }
 0x6af   : > { %v9224_v59 = vpop.f32.mrf.mxu1  ;;  %v9226_v51 = vpop.f32.mrf.mxu0 }
 0x6b1   : > { %v9234_v60 = vpop.f32.mrf.mxu1  ;;  %v9236_v42 = vpop.f32.mrf.mxu0 }
 0x6b2   : > { %v3690_v48 = vadd.f32 %v9236_v42, %v9234_v60  ;;  %v3122_v60 = vld [vmem:[#allocation14 + $0x60] sm:$0xff]  ;;  %v3123_v42 = vld [vmem:[#allocation14 + $0x68] sm:$0xff] }
 0x6b3   : > { %v9238_v18 = vpop.f32.mrf.mxu1  ;;  %v9240_v6 = vpop.f32.mrf.mxu0 }
 0x6b4   : > { %v3692_v8 = vadd.f32 %v9240_v6, %v9238_v18 }
 0x6b5   : > { %v9251_v14 = vpop.f32.mrf.mxu1  ;;  %v9253_v30 = vpop.f32.mrf.mxu0 }
 0x6b7   : > { %v9261_v33 = vpop.f32.mrf.mxu1  ;;  %v9263_v37 = vpop.f32.mrf.mxu0 }
 0x6b9   : > { %v9265_v38 = vpop.f32.mrf.mxu1  ;;  %v9267_v4 = vpop.f32.mrf.mxu0 }
 0x6ba   : > { %v3700_v18 = vadd.f32 %v9267_v4, %v9265_v38 }
 0x6bb   : > { %v9269_v7 = vpop.f32.mrf.mxu1  ;;  %v9271_v35 = vpop.f32.mrf.mxu0 }
 0x6bc   : > { %v3702_v6 = vadd.f32 %v9271_v35, %v9269_v7 }
 0x6dd   : > { %v9273_v36 = vpop.f32.mrf.mxu1  ;;  %v9275_v58 = vpop.f32.mrf.mxu0 }
 0x6df   : > { %v9277_v62 = vpop.f32.mrf.mxu1  ;;  %v9279_v54 = vpop.f32.mrf.mxu0 }
 0x6e1   : > { %v9281_v10 = vpop.f32.mrf.mxu1  ;;  %v9283_v39 = vpop.f32.mrf.mxu0 }
 0x6e3   : > { %v9285_v50 = vpop.f32.mrf.mxu1  ;;  %v9287_v2 = vpop.f32.mrf.mxu0 }
 0x6e5   : > { %v9289_v34 = vpop.f32.mrf.mxu1  ;;  %v9291_v57 = vpop.f32.mrf.mxu0 }
 0x6e7   : > { %v9293_v61 = vpop.f32.mrf.mxu1  ;;  %v9295_v11 = vpop.f32.mrf.mxu0 }
 0x6e9   : > { %v9297_v12 = vpop.f32.mrf.mxu1  ;;  %v9299_v15 = vpop.f32.mrf.mxu0 }
 0x6eb   : > { %v9301_v13 = vpop.f32.mrf.mxu1  ;;  %v9303_v24 = vpop.f32.mrf.mxu0 }
 0x6ed   : > { %v9305_v40 = vpop.f32.mrf.mxu1  ;;  %v9307_v22 = vpop.f32.mrf.mxu0 }
 0x6ef   : > { %v9309_v27 = vpop.f32.mrf.mxu1  ;;  %v9311_v17 = vpop.f32.mrf.mxu0 }
 0x6f1   : > { %v9313_v56 = vpop.f32.mrf.mxu1  ;;  %v9315_v26 = vpop.f32.mrf.mxu0 }
 0x6f2   : > { %9741 = vst [vmem:[#allocation28_spill] sm:$0xff] %v9313_v56  ;;  %9742 = vst [vmem:[#allocation29_spill] sm:$0xff] %v9315_v26  ;;  %v3116_v56 = vld [vmem:[#allocation14 + $0x30] sm:$0xff] }
 0x6f3   : > { %v9317_v43 = vpop.f32.mrf.mxu1  ;;  %v9319_v49 = vpop.f32.mrf.mxu0 }
 0x6f4   : > { %9743 = vst [vmem:[#allocation30_spill] sm:$0xff] %v9317_v43  ;;  %9744 = vst [vmem:[#allocation31_spill] sm:$0xff] %v9319_v49  ;;  %v3706_v49 = vadd.f32 %v3670_v32, %v3112_v16  ;;  %v4429_v32 = vadd.f32 %v9275_v58, %v9273_v36  ;;  %v4435_v36 = vadd.f32 %v9287_v2, %v9285_v50 }
 0x6f5   : > { %v9321_v53 = vpop.f32.mrf.mxu1  ;;  %v9323_v63 = vpop.f32.mrf.mxu0  ;;  %v4439_v58 = vadd.f32 %v9291_v57, %v9289_v34  ;;  %v4445_v50 = vadd.f32 %v9303_v24, %v9301_v13  ;;  %v4449_v2 = vadd.f32 %v9307_v22, %v9305_v40  ;;  %v4451_v34 = vadd.f32 %v9311_v17, %v9309_v27 }
 0x6f6   : > { %9745 = vst [vmem:[#allocation32_spill] sm:$0xff] %v9321_v53  ;;  %9746 = vst [vmem:[#allocation33_spill] sm:$0xff] %v9323_v63  ;;  %v3672_v53 = vadd.f32 %v9142_v3, %v9140_v52  ;;  %v3676_v63 = vadd.f32 %v9158_v29, %v9156_v55  ;;  %v3117_v52 = vld [vmem:[#allocation14 + $0x38] sm:$0xff]  ;;  %v3118_v3 = vld [vmem:[#allocation14 + $0x40] sm:$0xff]  ;;  %v3686_v55 = vadd.f32 %v9210_v9, %v9208_v5 }
 0x6f7   : > { %v9331_v26 = vpop.f32.mrf.mxu1  ;;  %v9333_v43 = vpop.f32.mrf.mxu0  ;;  %v3688_v29 = vadd.f32 %v9226_v51, %v9224_v59  ;;  %v3696_v5 = vadd.f32 %v9253_v30, %v9251_v14  ;;  %v3698_v9 = vadd.f32 %v9263_v37, %v9261_v33  ;;  %v3710_v51 = vadd.f32 %v3680_v23, %v3116_v56 }
 0x6f8   : > { %9747 = vst [vmem:[#allocation34_spill] sm:$0xff] %v9331_v26  ;;  %9748 = vst [vmem:[#allocation35_spill] sm:$0xff] %v9333_v43  ;;  %v3115_v26 = vld [vmem:[#allocation14 + $0x28] sm:$0xff]  ;;  %v3682_v43 = vadd.f32 %v9203_v44, %v9201_v47  ;;  %v3707_v45 = vadd.f32 %v3672_v53, %v3113_v20  ;;  %v3708_v31 = vadd.f32 %v3676_v63, %v3114_v21  ;;  %v3120_v44 = vld [vmem:[#allocation14 + $0x50] sm:$0xff] }
 0x6f9   : > { %v9353_v16 = vpop.f32.mrf.mxu1  ;;  %v9355_v41 = vpop.f32.mrf.mxu0  ;;  %v3119_v47 = vld [vmem:[#allocation14 + $0x48] sm:$0xff]  ;;  %v3709_v59 = vadd.f32 %v3678_v28, %v3115_v26  ;;  %v3124_v63 = vld [vmem:[#allocation14 + $0x70] sm:$0xff]  ;;  %v4431_v14 = vadd.f32 %v9279_v54, %v9277_v62  ;;  %v4433_v30 = vadd.f32 %v9283_v39, %v9281_v10  ;;  %v3712_v33 = vadd.f32 %v3686_v55, %v3118_v3 }
 0x6fa   : > { %v3711_v53 = vadd.f32 %v3682_v43, %v3117_v52  ;;  %v3713_v37 = vadd.f32 %v3688_v29, %v3119_v47  ;;  %v3714_v56 = vadd.f32 %v3690_v48, %v3120_v44  ;;  %v3715_v26 = vadd.f32 %v3692_v8, %v3121_v25  ;;  %v9749_v57 = vld [vmem:[#allocation28_spill] sm:$0xff] }
 0x6fb   : > { %v9371_v38 = vpop.f32.mrf.mxu1  ;;  %v9373_v4 = vpop.f32.mrf.mxu0  ;;  %v3716_v7 = vadd.f32 %v3696_v5, %v3122_v60  ;;  %v9375_v35 = vadd.f32 %v3698_v9, %v3123_v42  ;;  %v9381_v62 = vadd.f32 %v3700_v18, %v3124_v63  ;;  %v9383_v54 = vadd.f32 %v3702_v6, %v3125_v1  ;;  %v9751_v29 = vld [vmem:[#allocation30_spill] sm:$0xff]  ;;  %v9752_v13 = vld [vmem:[#allocation31_spill] sm:$0xff] }
 0x6fc   : > { %v4441_v10 = vadd.f32 %v9295_v11, %v9293_v61  ;;  %v4443_v39 = vadd.f32 %v9299_v15, %v9297_v12  ;;  %v4467_v20 = vadd.f32 %v4429_v32, %v3704_v0  ;;  %v4468_v21 = vadd.f32 %v4431_v14, %v3705_v46  ;;  %v9750_v61 = vld [vmem:[#allocation29_spill] sm:$0xff] }
 0x6fd   : > { %v4469_v28 = vadd.f32 %v4433_v30, %v3706_v49  ;;  %v4453_v11 = vadd.f32 %v9750_v61, %v9749_v57  ;;  %v4470_v15 = vadd.f32 %v4435_v36, %v3707_v45  ;;  %v4471_v3 = vadd.f32 %v4439_v58, %v3708_v31  ;;  %v9753_v48 = vld [vmem:[#allocation32_spill] sm:$0xff]  ;;  %v9754_v40 = vld [vmem:[#allocation33_spill] sm:$0xff] }
 0x6fe   : > { %v4472_v49 = vadd.f32 %v4441_v10, %v3709_v59  ;;  %v9397_v55 = vadd.f32 %v4443_v39, %v3710_v51  ;;  %v4455_v24 = vadd.f32 %v9752_v13, %v9751_v29  ;;  %v4459_v22 = vadd.f32 %v9754_v40, %v9753_v48 }
 0x6ff   : > { %v9755_v44 = vlaneseq  ;;  %v9408_v25 = vadd.f32 %v4445_v50, %v3711_v53  ;;  %v9410_v5 = vadd.f32 %v4449_v2, %v3712_v33  ;;  %v9412_v9 = vadd.f32 %v4451_v34, %v3713_v37  ;;  %v9759_v58 = vld [vmem:[#allocation35_spill] sm:$0xff] }
 0x700   : > { %v9414_v59 = vadd.f32 %v4453_v11, %v3714_v56  ;;  %v9416_v63 = vadd.f32 %v4455_v24, %v3715_v26  ;;  %v9418_v1 = vadd.f32 %v4459_v22, %v3716_v7  ;;  %v9758_v56 = vld [vmem:[#allocation34_spill] sm:$0xff]  ;;  %v4463_v7 = vadd.f32 %v9355_v41, %v9353_v16  ;;  %v9760_v50 = vld [vmem:[#allocation27_spill] sm:$0xff] }
 0x701   : > { %vm9404_vm15 = vcmp.lt.s32.totalorder %v9755_v44, 256  ;;  %v4461_v10 = vadd.f32 %v9759_v58, %v9758_v56 }
 0x703   : > { %v9432_v40 = vadd.f32 %v4461_v10, %v9375_v35 }
 0x71e   : > { %v4990_v43 = vpop.f32.mrf.mxu1  ;;  %v5063_v19 = vpop.f32.mrf.mxu0 }
 0x71f   : > { %v5064_v23 = vadd.f32 %v5063_v19, %v4990_v43 }
 0x720   : > { %v4992_v52 = vpop.f32.mrf.mxu1  ;;  %v5065_v12 = vpop.f32.mrf.mxu0 }
 0x721   : > { %v5102_v0 = vadd.f32 %v5064_v23, %v4467_v20  ;;  %v5066_v46 = vadd.f32 %v5065_v12, %v4992_v52 }
 0x722   : > { %v4994_v8 = vpop.f32.mrf.mxu1  ;;  %v5067_v27 = vpop.f32.mrf.mxu0 }
 0x723   : > { %vm5118_vm14 = vcmp.ge.f32.partialorder %v5102_v0, 0.0  ;;  %v5134_v17 = vmul.f32 0.1, %v5102_v0  ;;  %v5103_v47 = vadd.f32 %v5066_v46, %v4468_v21  ;;  %v5068_v31 = vadd.f32 %v5067_v27, %v4994_v8 }
 0x724   : > { %v4996_v51 = vpop.f32.mrf.mxu1  ;;  %v5069_v60 = vpop.f32.mrf.mxu0  ;;  %v9438_v27 = vadd.f32 %v4463_v7, %v9381_v62 }
 0x725   : > { %v5150_v42 = vsel %vm5118_vm14, %v5102_v0, %v5134_v17  ;;  %vm5119_vm0 = vcmp.ge.f32.partialorder %v5103_v47, 0.0  ;;  %v5135_v18 = vmul.f32 0.1, %v5103_v47  ;;  %v5104_v6 = vadd.f32 %v5068_v31, %v4469_v28 }
 0x726   : > { %v5182_v32 = vrot.slane %v5150_v42, 7  ;;  %v5070_v14 = vadd.f32 %v5069_v60, %v4996_v51  ;;  %v5000_v53 = vpop.f32.mrf.mxu1  ;;  %v5073_v30 = vpop.f32.mrf.mxu0  ;;  %v4465_v0 = vadd.f32 %v9373_v4, %v9371_v38 }
 0x727   : > { %v5151_v33 = vsel %vm5119_vm0, %v5103_v47, %v5135_v18  ;;  %vm5120_vm2 = vcmp.ge.f32.partialorder %v5104_v6, 0.0  ;;  %v5136_v37 = vmul.f32 0.1, %v5104_v6  ;;  %v5074_v36 = vadd.f32 %v5073_v30, %v5000_v53 }
 0x728   : > { %5230 = vst [vmem:[#allocation5] sm:$0xfe] %v5182_v32  ;;  %v5183_v39 = vrot.slane %v5151_v33, 7  ;;  %v5248_v43 = vcombine.low %v5150_v42, %v5151_v33  ;;  %v5105_v19 = vadd.f32 %v5070_v14, %v4470_v15  ;;  %v5002_v20 = vpop.f32.mrf.mxu1  ;;  %v5075_v26 = vpop.f32.mrf.mxu0  ;;  %v9447_v18 = vadd.f32 %v4465_v0, %v9383_v54 }
 0x729   : > { %v5152_v21 = vsel %vm5120_vm2, %v5104_v6, %v5136_v37  ;;  %v5106_v28 = vadd.f32 %v5074_v36, %v4471_v3  ;;  %v5076_v23 = vadd.f32 %v5075_v26, %v5002_v20 }
 0x72a   : > { %5231 = vst [vmem:[#allocation5 + $0x8] sm:$0xfe] %v5183_v39  ;;  %v5255_v2 = vrot.slane %v5248_v43, %v9760_v50  ;;  %v5184_v34 = vrot.slane %v5152_v21, 7  ;;  %vm5121_vm3 = vcmp.ge.f32.partialorder %v5105_v19, 0.0  ;;  %v5137_v57 = vmul.f32 0.1, %v5105_v19  ;;  %v5004_v61 = vpop.f32.mrf.mxu1  ;;  %v5077_v11 = vpop.f32.mrf.mxu0 }
 0x72b   : > { %vm5122_vm4 = vcmp.ge.f32.partialorder %v5106_v28, 0.0  ;;  %v5138_v52 = vmul.f32 0.1, %v5106_v28  ;;  %v5107_v12 = vadd.f32 %v5076_v23, %v4472_v49  ;;  %v5078_v15 = vadd.f32 %v5077_v11, %v5004_v61 }
 0x72c   : > { %v5262_v16 = vrot.slane %v5255_v2, %v9760_v50  ;;  %v9429_v41 = vsel %vm1079_vm7, %v5182_v32, %v5184_v34  ;;  %v5153_v3 = vsel %vm5121_vm3, %v5105_v19, %v5137_v57  ;;  %v5006_v46 = vpop.f32.mrf.mxu1  ;;  %v5079_v29 = vpop.f32.mrf.mxu0 }
 0x72d   : > { %v5186_v13 = vrot.slane %v5153_v3, 7  ;;  %v5154_v24 = vsel %vm5122_vm4, %v5106_v28, %v5138_v52  ;;  %vm5123_vm5 = vcmp.ge.f32.partialorder %v5107_v12, 0.0  ;;  %v5139_v48 = vmul.f32 0.1, %v5107_v12 }
 0x72e   : > { %5266 = vst.msk [vmem:[#allocation5] ss:$8 sm:$0x3] %vm9404_vm15, %v5262_v16  ;;  %v5188_v49 = vrot.slane %v5154_v24, 7  ;;  %v5108_v38 = vadd.f32 %v5078_v15, %v9397_v55  ;;  %v5080_v4 = vadd.f32 %v5079_v29, %v5006_v46  ;;  %v5010_v22 = vpop.f32.mrf.mxu1  ;;  %v5083_v8 = vpop.f32.mrf.mxu0  ;;  %v7769_v24 = vld [vmem:[%s9694_s11 + $0x138] sm:$0xff]  }
 0x72f   : > { %v9441_v17 = vsel %vm1079_vm7, %v5183_v39, %v5186_v13  ;;  %v5155_v47 = vsel %vm5123_vm5, %v5107_v12, %v5139_v48  ;;  %v5084_v44 = vadd.f32 %v5083_v8, %v5010_v22  ;;  %v5522_v31 = vld [vmem:[#allocation5] sm:$0xfe] }
 0x730   : > { %v9444_v35 = vsel %vm1079_vm7, %v5184_v34, %v5188_v49  ;;  %v5190_v51 = vrot.slane %v5155_v47, 7  ;;  %vm5124_vm6 = vcmp.ge.f32.partialorder %v5108_v38, 0.0  ;;  %v5140_v60 = vmul.f32 0.1, %v5108_v38  ;;  %v5012_v42 = vpop.f32.mrf.mxu1  ;;  %v5085_v55 = vpop.f32.mrf.mxu0 }
 0x731   : > { %v5109_v62 = vadd.f32 %v5080_v4, %v9408_v25  ;;  %v5110_v6 = vadd.f32 %v5084_v44, %v9410_v5  ;;  %v5086_v32 = vadd.f32 %v5085_v55, %v5012_v42  ;;  %v5523_v14 = vld [vmem:[#allocation5 + $0x8] sm:$0xfe]  ;;  %v9456_v56 = vpack.c.bf16 %v9429_v41, %v5522_v31 }
 0x732   : > { %v5191_v53 = vsel %vm1079_vm7, %v5186_v13, %v5190_v51  ;;  %v5156_v30 = vsel %vm5124_vm6, %v5108_v38, %v5140_v60  ;;  %v5014_v33 = vpop.f32.mrf.mxu1  ;;  %v5087_v37 = vpop.f32.mrf.mxu0  ;;  %v9453_v36 = vpack.c.bf16 %v9441_v17, %v5523_v14 }
 0x733   : > { %v5192_v58 = vrot.slane %v5156_v30, 7  ;;  %vm5125_vm8 = vcmp.ge.f32.partialorder %v5109_v62, 0.0  ;;  %v5141_v54 = vmul.f32 0.1, %v5109_v62  ;;  %vm5126_vm11 = vcmp.ge.f32.partialorder %v5110_v6, 0.0 }
 0x734   : > { %v5142_v25 = vmul.f32 0.1, %v5110_v6  ;;  %v5111_v5 = vadd.f32 %v5086_v32, %v9412_v9  ;;  %v5088_v10 = vadd.f32 %v5087_v37, %v5014_v33  ;;  %v5016_v39 = vpop.f32.mrf.mxu1  ;;  %v5089_v43 = vpop.f32.mrf.mxu0  ;;  %v5596_v19 = vshrl.u32 %v9453_v36, 16 }
 0x735   : > { %v5193_v20 = vsel %vm1079_vm7, %v5188_v49, %v5192_v58  ;;  %v5157_v26 = vsel %vm5125_vm8, %v5109_v62, %v5141_v54  ;;  %v5090_v7 = vadd.f32 %v5089_v43, %v5016_v39  ;;  %v5298_v21 = vld [vmem:[#allocation5 + $0x8] sm:$0xff]  ;;  %v5297_v28 = vld [vmem:[#allocation5] sm:$0xff]  ;;  %v5598_v23 = vshll.u32 %v9453_v36, 16 }
 0x736   : > { %v5194_v2 = vrot.slane %v5157_v26, 7  ;;  %v5158_v34 = vsel %vm5126_vm11, %v5110_v6, %v5142_v25  ;;  %vm5127_vm12 = vcmp.ge.f32.partialorder %v5111_v5, 0.0  ;;  %v5143_v57 = vmul.f32 0.1, %v5111_v5  ;;  %v5020_v61 = vpop.f32.mrf.mxu1  ;;  %v5093_v11 = vpop.f32.mrf.mxu0  ;;  %v7771_v49 = vld [vmem:[%s9694_s11 + $0x170] sm:$0xff]   ;;  %v7777_v26 = vld [vmem:[%s9694_s11 + $0x128] sm:$0xff]  }
 0x737   : > { %v5196_v9 = vrot.slane %v5158_v34, 7  ;;  %v5112_v52 = vadd.f32 %v5088_v10, %v9414_v59  ;;  %v5113_v12 = vadd.f32 %v5090_v7, %v9416_v63  ;;  %v5094_v15 = vadd.f32 %v5093_v11, %v5020_v61 }
 0x738   : > { %v5195_v0 = vsel %vm1079_vm7, %v5190_v51, %v5194_v2  ;;  %v5159_v16 = vsel %vm5127_vm12, %v5111_v5, %v5143_v57  ;;  %v5022_v3 = vpop.f32.mrf.mxu1  ;;  %v5095_v46 = vpop.f32.mrf.mxu0  ;;  %v5314_v29 = vpack.c.bf16 %v9441_v17, %v5298_v21  ;;  %v5313_v13 = vpack.c.bf16 %v9429_v41, %v5297_v28  ;;  %v7779_v28 = vld [vmem:[%s9694_s11 + $0x160] sm:$0xff]  }
 0x739   : > { %v9471_v48 = vsel %vm1079_vm7, %v5192_v58, %v5196_v9  ;;  %v5198_v59 = vrot.slane %v5159_v16, 7  ;;  %vm5128_vm13 = vcmp.ge.f32.partialorder %v5112_v52, 0.0  ;;  %v5144_v63 = vmul.f32 0.1, %v5112_v52 }
 0x73a   : > { %vm5129_vm14 = vcmp.ge.f32.partialorder %v5113_v12, 0.0  ;;  %v5145_v38 = vmul.f32 0.1, %v5113_v12  ;;  %v5114_v4 = vadd.f32 %v5094_v15, %v9418_v1  ;;  %v5096_v22 = vadd.f32 %v5095_v46, %v5022_v3  ;;  %5481 = vmatprep.mubr.bf16.mxu1 %v5314_v29  ;;  %v5024_v8 = vpop.f32.mrf.mxu1  ;;  %v5097_v47 = vpop.f32.mrf.mxu0  ;;  %v7773_v1 = vld [vmem:[%s9694_s11 + $0x130] sm:$0xff]   ;;  %v7781_v46 = vld [vmem:[%s9694_s11 + $0x158] sm:$0xff]  }
 0x73b   : > { %v5199_v44 = vsel %vm1079_vm7, %v5194_v2, %v5198_v59  ;;  %v5160_v31 = vsel %vm5128_vm13, %v5112_v52, %v5144_v63  ;;  %v5098_v51 = vadd.f32 %v5097_v47, %v5024_v8  ;;  %5482 = vmatmul.mubr.bf16.vlgmr.msra.gmra.mxu1 %v5313_v13  ;;  %v9478_v60 = vpack.c.bf16 %v5195_v0, %v5191_v53  ;;  %v7775_v53 = vld [vmem:[%s9694_s11 + $0x168] sm:$0xff]   ;;  %v7780_v52 = vld [vmem:[%s9694_s11 + $0x120] sm:$0xff]  }
 0x73c   : > { %v5200_v42 = vrot.slane %v5160_v31, 7  ;;  %v5161_v55 = vsel %vm5129_vm14, %v5113_v12, %v5145_v38  ;;  %vm5130_vm0 = vcmp.ge.f32.partialorder %v5114_v4, 0.0  ;;  %v5146_v62 = vmul.f32 0.1, %v5114_v4  ;;  %6974 = vmatpush3.bf16.msra.mxu1 %v7769_v24  ;;  %v5026_v6 = vpop.f32.mrf.mxu1  ;;  %v5099_v32 = vpop.f32.mrf.mxu0  ;;  %v7782_v38 = vld [vmem:[%s9694_s11 + $0x118] sm:$0xff]  }
 0x73d   : > { %v5202_v14 = vrot.slane %v5161_v55, 7  ;;  %v5115_v30 = vadd.f32 %v5096_v22, %v9432_v40  ;;  %v5116_v33 = vadd.f32 %v5098_v51, %v9438_v27  ;;  %v5100_v37 = vadd.f32 %v5099_v32, %v5026_v6  ;;  %6975 = vmatprep.subr.bf16.mxu1 %v7771_v49  ;;  %5489 = vmatprep.mubr.bf16.mxu1 %v9478_v60  ;;  %v5833_v55 = vld [vmem:[#allocation5 + $0x8] sm:$0xfc] }
 0x73e   : > { %v5201_v58 = vsel %vm1079_vm7, %v5196_v9, %v5200_v42  ;;  %v5162_v54 = vsel %vm5130_vm0, %v5114_v4, %v5146_v62  ;;  %v9491_v25 = vpack.c.bf16 %v5193_v20, %v9444_v35  ;;  %v5600_v5 = vrot.slane %v5598_v23, 1  ;;  %v7784_v32 = vld [vmem:[%s9694_s11 + $0x110] sm:$0xff]  }
 0x73f   : > { %v5203_v10 = vsel %vm1079_vm7, %v5198_v59, %v5202_v14  ;;  %v5204_v40 = vrot.slane %v5162_v54, 7  ;;  %vm5131_vm2 = vcmp.ge.f32.partialorder %v5115_v30, 0.0  ;;  %v5147_v27 = vmul.f32 0.1, %v5115_v30 }
 0x740   : > { %vm5132_vm3 = vcmp.ge.f32.partialorder %v5116_v33, 0.0  ;;  %v5148_v39 = vmul.f32 0.1, %v5116_v33  ;;  %v5117_v43 = vadd.f32 %v5100_v37, %v9447_v18  ;;  %6976 = vmatpush3.bf16.msra.mxu1 %v7773_v1  ;;  %v5601_v7 = vor.u32 %v5600_v5, %v5596_v19 }
 0x741   : > { %v9501_v35 = vsel %vm1079_vm7, %v5200_v42, %v5204_v40  ;;  %v5163_v20 = vsel %vm5131_vm2, %v5115_v30, %v5147_v27  ;;  %6977 = vmatprep.subr.bf16.mxu1 %v7775_v53  ;;  %v5603_v21 = vshll.u32 %v9478_v60, 16  ;;  %v5584_v18 = vshrl.u32 %v9456_v56, 16 }
 0x742   : > { %v5206_v23 = vrot.slane %v5163_v20, 7  ;;  %v5164_v2 = vsel %vm5132_vm3, %v5116_v33, %v5148_v39  ;;  %vm5133_vm4 = vcmp.ge.f32.partialorder %v5117_v43, 0.0  ;;  %v5149_v34 = vmul.f32 0.1, %v5117_v43 }
 0x743   : > { %v5208_v57 = vrot.slane %v5164_v2, 7  ;;  %5490 = vmatmul.mubr.bf16.gmra.mxu1 %v9491_v25  ;;  %v5605_v36 = vrot.slane %v5603_v21, 1  ;;  %v5586_v19 = vshll.u32 %v9456_v56, 16  ;;  %v5591_v61 = vshll.u32 %v9491_v25, 16 }
 0x744   : > { %v5207_v11 = vsel %vm1079_vm7, %v5202_v14, %v5206_v23  ;;  %v5165_v9 = vsel %vm5133_vm4, %v5117_v43, %v5149_v34  ;;  %6978 = vmatpush3.bf16.msra.mxu1 %v7777_v26  ;;  %v9515_v12 = vpack.c.bf16 %v5203_v10, %v5199_v44  ;;  %v9518_v15 = vpack.c.bf16 %v5201_v58, %v9471_v48  ;;  %v7783_v44 = vld [vmem:[%s9694_s11 + $0x150] sm:$0xff]   ;;  %v7787_v43 = vld [vmem:[%s9694_s11 + $0x140] sm:$0xff]  }
 0x745   : > { %v5209_v0 = vsel %vm1079_vm7, %v5204_v40, %v5208_v57  ;;  %5246 = vst [vmem:[#allocation5 + $0x80] sm:$0x1] %v5208_v57  ;;  %v5210_v16 = vrot.slane %v5165_v9, 7  ;;  %v5268_v56 = vcombine.high %v5164_v2, %v5165_v9  ;;  %v5606_v3 = vsel %vm1433_vm10, %v5601_v7, %v5605_v36  ;;  %6979 = vmatprep.subr.bf16.mxu1 %v7779_v28  ;;  %v5832_v7 = vld [vmem:[#allocation5] sm:$0xfc]  ;;  %v7788_v28 = vld [vmem:[%s9694_s11 + $0x100] sm:$0xff]  }
 0x746   : > { %5791 = vmatprep.mubr.bf16.mxu0 %v5606_v3  ;;  %v5588_v29 = vrot.slane %v5586_v19, 1  ;;  %v5593_v13 = vrot.slane %v5591_v61, 1  ;;  %5497 = vmatprep.mubr.bf16.mxu1 %v9515_v12  ;;  %v5615_v24 = vshrl.u32 %v9478_v60, 16  ;;  %v5619_v48 = vshll.u32 %v9515_v12, 16 }
 0x747   : > { %v5211_v59 = vsel %vm1079_vm7, %v5206_v23, %v5210_v16  ;;  %5247 = vst [vmem:[#allocation5 + $0x88] sm:$0x1] %v5210_v16  ;;  %v5275_v63 = vrot.slane %v5268_v56, %v9760_v50  ;;  %v5611_v42 = vshll.u32 %v9518_v15, 16  ;;  %v5607_v14 = vshrl.u32 %v9491_v25, 16 }
 0x748   : > { %v5589_v49 = vor.u32 %v5588_v29, %v5584_v18  ;;  %6980 = vmatpush3.bf16.msra.mxu1 %v7780_v52  ;;  %v5617_v4 = vor.u32 %v5615_v24, %v5605_v36  ;;  %v5621_v22 = vrot.slane %v5619_v48, 1  ;;  %v9533_v8 = vpack.c.bf16 %v5211_v59, %v5207_v11 }
 0x749   : > { %v5276_v47 = vcombine.high %v5275_v63, %v5275_v63  ;;  %6981 = vmatprep.subr.bf16.mxu1 %v7781_v46  ;;  %v5837_v30 = vpack.c.bf16 %v9441_v17, %v5833_v55  ;;  %v5613_v33 = vrot.slane %v5611_v42, 1  ;;  %v9554_v37 = vpack.c.bf16 %v5209_v0, %v9501_v35  ;;  %v7786_v17 = vld [vmem:[%s9694_s11 + $0x108] sm:$0xff]  }
 0x74a   : > { %v5594_v31 = vsel %vm1433_vm10, %v5589_v49, %v5593_v13  ;;  %v5622_v51 = vsel %vm1433_vm10, %v5617_v4, %v5621_v22  ;;  %v5635_v6 = vshll.u32 %v9533_v8, 16  ;;  %v5631_v53 = vshrl.u32 %v9515_v12, 16 }
 0x74b   : > { %v5283_v62 = vrot.slane %v5276_v47, %v9760_v50  ;;  %5792 = vmatmul.mubr.bf16.vlgmr.msra.gmra.mxu0 %v5594_v31  ;;  %5498 = vmatmul.mubr.bf16.gmra.mxu1 %v9518_v15  ;;  %v7785_v50 = vld [vmem:[%s9694_s11 + $0x148] sm:$0xff]   ;;  %v5887_v5 = vrot.slane %v9478_v60, 1  ;;  %v5609_v40 = vor.u32 %v5607_v14, %v5593_v13  ;;  %v5886_v39 = vrot.slane %v5837_v30, 1 }
 0x74c   : > { %6982 = vmatpush3.bf16.msra.mxu1 %v7782_v38  ;;  %5799 = vmatprep.mubr.bf16.mxu0 %v5622_v51  ;;  %v5637_v58 = vrot.slane %v5635_v6, 1  ;;  %v5633_v27 = vor.u32 %v5631_v53, %v5621_v22  ;;  %v5627_v35 = vshll.u32 %v9554_v37, 16  ;;  %v5538_v21 = vld [vmem:[#allocation5 + $0x80] sm:$0x1]  ;;  %v5836_v18 = vpack.c.bf16 %v9429_v41, %v5832_v7  ;;  %v5289_v7 = vld [vmem:[#allocation15] sm:$0xff] }
 0x74d   : > { %v5284_v1 = vcombine.high %v5283_v62, %v5283_v62  ;;  %6983 = vmatprep.subr.bf16.mxu1 %v7783_v44  ;;  %5505 = vmatprep.mubr.bf16.mxu1 %v9533_v8  ;;  %v5614_v45 = vsel %vm1433_vm10, %v5609_v40, %v5613_v33  ;;  %v5888_v20 = vsel %vm1702_vm9, %v5886_v39, %v5887_v5  ;;  %v5647_v23 = vshrl.u32 %v9533_v8, 16 }
 0x74e   : > { %v5539_v54 = vld [vmem:[#allocation5 + $0x88] sm:$0x1]  ;;  %v5638_v60 = vsel %vm1433_vm10, %v5633_v27, %v5637_v58  ;;  %v5623_v34 = vshrl.u32 %v9518_v15, 16  ;;  %v5629_v57 = vrot.slane %v5627_v35, 1  ;;  %v5884_v36 = vrot.slane %v9491_v25, 1 }
 0x74f   : > { %5287 = vst.msk [vmem:[#allocation5 + $0x81] ss:$8 sm:$0x3] %vm9404_vm15, %v5284_v1  ;;  %v5549_v10 = vpack.c.bf16 %v5539_v54, %v5539_v54  ;;  %v5548_v19 = vpack.c.bf16 %v5538_v21, %v5538_v21  ;;  %v5649_v61 = vor.u32 %v5647_v23, %v5637_v58  ;;  %v5891_v11 = vrot.slane %v9515_v12, 1  ;;  %v5290_v23 = vld [vmem:[#allocation15 + $0x8] sm:$0xff] }
 0x750   : > { %6984 = vmatpush3.bf16.msra.mxu1 %v7784_v32  ;;  %v5625_v9 = vor.u32 %v5623_v34, %v5613_v33  ;;  %v5883_v52 = vrot.slane %v5836_v18, 1  ;;  %v5639_v25 = vshrl.u32 %v9554_v37, 16  ;;  %v5889_v12 = vrot.slane %v9518_v15, 1 }
 0x751   : > { %6985 = vmatprep.subr.bf16.mxu1 %v7785_v50  ;;  %v5651_v26 = vshll.u32 %v5549_v10, 16  ;;  %v5643_v56 = vshll.u32 %v5548_v19, 16  ;;  %v5892_v3 = vsel %vm1702_vm9, %v5887_v5, %v5891_v11  ;;  %v5895_v29 = vrot.slane %v9533_v8, 1 }
 0x752   : > { %v5630_v41 = vsel %vm1433_vm10, %v5625_v9, %v5629_v57  ;;  %v5885_v16 = vsel %vm1702_vm9, %v5883_v52, %v5884_v36  ;;  %v5641_v13 = vor.u32 %v5639_v25, %v5629_v57  ;;  %v5890_v59 = vsel %vm1702_vm9, %v5884_v36, %v5889_v12 }
 0x753   : > { %5800 = vmatmul.mubr.bf16.gmra.mxu0 %v5614_v45  ;;  %5506 = vmatmul.mubr.bf16.gmra.mxu1 %v9554_v37  ;;  %v5653_v2 = vrot.slane %v5651_v26, 1  ;;  %v5645_v46 = vrot.slane %v5643_v56, 1  ;;  %v5896_v63 = vsel %vm1702_vm9, %v5891_v11, %v5895_v29  ;;  %v5893_v38 = vrot.slane %v9554_v37, 1 }
 0x754   : > { %6986 = vmatpush3.bf16.msra.mxu1 %v7786_v17  ;;  %6037 = vmatprep.mubr.bf16.mxu1 %v5888_v20 }
 0x755   : > { %5807 = vmatprep.mubr.bf16.mxu0 %v5638_v60  ;;  %6987 = vmatprep.subr.bf16.mxu1 %v7787_v43  ;;  %v5654_v0 = vsel %vm1433_vm10, %v5649_v61, %v5653_v2  ;;  %v5646_v48 = vsel %vm1433_vm10, %v5641_v13, %v5645_v46  ;;  %v5894_v15 = vsel %vm1702_vm9, %v5889_v12, %v5893_v38 }
 0x756   : > { %v5835_v24 = vld [vmem:[#allocation5 + $0x88] sm:$0x3]  ;;  %v5834_v22 = vld [vmem:[#allocation5 + $0x80] sm:$0x3] }
 0x757   : > { %v5839_v49 = vpack.c.bf16 %v5835_v24, %v5835_v24  ;;  %v5838_v47 = vpack.c.bf16 %v5834_v22, %v5834_v22 }
 0x758   : > { %6988 = vmatpush3.bf16.msra.mxu1 %v7788_v28 }
 0x759   : > { %v5899_v4 = vrot.slane %v5839_v49, 1  ;;  %v5897_v44 = vrot.slane %v5838_v47, 1 }
 0x75b   : > { %5808 = vmatmul.mubr.bf16.gmra.mxu0 %v5630_v41  ;;  %6038 = vmatmul.mubr.bf16.vlgmr.msra.gmra.mxu1 %v5885_v16  ;;  %v5900_v8 = vsel %vm1702_vm9, %v5895_v29, %v5899_v4  ;;  %v5898_v31 = vsel %vm1702_vm9, %v5893_v38, %v5897_v44 }
 0x75c   : > { %5815 = vmatprep.mubr.bf16.mxu0 %v5654_v0  ;;  %6045 = vmatprep.mubr.bf16.mxu1 %v5892_v3  ;;  %v5291_v0 = vld [vmem:[#allocation15 + $0x10] sm:$0xff] }
 0x763   : > { %5816 = vmatmul.mubr.bf16.gmra.mxu0 %v5646_v48  ;;  %6046 = vmatmul.mubr.bf16.gmra.mxu1 %v5890_v59 }
 0x764   : > { %6053 = vmatprep.mubr.bf16.mxu1 %v5896_v63  ;;  %v5292_v63 = vld [vmem:[#allocation15 + $0x18] sm:$0xff] }
 0x76b   : > { %6054 = vmatmul.mubr.bf16.gmra.mxu1 %v5894_v15 }
 0x76c   : > { %6061 = vmatprep.mubr.bf16.mxu1 %v5900_v8 }
 0x773   : > { %6062 = vmatmul.mubr.bf16.gmra.mxu1 %v5898_v31 }
 0x7fb   : > { %v6909_v51 = vpop.f32.mrf.mxu1 }
 0x7fd   : > { %v6910_v42 = vpop.f32.mrf.mxu1 }
 0x7fe   : > { %v6911_v26 = vadd.f32 %v6910_v42, %v6909_v51  ;;  %v5293_v51 = vld [vmem:[#allocation15 + $0x20] sm:$0xff] }
 0x7ff   : > { %v6912_v55 = vpop.f32.mrf.mxu1 }
 0x800   : > { %v5514_v28 = vadd.f32 %v6911_v26, %v5289_v7 }
 0x801   : > { %v6913_v62 = vpop.f32.mrf.mxu1 }
 0x802   : > { %v6914_v18 = vadd.f32 %v6913_v62, %v6912_v55 }
 0x803   : > { %v6915_v6 = vpop.f32.mrf.mxu1 }
 0x804   : > { %v5515_v52 = vadd.f32 %v6914_v18, %v5290_v23  ;;  %v5295_v18 = vld [vmem:[#allocation15 + $0x30] sm:$0xff] }
 0x805   : > { %v6916_v32 = vpop.f32.mrf.mxu1 }
 0x806   : > { %v6917_v61 = vadd.f32 %v6916_v32, %v6915_v6 }
 0x807   : > { %v6918_v1 = vpop.f32.mrf.mxu1 }
 0x808   : > { %v5516_v12 = vadd.f32 %v6917_v61, %v5291_v0  ;;  %v5296_v0 = vld [vmem:[#allocation15 + $0x38] sm:$0xff] }
 0x809   : > { %v6919_v14 = vpop.f32.mrf.mxu1 }
 0x80a   : > { %v6920_v24 = vadd.f32 %v6919_v14, %v6918_v1 }
 0x80b   : > { %v6949_v50 = vpop.f32.mrf.mxu0  ;;  %v6921_v30 = vpop.f32.mrf.mxu1 }
 0x80c   : > { %v5517_v31 = vadd.f32 %v6920_v24, %v5292_v63 }
 0x80d   : > { %v6950_v33 = vpop.f32.mrf.mxu0  ;;  %v6922_v37 = vpop.f32.mrf.mxu1 }
 0x80e   : > { %v6951_v35 = vadd.f32 %v6950_v33, %v6949_v50  ;;  %v6923_v47 = vadd.f32 %v6922_v37, %v6921_v30 }
 0x80f   : > { %v6952_v53 = vpop.f32.mrf.mxu0  ;;  %v9593_v58 = vpop.f32.mrf.mxu1 }
 0x810   : > { %v5824_v57 = vadd.f32 %v6951_v35, %v5514_v28  ;;  %v5518_v50 = vadd.f32 %v6923_v47, %v5293_v51 }
 0x811   : > { %v6953_v54 = vpop.f32.mrf.mxu0  ;;  %v9595_v5 = vpop.f32.mrf.mxu1 }
 0x812   : > { %v6954_v36 = vadd.f32 %v6953_v54, %v6952_v53  ;;  %v6926_v30 = vadd.f32 %v9595_v5, %v9593_v58 }
 0x813   : > { %v6955_v10 = vpop.f32.mrf.mxu0  ;;  %v9597_v40 = vpop.f32.mrf.mxu1 }
 0x814   : > { %v5825_v3 = vadd.f32 %v6954_v36, %v5515_v52 }
 0x815   : > { %v6956_v17 = vpop.f32.mrf.mxu0  ;;  %v9599_v27 = vpop.f32.mrf.mxu1 }
 0x816   : > { %v6957_v16 = vadd.f32 %v6956_v17, %v6955_v10  ;;  %v5294_v10 = vld [vmem:[#allocation15 + $0x28] sm:$0xff]  ;;  %v6929_v35 = vadd.f32 %v9599_v27, %v9597_v40 }
 0x817   : > { %v6958_v39 = vpop.f32.mrf.mxu0  ;;  %v9601_v43 = vpop.f32.mrf.mxu1  ;;  %v5519_v28 = vadd.f32 %v6926_v30, %v5294_v10 }
 0x818   : > { %v5826_v49 = vadd.f32 %v6957_v16, %v5516_v12  ;;  %v5520_v61 = vadd.f32 %v6929_v35, %v5295_v18 }
 0x819   : > { %v6959_v45 = vpop.f32.mrf.mxu0  ;;  %v9603_v60 = vpop.f32.mrf.mxu1 }
 0x81a   : > { %v6960_v4 = vadd.f32 %v6959_v45, %v6958_v39  ;;  %v6932_v52 = vadd.f32 %v9603_v60, %v9601_v43 }
 0x81b   : > { %v6961_v20 = vpop.f32.mrf.mxu0  ;;  %v6989_v21 = vpop.f32.mrf.mxu1 }
 0x81c   : > { %v5827_v32 = vadd.f32 %v6960_v4, %v5517_v31 }
 0x81d   : > { %v6962_v2 = vpop.f32.mrf.mxu0  ;;  %v6990_v34 = vpop.f32.mrf.mxu1 }
 0x81e   : > { %v6991_v19 = vadd.f32 %v6990_v34, %v6989_v21  ;;  %v6963_v62 = vadd.f32 %v6962_v2, %v6961_v20 }
 0x81f   : > { %v6964_v11 = vpop.f32.mrf.mxu0  ;;  %v6992_v9 = vpop.f32.mrf.mxu1 }
 0x820   : > { %v6070_v41 = vadd.f32 %v6991_v19, %v5824_v57  ;;  %v5828_v17 = vadd.f32 %v6963_v62, %v5518_v50 }
 0x821   : > { %v6993_v56 = vpop.f32.mrf.mxu1  ;;  %v6965_v29 = vpop.f32.mrf.mxu0 }
 0x822   : > { %v6858_v25 = vadd.f32 -2.0, %v6070_v41  ;;  %v6994_v46 = vadd.f32 %v6993_v56, %v6992_v9  ;;  %v6966_v26 = vadd.f32 %v6965_v29, %v6964_v11  ;;  %v5521_v29 = vadd.f32 %v6932_v52, %v5296_v0 }
 0x823   : > { %v6995_v13 = vpop.f32.mrf.mxu1  ;;  %v6967_v8 = vpop.f32.mrf.mxu0 }
 0x824   : > { %v6086_v48 = vmul.f32 1.442695, %v6858_v25  ;;  %v6071_v59 = vadd.f32 %v6994_v46, %v5825_v3  ;;  %v5829_v34 = vadd.f32 %v6966_v26, %v5519_v28 }
 0x825   : > { %v6996_v38 = vpop.f32.mrf.mxu1  ;;  %v6968_v33 = vpop.f32.mrf.mxu0 }
 0x826   : > { %7869 = vpow2.f32 %v6086_v48  ;;  %v6859_v22 = vadd.f32 -2.0, %v6071_v59  ;;  %v6997_v15 = vadd.f32 %v6996_v38, %v6995_v13  ;;  %v6969_v5 = vadd.f32 %v6968_v33, %v6967_v8 }
 0x827   : > { %v6998_v44 = vpop.f32.mrf.mxu1  ;;  %v6970_v20 = vpop.f32.mrf.mxu0 }
 0x828   : > { %v6088_v42 = vmul.f32 1.442695, %v6859_v22  ;;  %v6072_v55 = vadd.f32 %v6997_v15, %v5826_v49  ;;  %v5830_v41 = vadd.f32 %v6969_v5, %v5520_v61 }
 0x829   : > { %v6999_v6 = vpop.f32.mrf.mxu1  ;;  %v6971_v11 = vpop.f32.mrf.mxu0 }
 0x82a   : > { %7871 = vpow2.f32 %v6088_v42  ;;  %v6860_v1 = vadd.f32 -2.0, %v6072_v55  ;;  %v7000_v14 = vadd.f32 %v6999_v6, %v6998_v44  ;;  %v6972_v56 = vadd.f32 %v6971_v11, %v6970_v20 }
 0x82b   : > { %v7001_v53 = vpop.f32.mrf.mxu1 }
 0x82c   : > { %v6090_v37 = vmul.f32 1.442695, %v6860_v1  ;;  %v6073_v54 = vadd.f32 %v7000_v14, %v5827_v32  ;;  %v5831_v24 = vadd.f32 %v6972_v56, %v5521_v29 }
 0x82d   : > { %v7002_v39 = vpop.f32.mrf.mxu1 }
 0x82e   : > { %7873 = vpow2.f32 %v6090_v37  ;;  %v6861_v7 = vadd.f32 -2.0, %v6073_v54  ;;  %v7003_v45 = vadd.f32 %v7002_v39, %v7001_v53 }
 0x82f   : > { %v7004_v21 = vpop.f32.mrf.mxu1 }
 0x830   : > { %v6092_v23 = vmul.f32 1.442695, %v6861_v7  ;;  %v6074_v58 = vadd.f32 %v7003_v45, %v5828_v17 }
 0x831   : > { %v7005_v2 = vpop.f32.mrf.mxu1 }
 0x832   : > { %7875 = vpow2.f32 %v6092_v23  ;;  %v6862_v57 = vadd.f32 -2.0, %v6074_v58  ;;  %v7006_v36 = vadd.f32 %v7005_v2, %v7004_v21 }
 0x833   : > { %v7870_v19 = vpop.eup %7869  ;;  %v7007_v9 = vpop.f32.mrf.mxu1 }
 0x834   : > { %v6094_v40 = vmul.f32 1.442695, %v6862_v57  ;;  %v6075_v27 = vadd.f32 %v7006_v36, %v5829_v34  ;;  %6102 = vst.msk [vmem:[%s9614_s19] sm:$0xff] %vm530_vm1, %v7870_v19 }
 0x835   : > { %v7008_v16 = vpop.f32.mrf.mxu1 }
 0x836   : > { %7877 = vpow2.f32 %v6094_v40  ;;  %v6863_v3 = vadd.f32 -2.0, %v6075_v27  ;;  %v7009_v25 = vadd.f32 %v7008_v16, %v7007_v9 }
 0x837   : > { %v7872_v46 = vpop.eup %7871  ;;  %v7010_v12 = vpop.f32.mrf.mxu1 }
 0x838   : > { %v6096_v43 = vmul.f32 1.442695, %v6863_v3  ;;  %v6076_v60 = vadd.f32 %v7009_v25, %v5830_v41  ;;  %6103 = vst.msk [vmem:[%s9614_s19 + $0x8] sm:$0xff] %vm530_vm1, %v7872_v46 }
 0x839   : > { %v7011_v13 = vpop.f32.mrf.mxu1 }
 0x83a   : > { %7879 = vpow2.f32 %v6096_v43  ;;  %v6864_v48 = vadd.f32 -2.0, %v6076_v60  ;;  %v7012_v59 = vadd.f32 %v7011_v13, %v7010_v12 }
 0x83b   : > { %v7874_v63 = vpop.eup %7873 }
 0x83c   : > { %v6098_v49 = vmul.f32 1.442695, %v6864_v48  ;;  %v6077_v38 = vadd.f32 %v7012_v59, %v5831_v24  ;;  %6104 = vst.msk [vmem:[%s9614_s19 + $0x10] sm:$0xff] %vm530_vm1, %v7874_v63 }
 0x83e   : > { %7881 = vpow2.f32 %v6098_v49  ;;  %v6865_v4 = vadd.f32 -2.0, %v6077_v38 }
 0x83f   : > { %v7876_v22 = vpop.eup %7875 }
 0x840   : > { %v6100_v15 = vmul.f32 1.442695, %v6865_v4  ;;  %6105 = vst.msk [vmem:[%s9614_s19 + $0x18] sm:$0xff] %vm530_vm1, %v7876_v22 }
 0x842   : > { %7883 = vpow2.f32 %v6100_v15 }
 0x843   : > { %v7878_v47 = vpop.eup %7877 }
 0x844   : > { %6106 = vst.msk [vmem:[%s9614_s19 + $0x20] sm:$0xff] %vm530_vm1, %v7878_v47 }
 0x847   : > { %v7880_v8 = vpop.eup %7879 }
 0x848   : > { %6107 = vst.msk [vmem:[%s9614_s19 + $0x28] sm:$0xff] %vm530_vm1, %v7880_v8 }
 0x84b   : > { %v7882_v44 = vpop.eup %7881 }
 0x84c   : > { %6108 = vst.msk [vmem:[%s9614_s19 + $0x30] sm:$0xff] %vm530_vm1, %v7882_v44 }
 0x84f   : > { %v7884_v31 = vpop.eup %7883 }
 0x850   : > { %6109 = vst.msk [vmem:[%s9614_s19 + $0x38] sm:$0xff] %vm530_vm1, %v7884_v31 }
 0x851   : > { %8054 = shalt.err (!%p8051_p3)
}
 0x852   : > { %s8055_s22 = scalar_lea.hbm %s9635_s27, 1024  ;;  %s8059_s16 = scalar_lea.hbm %s9696_s13, 2048 }
 0x853   : > { %p8056_p2 = scmp.ne.s32.totalorder %s9635_s27, %s8055_s22  ;;  %p8060_p9 = scmp.lt.s32.totalorder %s9635_s27, %s9696_s13 }
 0x854   : > { %p8061_p4 = scmp.lt.s32.totalorder %s8059_s16, %s8055_s22 }
 0x855   : > { %p8057_p12 = pnand %p8056_p2, %p8246_p5 }
 0x856   : > { %p8062_p7 = por %p8061_p4, %p8060_p9 }
 0x857   : > { %p8058_p10 = pneg %p8057_p12 }
 0x859   : > { %p8063_p8 = pnand %p8062_p7, %p8058_p10 }
 0x85b   : > { %8066 = shalt.err (!%p8063_p8)
}
 0x85c   : > { %s8136_s15 = smov 128   ;;  %s8137_s24 = smov 8  }
 0x85d   : > { %7085 = dma.vmem_to_hbm [thread:$0]  (%p8246_p5), %s9637_s23, 1024, %s9635_s27, %s9643_s9, %s8136_s15, %s8136_s15, %s8137_s24  }
 0x85e PF: > { %p7122_p0 = scmp.ge.s32.totalorder %s8117_s28, 2  ;;  %s6139_s14 = sand.u32 1, %s8105_s25  }
 0x85f   : > { %s6140_s30 = scalar_lea.sflag [#allocation8], %s6139_s14 }
 0x860   : > { %p7107_p13 = pnand %p7122_p0, %p8250_p6 }
 0x862   : > { %p7108_p11 = pneg %p7107_p13 }
 0x864   : > { %8100 = dma.done.wait (%p7108_p11), %s6140_s30, 1024  }
 0x865   : > { %8102 = vsyncadd (%p7108_p11), %s6140_s30, 4294966272  ;;  %s9762_s28 = sld [smem:[#allocation24_spill]]  ;;  %s9765_s25 = smov %s8109_s26 }
 0x866   : > { %s9763_s17 = sld [smem:[#allocation23_spill]] }
 0x867   : > { %s9764_s27 = sld [smem:[#allocation25_spill]] }
 0x86b   : > { %p27_p1 = scmp.ge.s32.totalorder %s9762_s28, 4  }
 0x86c   : > { %s9766_s26 = smov %s9763_s17 }
 0x86d   :  { %29 = sbr.rel (!%p27_p1) target bundleno = 10 (0xa), region = 146 }
 0x872   :  { %6145 = vsyncpa [#allocation7], 1 }
 0x873   :  { %6147 = vsyncpa [#allocation7 + $0x1], 1 }
 0x874   :  { %6148 = vsyncpa [#allocation10], 1 }
 0x875   :  { %6149 = vsyncpa [#allocation13], 1 }
 0x876   :  { %6150 = vsyncpa [#allocation16], 1 }
 0x877   :  { %6151 = vsyncpa [#allocation8], 1 }
 0x878   :  { %6153 = vsyncpa [#allocation8 + $0x1], 1 }

</bundles_post_ra>
